<compile_context>
chip_gen: v5e
topology: v5e:2x2
jax: 0.10.0
libtpu: 0.0.40
codegen_flags: <defaults>
</compile_context>

<pallas_src>
import jax
import jax.numpy as jnp
from jax import lax
from jax.experimental import pallas as pl
from jax.experimental.pallas import tpu as pltpu


# ------------------------------ small helpers -------------------------------

def _round_up(n, m):
    return ((n + m - 1) // m) * m


def _pad_axis(x, axis, target):
    pad = target - x.shape[axis]
    if pad == 0:
        return x
    widths = [(0, 0)] * x.ndim
    widths[axis] = (0, pad)
    return jnp.pad(x, widths)


def fold_bn(gamma, beta, mean, var, eps=1e-5):
    scale = gamma * lax.rsqrt(var + eps)
    bias = beta - mean * scale
    return scale.astype(jnp.float32), bias.astype(jnp.float32)


# ------------------------------ Pallas kernel --------------------------------

def _make_block_kernel(ho, wo, cin, cmid, cout, stride, has_downsample):
    """Fused conv1+bn1+relu+conv2+bn2+residual+relu for one NHWC image."""

    def kernel(*refs):
        if has_downsample:
            (xph_ref, w1_ref, b1_ref, w2_ref, b2_ref,
             wd_ref, bd_ref, o_ref, y1_ref) = refs
        else:
            xph_ref, w1_ref, b1_ref, w2_ref, b2_ref, o_ref, y1_ref = refs
            wd_ref = bd_ref = None

        def x_tap(kh, kw):
            # Phase-packed padded input: phase p = (kh%s)*s + (kw%s) occupies
            # channel slot [p*cin, (p+1)*cin); within a phase the tap offset is
            # (kh//s, kw//s).  Only unit-stride static slices are needed.
            p = (kh % stride) * stride + (kw % stride)
            dh, dw = kh // stride, kw // stride
            return xph_ref[0, dh:dh + ho, dw:dw + wo, p * cin:(p + 1) * cin]

        def conv3x3(tap_fn, w_ref, bias):
            # sum_{kh,kw} tap(kh,kw) @ w[kh*3+kw]  + bias   (bf16 x bf16 -> f32)
            acc = jnp.zeros((ho * wo, w_ref.shape[-1]), jnp.float32)
            for kh in range(3):
                for kw in range(3):
                    t = tap_fn(kh, kw)
                    acc = acc + jnp.dot(t.reshape(ho * wo, t.shape[-1]),
                                        w_ref[kh * 3 + kw],
                                        preferred_element_type=jnp.float32)
            return acc + bias

        # conv1 + bn1 (folded) + relu
        y1 = jnp.maximum(conv3x3(x_tap, w1_ref, b1_ref[...]), 0.0)

        # Stage y1 (zero padding of 1) in VMEM so conv2 taps are plain slices;
        # the intermediate never touches HBM.
        y1_ref[...] = jnp.zeros(y1_ref.shape, y1_ref.dtype)
        y1_ref[1:1 + ho, 1:1 + wo, :] = (
            y1.reshape(ho, wo, cmid).astype(y1_ref.dtype))

        def y_tap(kh, kw):
            return y1_ref[kh:kh + ho, kw:kw + wo, :]

        # conv2 + bn2 (folded)
        out = conv3x3(y_tap, w2_ref, b2_ref[...])

        # Residual: the center tap (1,1) of the phase-packed input is exactly
        # the strided (or identity) view of x that the residual path reads.
        rtap = x_tap(1, 1).reshape(ho * wo, cin)
        if has_downsample:
            res = jnp.dot(rtap, wd_ref[...],
                          preferred_element_type=jnp.float32) + bd_ref[...]
        else:
            res = rtap.astype(jnp.float32)          # cin == cout here

        o_ref[...] = jnp.maximum(out + res, 0.0).reshape(
            1, ho, wo, cout).astype(o_ref.dtype)

    return kernel


def fused_basic_block(xph, w1f, b1p, w2f, b2p, wdf=None, bdp=None, *,
                      ho, wo, stride):
    n, r, rw, cph = xph.shape
    cin = cph // (stride * stride)
    cmid = w1f.shape[2]
    cout = w2f.shape[2]
    has_ds = wdf is not None

    kernel = _make_block_kernel(ho, wo, cin, cmid, cout, stride, has_ds)

    in_specs = [
        pl.BlockSpec((1, r, rw, cph), lambda b: (b, 0, 0, 0)),
        pl.BlockSpec((9, cin, cmid), lambda b: (0, 0, 0)),
        pl.BlockSpec((1, cmid), lambda b: (0, 0)),
        pl.BlockSpec((9, cmid, cout), lambda b: (0, 0, 0)),
        pl.BlockSpec((1, cout), lambda b: (0, 0)),
    ]
    inputs = [xph, w1f, b1p, w2f, b2p]
    if has_ds:
        in_specs += [pl.BlockSpec((cin, cout), lambda b: (0, 0)),
                     pl.BlockSpec((1, cout), lambda b: (0, 0))]
        inputs += [wdf, bdp]

    # Explicit scoped-VMEM budget: double-buffered operands + scratch +
    # f32 accumulator temporaries, with headroom, capped to fit every
    # generation's physical VMEM (v7x: 64 MiB per TensorCore).
    def nbytes(a):
        return int(a.size) * a.dtype.itemsize
    est = 2 * sum(nbytes(a) for a in inputs)
    est += 2 * ho * wo * cout * 4                         # output block (f32)
    est += (ho + 2) * (wo + 2) * cmid * 2                 # y1 scratch (bf16)
    est += 6 * ho * wo * max(cmid, cout) * 4              # live f32 temporaries
    vmem_limit = int(min(64 * 2**20, max(32 * 2**20, est + 8 * 2**20)))

    return pl.pallas_call(
        kernel,
        out_shape=jax.ShapeDtypeStruct((n, ho, wo, cout), jnp.float32),
        grid_spec=pltpu.PrefetchScalarGridSpec(
            num_scalar_prefetch=0,
            grid=(n,),
            in_specs=in_specs,
            out_specs=pl.BlockSpec((1, ho, wo, cout), lambda b: (b, 0, 0, 0)),
            scratch_shapes=[pltpu.VMEM((ho + 2, wo + 2, cmid), jnp.bfloat16)],
        ),
        compiler_params=pltpu.CompilerParams(
            dimension_semantics=("parallel",),
            vmem_limit_bytes=vmem_limit,
        ),
    )(*inputs)


# ------------------------------- JAX wrapper ---------------------------------

def init_basic_block_params(key, in_planes, planes, stride=1, sketch_rate=1):
    mid = int(planes * sketch_rate)
    expansion = 1
    ks = list(jax.random.split(key, 12))

    def bn_params(k, c):
        k1, k2, k3, k4 = jax.random.split(k, 4)
        gamma = 1.0 + 0.05 * jax.random.normal(k1, (c,), jnp.float32)
        beta = 0.05 * jax.random.normal(k2, (c,), jnp.float32)
        mean = 0.02 * jax.random.normal(k3, (c,), jnp.float32)
        var = 1.0 + 0.1 * jax.random.uniform(k4, (c,), jnp.float32)
        return gamma, beta, mean, var

    params = {
        "w1": 0.1 * jax.random.normal(ks[0], (3, 3, in_planes, mid), jnp.float32),
        "bn1": bn_params(ks[1], mid),
        "w2": 0.1 * jax.random.normal(ks[2], (3, 3, mid, planes), jnp.float32),
        "bn2": bn_params(ks[3], planes),
        "stride": stride,
    }
    if stride != 1 or in_planes != expansion * planes:
        params["wd"] = 0.1 * jax.random.normal(
            ks[4], (1, 1, in_planes, expansion * planes), jnp.float32)
        params["bnd"] = bn_params(ks[5], expansion * planes)
    return params


def basic_block_forward(params, x_nchw):
    stride = int(params["stride"])
    w1 = params["w1"]                       # (3,3,Cin,Cmid) HWIO
    w2 = params["w2"]                       # (3,3,Cmid,Cout)
    cin, cmid = w1.shape[2], w1.shape[3]
    cout = w2.shape[3]
    n, _, h, w = x_nchw.shape
    assert h % stride == 0 and w % stride == 0
    ho, wo = h // stride, w // stride

    # channel padding to multiples of 128 -> lane-dense layouts, unmasked MXU
    cip = _round_up(cin, 128)
    cmp_ = _round_up(cmid, 128)
    cop = _round_up(cout, 128)

    # NCHW -> NHWC, spatial pad=1, channel zero-pad, bf16 matmul operands
    x = jnp.transpose(x_nchw, (0, 2, 3, 1)).astype(jnp.float32)
    x_p = jnp.pad(x, ((0, 0), (1, 1), (1, 1), (0, cip - cin)))
    x_p = x_p.astype(jnp.bfloat16)

    # fold BN scales into weight columns, biases stay f32
    s1, b1 = fold_bn(*params["bn1"])
    s2, b2 = fold_bn(*params["bn2"])
    w1f = (w1.astype(jnp.float32) * s1[None, None, None, :]).reshape(9, cin, cmid)
    w2f = (w2.astype(jnp.float32) * s2[None, None, None, :]).reshape(9, cmid, cout)
    w1f = _pad_axis(_pad_axis(w1f, 1, cip), 2, cmp_).astype(jnp.bfloat16)
    w2f = _pad_axis(_pad_axis(w2f, 1, cmp_), 2, cop).astype(jnp.bfloat16)
    b1p = _pad_axis(b1[None, :], 1, cmp_)
    b2p = _pad_axis(b2[None, :], 1, cop)

    # Phase-pack the padded input so the kernel only needs unit-stride slices
    # for the strided conv1 (no im2col, no in-kernel strided gathers).
    if stride == 1:
        xph = x_p                                       # (N, H+2, W+2, Cip)
    else:
        r, rw = ho + 2 // stride, wo + 2 // stride
        phases = [x_p[:, a::stride, b::stride, :][:, :r, :rw, :]
                  for a in range(stride) for b in range(stride)]
        xph = jnp.concatenate(phases, axis=-1)          # (N, r, rw, s*s*Cip)

    has_ds = "wd" in params
    if has_ds:
        sd, bd = fold_bn(*params["bnd"])
        wdf = (params["wd"].reshape(cin, cout).astype(jnp.float32) * sd[None, :])
        wdf = _pad_axis(_pad_axis(wdf, 0, cip), 1, cop).astype(jnp.bfloat16)
        bdp = _pad_axis(bd[None, :], 1, cop)
        out = fused_basic_block(xph, w1f, b1p, w2f, b2p, wdf, bdp,
                                ho=ho, wo=wo, stride=stride)
    else:
        assert cin == cout and stride == 1              # identity residual
        out = fused_basic_block(xph, w1f, b1p, w2f, b2p,
                                ho=ho, wo=wo, stride=stride)

    out = out[:, :, :, :cout]                           # drop channel padding
    return jnp.transpose(out, (0, 3, 1, 2))             # NHWC -> NCHW


# ----------------------------- pure-JAX reference ----------------------------

def _ref_conv(x_nhwc, w_hwio, stride, pad):
    return lax.conv_general_dilated(
        x_nhwc, w_hwio, window_strides=(stride, stride),
        padding=[(pad, pad), (pad, pad)],
        dimension_numbers=("NHWC", "HWIO", "NHWC"))


def basic_block_reference(params, x_nchw):
    stride = params["stride"]
    x = jnp.transpose(x_nchw, (0, 2, 3, 1)).astype(jnp.float32)
    s1, b1 = fold_bn(*params["bn1"])
    s2, b2 = fold_bn(*params["bn2"])
    out = _ref_conv(x, params["w1"], stride, 1) * s1 + b1
    out = jnp.maximum(out, 0.0)
    out = _ref_conv(out, params["w2"], 1, 1) * s2 + b2
    if "wd" in params:
        sd, bd = fold_bn(*params["bnd"])
        res = _ref_conv(x, params["wd"], stride, 0) * sd + bd
    else:
        res = x
    out = jnp.maximum(out + res, 0.0)
    return jnp.transpose(out, (0, 3, 1, 2))


# --------------------------------- main ---------------------------------------

if __name__ == "__main__":
    key = jax.random.PRNGKey(0)
    k1, k2, kx1, kx2 = jax.random.split(key, 4)

    # Case 1: strided block with 1x1-conv downsample residual.
    in_planes, planes, stride = 4, 8, 2
    N, H, W = 2, 16, 16
    x = jax.random.normal(kx1, (N, in_planes, H, W), jnp.float32)   # NCHW
    params = init_basic_block_params(k1, in_planes, planes, stride=stride)

    out = jax.block_until_ready(basic_block_forward(params, x))
    ref = jax.block_until_ready(basic_block_reference(params, x))
    assert out.shape == ref.shape == (N, planes, H // stride, W // stride)
    # bf16 matmul operands -> loosened tolerance vs f32 reference
    assert jnp.allclose(out, ref, rtol=5e-2, atol=5e-2), \
        float(jnp.max(jnp.abs(out - ref)))

    # Case 2: stride-1 block with identity residual (plain VPU add in-kernel).
    in_planes2, planes2 = 8, 8
    N2, H2, W2 = 2, 8, 8
    x2 = jax.random.normal(kx2, (N2, in_planes2, H2, W2), jnp.float32)
    params2 = init_basic_block_params(k2, in_planes2, planes2, stride=1)

    out2 = jax.block_until_ready(basic_block_forward(params2, x2))
    ref2 = jax.block_until_ready(basic_block_reference(params2, x2))
    assert out2.shape == ref2.shape == (N2, planes2, H2, W2)
    assert jnp.allclose(out2, ref2, rtol=5e-2, atol=5e-2), \
        float(jnp.max(jnp.abs(out2 - ref2)))

    print("KERNEL_OK")
</pallas_src>

<mosaic_0001>
module attributes {stable_mosaic.version = 11 : i64} {
  func.func @kernel(%arg0: i32, %arg1: memref<1x9x9x512xbf16, #tpu.memory_space<vmem>>, %arg2: memref<9x128x128xbf16, #tpu.memory_space<vmem>>, %arg3: memref<1x128xf32, #tpu.memory_space<vmem>>, %arg4: memref<9x128x128xbf16, #tpu.memory_space<vmem>>, %arg5: memref<1x128xf32, #tpu.memory_space<vmem>>, %arg6: memref<128x128xbf16, #tpu.memory_space<vmem>>, %arg7: memref<1x128xf32, #tpu.memory_space<vmem>>, %arg8: memref<1x8x8x128xf32, #tpu.memory_space<vmem>>, %arg9: memref<10x10x128xbf16, #tpu.memory_space<vmem>>) attributes {dimension_semantics = [#tpu.dimension_semantics<parallel>], iteration_bounds = array<i64: 2>, scalar_prefetch = 0 : i64, scratch_operands = 1 : i64, tpu.core_type = #tpu.core_type<tc>, window_params = [{transform_indices = @transform_0, window_bounds = array<i64: 1, 9, 9, 512>}, {pipeline_mode = #tpu.pipeline_mode<synchronous>, transform_indices = @transform_1, window_bounds = array<i64: 9, 128, 128>}, {pipeline_mode = #tpu.pipeline_mode<synchronous>, transform_indices = @transform_2, window_bounds = array<i64: 1, 128>}, {pipeline_mode = #tpu.pipeline_mode<synchronous>, transform_indices = @transform_3, window_bounds = array<i64: 9, 128, 128>}, {pipeline_mode = #tpu.pipeline_mode<synchronous>, transform_indices = @transform_4, window_bounds = array<i64: 1, 128>}, {pipeline_mode = #tpu.pipeline_mode<synchronous>, transform_indices = @transform_5, window_bounds = array<i64: 128, 128>}, {pipeline_mode = #tpu.pipeline_mode<synchronous>, transform_indices = @transform_6, window_bounds = array<i64: 1, 128>}, {transform_indices = @transform_7, window_bounds = array<i64: 1, 8, 8, 128>}]} {
    %c0 = arith.constant 0 : index
    %c0_0 = arith.constant 0 : index
    %0 = vector.load %arg3[%c0, %c0_0] : memref<1x128xf32, #tpu.memory_space<vmem>>, vector<1x128xf32>
    %cst = arith.constant 0.000000e+00 : f32
    %1 = vector.broadcast %cst : f32 to vector<64x128xf32>
    %c0_1 = arith.constant 0 : index
    %c0_2 = arith.constant 0 : index
    %c0_3 = arith.constant 0 : index
    %c0_4 = arith.constant 0 : index
    %2 = vector.load %arg1[%c0_1, %c0_2, %c0_3, %c0_4] : memref<1x9x9x512xbf16, #tpu.memory_space<vmem>>, vector<1x8x8x128xbf16>
    %3 = vector.shape_cast %2 : vector<1x8x8x128xbf16> to vector<8x8x128xbf16>
    %4 = vector.shape_cast %3 : vector<8x8x128xbf16> to vector<64x128xbf16>
    %c0_5 = arith.constant 0 : index
    %c0_6 = arith.constant 0 : index
    %c0_7 = arith.constant 0 : index
    %5 = vector.load %arg2[%c0_5, %c0_6, %c0_7] : memref<9x128x128xbf16, #tpu.memory_space<vmem>>, vector<1x128x128xbf16>
    %6 = vector.shape_cast %5 : vector<1x128x128xbf16> to vector<128x128xbf16>
    %cst_8 = arith.constant dense<0.000000e+00> : vector<64x128xf32>
    %7 = tpu.matmul %4, %6, %cst_8 {dimension_numbers = #tpu.dot_dimension_numbers<[1], [0], [0], [1], [0, 0, 1, 1], [], []>} : vector<64x128xbf16>, vector<128x128xbf16>, vector<64x128xf32> -> vector<64x128xf32>
    %8 = arith.addf %1, %7 : vector<64x128xf32>
    %c0_9 = arith.constant 0 : index
    %c0_10 = arith.constant 0 : index
    %c0_11 = arith.constant 0 : index
    %c128 = arith.constant 128 : index
    %9 = vector.load %arg1[%c0_9, %c0_10, %c0_11, %c128] : memref<1x9x9x512xbf16, #tpu.memory_space<vmem>>, vector<1x8x8x128xbf16>
    %10 = vector.shape_cast %9 : vector<1x8x8x128xbf16> to vector<8x8x128xbf16>
    %11 = vector.shape_cast %10 : vector<8x8x128xbf16> to vector<64x128xbf16>
    %c1 = arith.constant 1 : index
    %c0_12 = arith.constant 0 : index
    %c0_13 = arith.constant 0 : index
    %12 = vector.load %arg2[%c1, %c0_12, %c0_13] : memref<9x128x128xbf16, #tpu.memory_space<vmem>>, vector<1x128x128xbf16>
    %13 = vector.shape_cast %12 : vector<1x128x128xbf16> to vector<128x128xbf16>
    %cst_14 = arith.constant dense<0.000000e+00> : vector<64x128xf32>
    %14 = tpu.matmul %11, %13, %cst_14 {dimension_numbers = #tpu.dot_dimension_numbers<[1], [0], [0], [1], [0, 0, 1, 1], [], []>} : vector<64x128xbf16>, vector<128x128xbf16>, vector<64x128xf32> -> vector<64x128xf32>
    %15 = arith.addf %8, %14 : vector<64x128xf32>
    %c0_15 = arith.constant 0 : index
    %c0_16 = arith.constant 0 : index
    %c1_17 = arith.constant 1 : index
    %c0_18 = arith.constant 0 : index
    %16 = vector.load %arg1[%c0_15, %c0_16, %c1_17, %c0_18] : memref<1x9x9x512xbf16, #tpu.memory_space<vmem>>, vector<1x8x8x128xbf16>
    %17 = vector.shape_cast %16 : vector<1x8x8x128xbf16> to vector<8x8x128xbf16>
    %18 = vector.shape_cast %17 : vector<8x8x128xbf16> to vector<64x128xbf16>
    %c2 = arith.constant 2 : index
    %c0_19 = arith.constant 0 : index
    %c0_20 = arith.constant 0 : index
    %19 = vector.load %arg2[%c2, %c0_19, %c0_20] : memref<9x128x128xbf16, #tpu.memory_space<vmem>>, vector<1x128x128xbf16>
    %20 = vector.shape_cast %19 : vector<1x128x128xbf16> to vector<128x128xbf16>
    %cst_21 = arith.constant dense<0.000000e+00> : vector<64x128xf32>
    %21 = tpu.matmul %18, %20, %cst_21 {dimension_numbers = #tpu.dot_dimension_numbers<[1], [0], [0], [1], [0, 0, 1, 1], [], []>} : vector<64x128xbf16>, vector<128x128xbf16>, vector<64x128xf32> -> vector<64x128xf32>
    %22 = arith.addf %15, %21 : vector<64x128xf32>
    %c0_22 = arith.constant 0 : index
    %c0_23 = arith.constant 0 : index
    %c0_24 = arith.constant 0 : index
    %c256 = arith.constant 256 : index
    %23 = vector.load %arg1[%c0_22, %c0_23, %c0_24, %c256] : memref<1x9x9x512xbf16, #tpu.memory_space<vmem>>, vector<1x8x8x128xbf16>
    %24 = vector.shape_cast %23 : vector<1x8x8x128xbf16> to vector<8x8x128xbf16>
    %25 = vector.shape_cast %24 : vector<8x8x128xbf16> to vector<64x128xbf16>
    %c3 = arith.constant 3 : index
    %c0_25 = arith.constant 0 : index
    %c0_26 = arith.constant 0 : index
    %26 = vector.load %arg2[%c3, %c0_25, %c0_26] : memref<9x128x128xbf16, #tpu.memory_space<vmem>>, vector<1x128x128xbf16>
    %27 = vector.shape_cast %26 : vector<1x128x128xbf16> to vector<128x128xbf16>
    %cst_27 = arith.constant dense<0.000000e+00> : vector<64x128xf32>
    %28 = tpu.matmul %25, %27, %cst_27 {dimension_numbers = #tpu.dot_dimension_numbers<[1], [0], [0], [1], [0, 0, 1, 1], [], []>} : vector<64x128xbf16>, vector<128x128xbf16>, vector<64x128xf32> -> vector<64x128xf32>
    %29 = arith.addf %22, %28 : vector<64x128xf32>
    %c0_28 = arith.constant 0 : index
    %c0_29 = arith.constant 0 : index
    %c0_30 = arith.constant 0 : index
    %c384 = arith.constant 384 : index
    %30 = vector.load %arg1[%c0_28, %c0_29, %c0_30, %c384] : memref<1x9x9x512xbf16, #tpu.memory_space<vmem>>, vector<1x8x8x128xbf16>
    %31 = vector.shape_cast %30 : vector<1x8x8x128xbf16> to vector<8x8x128xbf16>
    %32 = vector.shape_cast %31 : vector<8x8x128xbf16> to vector<64x128xbf16>
    %c4 = arith.constant 4 : index
    %c0_31 = arith.constant 0 : index
    %c0_32 = arith.constant 0 : index
    %33 = vector.load %arg2[%c4, %c0_31, %c0_32] : memref<9x128x128xbf16, #tpu.memory_space<vmem>>, vector<1x128x128xbf16>
    %34 = vector.shape_cast %33 : vector<1x128x128xbf16> to vector<128x128xbf16>
    %cst_33 = arith.constant dense<0.000000e+00> : vector<64x128xf32>
    %35 = tpu.matmul %32, %34, %cst_33 {dimension_numbers = #tpu.dot_dimension_numbers<[1], [0], [0], [1], [0, 0, 1, 1], [], []>} : vector<64x128xbf16>, vector<128x128xbf16>, vector<64x128xf32> -> vector<64x128xf32>
    %36 = arith.addf %29, %35 : vector<64x128xf32>
    %c0_34 = arith.constant 0 : index
    %c0_35 = arith.constant 0 : index
    %c1_36 = arith.constant 1 : index
    %c256_37 = arith.constant 256 : index
    %37 = vector.load %arg1[%c0_34, %c0_35, %c1_36, %c256_37] : memref<1x9x9x512xbf16, #tpu.memory_space<vmem>>, vector<1x8x8x128xbf16>
    %38 = vector.shape_cast %37 : vector<1x8x8x128xbf16> to vector<8x8x128xbf16>
    %39 = vector.shape_cast %38 : vector<8x8x128xbf16> to vector<64x128xbf16>
    %c5 = arith.constant 5 : index
    %c0_38 = arith.constant 0 : index
    %c0_39 = arith.constant 0 : index
    %40 = vector.load %arg2[%c5, %c0_38, %c0_39] : memref<9x128x128xbf16, #tpu.memory_space<vmem>>, vector<1x128x128xbf16>
    %41 = vector.shape_cast %40 : vector<1x128x128xbf16> to vector<128x128xbf16>
    %cst_40 = arith.constant dense<0.000000e+00> : vector<64x128xf32>
    %42 = tpu.matmul %39, %41, %cst_40 {dimension_numbers = #tpu.dot_dimension_numbers<[1], [0], [0], [1], [0, 0, 1, 1], [], []>} : vector<64x128xbf16>, vector<128x128xbf16>, vector<64x128xf32> -> vector<64x128xf32>
    %43 = arith.addf %36, %42 : vector<64x128xf32>
    %c0_41 = arith.constant 0 : index
    %c1_42 = arith.constant 1 : index
    %c0_43 = arith.constant 0 : index
    %c0_44 = arith.constant 0 : index
    %44 = vector.load %arg1[%c0_41, %c1_42, %c0_43, %c0_44] : memref<1x9x9x512xbf16, #tpu.memory_space<vmem>>, vector<1x8x8x128xbf16>
    %45 = vector.shape_cast %44 : vector<1x8x8x128xbf16> to vector<8x8x128xbf16>
    %46 = vector.shape_cast %45 : vector<8x8x128xbf16> to vector<64x128xbf16>
    %c6 = arith.constant 6 : index
    %c0_45 = arith.constant 0 : index
    %c0_46 = arith.constant 0 : index
    %47 = vector.load %arg2[%c6, %c0_45, %c0_46] : memref<9x128x128xbf16, #tpu.memory_space<vmem>>, vector<1x128x128xbf16>
    %48 = vector.shape_cast %47 : vector<1x128x128xbf16> to vector<128x128xbf16>
    %cst_47 = arith.constant dense<0.000000e+00> : vector<64x128xf32>
    %49 = tpu.matmul %46, %48, %cst_47 {dimension_numbers = #tpu.dot_dimension_numbers<[1], [0], [0], [1], [0, 0, 1, 1], [], []>} : vector<64x128xbf16>, vector<128x128xbf16>, vector<64x128xf32> -> vector<64x128xf32>
    %50 = arith.addf %43, %49 : vector<64x128xf32>
    %c0_48 = arith.constant 0 : index
    %c1_49 = arith.constant 1 : index
    %c0_50 = arith.constant 0 : index
    %c128_51 = arith.constant 128 : index
    %51 = vector.load %arg1[%c0_48, %c1_49, %c0_50, %c128_51] : memref<1x9x9x512xbf16, #tpu.memory_space<vmem>>, vector<1x8x8x128xbf16>
    %52 = vector.shape_cast %51 : vector<1x8x8x128xbf16> to vector<8x8x128xbf16>
    %53 = vector.shape_cast %52 : vector<8x8x128xbf16> to vector<64x128xbf16>
    %c7 = arith.constant 7 : index
    %c0_52 = arith.constant 0 : index
    %c0_53 = arith.constant 0 : index
    %54 = vector.load %arg2[%c7, %c0_52, %c0_53] : memref<9x128x128xbf16, #tpu.memory_space<vmem>>, vector<1x128x128xbf16>
    %55 = vector.shape_cast %54 : vector<1x128x128xbf16> to vector<128x128xbf16>
    %cst_54 = arith.constant dense<0.000000e+00> : vector<64x128xf32>
    %56 = tpu.matmul %53, %55, %cst_54 {dimension_numbers = #tpu.dot_dimension_numbers<[1], [0], [0], [1], [0, 0, 1, 1], [], []>} : vector<64x128xbf16>, vector<128x128xbf16>, vector<64x128xf32> -> vector<64x128xf32>
    %57 = arith.addf %50, %56 : vector<64x128xf32>
    %c0_55 = arith.constant 0 : index
    %c1_56 = arith.constant 1 : index
    %c1_57 = arith.constant 1 : index
    %c0_58 = arith.constant 0 : index
    %58 = vector.load %arg1[%c0_55, %c1_56, %c1_57, %c0_58] : memref<1x9x9x512xbf16, #tpu.memory_space<vmem>>, vector<1x8x8x128xbf16>
    %59 = vector.shape_cast %58 : vector<1x8x8x128xbf16> to vector<8x8x128xbf16>
    %60 = vector.shape_cast %59 : vector<8x8x128xbf16> to vector<64x128xbf16>
    %c8 = arith.constant 8 : index
    %c0_59 = arith.constant 0 : index
    %c0_60 = arith.constant 0 : index
    %61 = vector.load %arg2[%c8, %c0_59, %c0_60] : memref<9x128x128xbf16, #tpu.memory_space<vmem>>, vector<1x128x128xbf16>
    %62 = vector.shape_cast %61 : vector<1x128x128xbf16> to vector<128x128xbf16>
    %cst_61 = arith.constant dense<0.000000e+00> : vector<64x128xf32>
    %63 = tpu.matmul %60, %62, %cst_61 {dimension_numbers = #tpu.dot_dimension_numbers<[1], [0], [0], [1], [0, 0, 1, 1], [], []>} : vector<64x128xbf16>, vector<128x128xbf16>, vector<64x128xf32> -> vector<64x128xf32>
    %64 = arith.addf %57, %63 : vector<64x128xf32>
    %65 = vector.broadcast %0 : vector<1x128xf32> to vector<64x128xf32>
    %66 = arith.addf %64, %65 : vector<64x128xf32>
    %cst_62 = arith.constant 0.000000e+00 : f32
    %67 = vector.broadcast %cst_62 : f32 to vector<64x128xf32>
    %68 = arith.maximumf %66, %67 : vector<64x128xf32>
    %cst_63 = arith.constant 0.000000e+00 : bf16
    %69 = vector.broadcast %cst_63 : bf16 to vector<10x10x128xbf16>
    %c0_64 = arith.constant 0 : index
    %c0_65 = arith.constant 0 : index
    %c0_66 = arith.constant 0 : index
    %70 = vector.load %arg9[%c0_64, %c0_65, %c0_66] : memref<10x10x128xbf16, #tpu.memory_space<vmem>>, vector<10x10x128xbf16>
    tpu.vector_store %arg9[%c0_64, %c0_65, %c0_66], %69 {strides = array<i32>} : memref<10x10x128xbf16, #tpu.memory_space<vmem>>, vector<10x10x128xbf16>,
    %71 = vector.shape_cast %68 : vector<64x128xf32> to vector<8x8x128xf32>
    %72 = arith.truncf %71 : vector<8x8x128xf32> to vector<8x8x128xbf16>
    %c1_67 = arith.constant 1 : index
    %c1_68 = arith.constant 1 : index
    %c0_69 = arith.constant 0 : index
    %73 = vector.load %arg9[%c1_67, %c1_68, %c0_69] : memref<10x10x128xbf16, #tpu.memory_space<vmem>>, vector<8x8x128xbf16>
    tpu.vector_store %arg9[%c1_67, %c1_68, %c0_69], %72 {strides = array<i32>} : memref<10x10x128xbf16, #tpu.memory_space<vmem>>, vector<8x8x128xbf16>,
    %c0_70 = arith.constant 0 : index
    %c0_71 = arith.constant 0 : index
    %74 = vector.load %arg5[%c0_70, %c0_71] : memref<1x128xf32, #tpu.memory_space<vmem>>, vector<1x128xf32>
    %cst_72 = arith.constant 0.000000e+00 : f32
    %75 = vector.broadcast %cst_72 : f32 to vector<64x128xf32>
    %c0_73 = arith.constant 0 : index
    %c0_74 = arith.constant 0 : index
    %c0_75 = arith.constant 0 : index
    %76 = vector.load %arg9[%c0_73, %c0_74, %c0_75] : memref<10x10x128xbf16, #tpu.memory_space<vmem>>, vector<8x8x128xbf16>
    %77 = vector.shape_cast %76 : vector<8x8x128xbf16> to vector<64x128xbf16>
    %c0_76 = arith.constant 0 : index
    %c0_77 = arith.constant 0 : index
    %c0_78 = arith.constant 0 : index
    %78 = vector.load %arg4[%c0_76, %c0_77, %c0_78] : memref<9x128x128xbf16, #tpu.memory_space<vmem>>, vector<1x128x128xbf16>
    %79 = vector.shape_cast %78 : vector<1x128x128xbf16> to vector<128x128xbf16>
    %cst_79 = arith.constant dense<0.000000e+00> : vector<64x128xf32>
    %80 = tpu.matmul %77, %79, %cst_79 {dimension_numbers = #tpu.dot_dimension_numbers<[1], [0], [0], [1], [0, 0, 1, 1], [], []>} : vector<64x128xbf16>, vector<128x128xbf16>, vector<64x128xf32> -> vector<64x128xf32>
    %81 = arith.addf %75, %80 : vector<64x128xf32>
    %c0_80 = arith.constant 0 : index
    %c1_81 = arith.constant 1 : index
    %c0_82 = arith.constant 0 : index
    %82 = vector.load %arg9[%c0_80, %c1_81, %c0_82] : memref<10x10x128xbf16, #tpu.memory_space<vmem>>, vector<8x8x128xbf16>
    %83 = vector.shape_cast %82 : vector<8x8x128xbf16> to vector<64x128xbf16>
    %c1_83 = arith.constant 1 : index
    %c0_84 = arith.constant 0 : index
    %c0_85 = arith.constant 0 : index
    %84 = vector.load %arg4[%c1_83, %c0_84, %c0_85] : memref<9x128x128xbf16, #tpu.memory_space<vmem>>, vector<1x128x128xbf16>
    %85 = vector.shape_cast %84 : vector<1x128x128xbf16> to vector<128x128xbf16>
    %cst_86 = arith.constant dense<0.000000e+00> : vector<64x128xf32>
    %86 = tpu.matmul %83, %85, %cst_86 {dimension_numbers = #tpu.dot_dimension_numbers<[1], [0], [0], [1], [0, 0, 1, 1], [], []>} : vector<64x128xbf16>, vector<128x128xbf16>, vector<64x128xf32> -> vector<64x128xf32>
    %87 = arith.addf %81, %86 : vector<64x128xf32>
    %c0_87 = arith.constant 0 : index
    %c2_88 = arith.constant 2 : index
    %c0_89 = arith.constant 0 : index
    %88 = vector.load %arg9[%c0_87, %c2_88, %c0_89] : memref<10x10x128xbf16, #tpu.memory_space<vmem>>, vector<8x8x128xbf16>
    %89 = vector.shape_cast %88 : vector<8x8x128xbf16> to vector<64x128xbf16>
    %c2_90 = arith.constant 2 : index
    %c0_91 = arith.constant 0 : index
    %c0_92 = arith.constant 0 : index
    %90 = vector.load %arg4[%c2_90, %c0_91, %c0_92] : memref<9x128x128xbf16, #tpu.memory_space<vmem>>, vector<1x128x128xbf16>
    %91 = vector.shape_cast %90 : vector<1x128x128xbf16> to vector<128x128xbf16>
    %cst_93 = arith.constant dense<0.000000e+00> : vector<64x128xf32>
    %92 = tpu.matmul %89, %91, %cst_93 {dimension_numbers = #tpu.dot_dimension_numbers<[1], [0], [0], [1], [0, 0, 1, 1], [], []>} : vector<64x128xbf16>, vector<128x128xbf16>, vector<64x128xf32> -> vector<64x128xf32>
    %93 = arith.addf %87, %92 : vector<64x128xf32>
    %c1_94 = arith.constant 1 : index
    %c0_95 = arith.constant 0 : index
    %c0_96 = arith.constant 0 : index
    %94 = vector.load %arg9[%c1_94, %c0_95, %c0_96] : memref<10x10x128xbf16, #tpu.memory_space<vmem>>, vector<8x8x128xbf16>
    %95 = vector.shape_cast %94 : vector<8x8x128xbf16> to vector<64x128xbf16>
    %c3_97 = arith.constant 3 : index
    %c0_98 = arith.constant 0 : index
    %c0_99 = arith.constant 0 : index
    %96 = vector.load %arg4[%c3_97, %c0_98, %c0_99] : memref<9x128x128xbf16, #tpu.memory_space<vmem>>, vector<1x128x128xbf16>
    %97 = vector.shape_cast %96 : vector<1x128x128xbf16> to vector<128x128xbf16>
    %cst_100 = arith.constant dense<0.000000e+00> : vector<64x128xf32>
    %98 = tpu.matmul %95, %97, %cst_100 {dimension_numbers = #tpu.dot_dimension_numbers<[1], [0], [0], [1], [0, 0, 1, 1], [], []>} : vector<64x128xbf16>, vector<128x128xbf16>, vector<64x128xf32> -> vector<64x128xf32>
    %99 = arith.addf %93, %98 : vector<64x128xf32>
    %c1_101 = arith.constant 1 : index
    %c1_102 = arith.constant 1 : index
    %c0_103 = arith.constant 0 : index
    %100 = vector.load %arg9[%c1_101, %c1_102, %c0_103] : memref<10x10x128xbf16, #tpu.memory_space<vmem>>, vector<8x8x128xbf16>
    %101 = vector.shape_cast %100 : vector<8x8x128xbf16> to vector<64x128xbf16>
    %c4_104 = arith.constant 4 : index
    %c0_105 = arith.constant 0 : index
    %c0_106 = arith.constant 0 : index
    %102 = vector.load %arg4[%c4_104, %c0_105, %c0_106] : memref<9x128x128xbf16, #tpu.memory_space<vmem>>, vector<1x128x128xbf16>
    %103 = vector.shape_cast %102 : vector<1x128x128xbf16> to vector<128x128xbf16>
    %cst_107 = arith.constant dense<0.000000e+00> : vector<64x128xf32>
    %104 = tpu.matmul %101, %103, %cst_107 {dimension_numbers = #tpu.dot_dimension_numbers<[1], [0], [0], [1], [0, 0, 1, 1], [], []>} : vector<64x128xbf16>, vector<128x128xbf16>, vector<64x128xf32> -> vector<64x128xf32>
    %105 = arith.addf %99, %104 : vector<64x128xf32>
    %c1_108 = arith.constant 1 : index
    %c2_109 = arith.constant 2 : index
    %c0_110 = arith.constant 0 : index
    %106 = vector.load %arg9[%c1_108, %c2_109, %c0_110] : memref<10x10x128xbf16, #tpu.memory_space<vmem>>, vector<8x8x128xbf16>
    %107 = vector.shape_cast %106 : vector<8x8x128xbf16> to vector<64x128xbf16>
    %c5_111 = arith.constant 5 : index
    %c0_112 = arith.constant 0 : index
    %c0_113 = arith.constant 0 : index
    %108 = vector.load %arg4[%c5_111, %c0_112, %c0_113] : memref<9x128x128xbf16, #tpu.memory_space<vmem>>, vector<1x128x128xbf16>
    %109 = vector.shape_cast %108 : vector<1x128x128xbf16> to vector<128x128xbf16>
    %cst_114 = arith.constant dense<0.000000e+00> : vector<64x128xf32>
    %110 = tpu.matmul %107, %109, %cst_114 {dimension_numbers = #tpu.dot_dimension_numbers<[1], [0], [0], [1], [0, 0, 1, 1], [], []>} : vector<64x128xbf16>, vector<128x128xbf16>, vector<64x128xf32> -> vector<64x128xf32>
    %111 = arith.addf %105, %110 : vector<64x128xf32>
    %c2_115 = arith.constant 2 : index
    %c0_116 = arith.constant 0 : index
    %c0_117 = arith.constant 0 : index
    %112 = vector.load %arg9[%c2_115, %c0_116, %c0_117] : memref<10x10x128xbf16, #tpu.memory_space<vmem>>, vector<8x8x128xbf16>
    %113 = vector.shape_cast %112 : vector<8x8x128xbf16> to vector<64x128xbf16>
    %c6_118 = arith.constant 6 : index
    %c0_119 = arith.constant 0 : index
    %c0_120 = arith.constant 0 : index
    %114 = vector.load %arg4[%c6_118, %c0_119, %c0_120] : memref<9x128x128xbf16, #tpu.memory_space<vmem>>, vector<1x128x128xbf16>
    %115 = vector.shape_cast %114 : vector<1x128x128xbf16> to vector<128x128xbf16>
    %cst_121 = arith.constant dense<0.000000e+00> : vector<64x128xf32>
    %116 = tpu.matmul %113, %115, %cst_121 {dimension_numbers = #tpu.dot_dimension_numbers<[1], [0], [0], [1], [0, 0, 1, 1], [], []>} : vector<64x128xbf16>, vector<128x128xbf16>, vector<64x128xf32> -> vector<64x128xf32>
    %117 = arith.addf %111, %116 : vector<64x128xf32>
    %c2_122 = arith.constant 2 : index
    %c1_123 = arith.constant 1 : index
    %c0_124 = arith.constant 0 : index
    %118 = vector.load %arg9[%c2_122, %c1_123, %c0_124] : memref<10x10x128xbf16, #tpu.memory_space<vmem>>, vector<8x8x128xbf16>
    %119 = vector.shape_cast %118 : vector<8x8x128xbf16> to vector<64x128xbf16>
    %c7_125 = arith.constant 7 : index
    %c0_126 = arith.constant 0 : index
    %c0_127 = arith.constant 0 : index
    %120 = vector.load %arg4[%c7_125, %c0_126, %c0_127] : memref<9x128x128xbf16, #tpu.memory_space<vmem>>, vector<1x128x128xbf16>
    %121 = vector.shape_cast %120 : vector<1x128x128xbf16> to vector<128x128xbf16>
    %cst_128 = arith.constant dense<0.000000e+00> : vector<64x128xf32>
    %122 = tpu.matmul %119, %121, %cst_128 {dimension_numbers = #tpu.dot_dimension_numbers<[1], [0], [0], [1], [0, 0, 1, 1], [], []>} : vector<64x128xbf16>, vector<128x128xbf16>, vector<64x128xf32> -> vector<64x128xf32>
    %123 = arith.addf %117, %122 : vector<64x128xf32>
    %c2_129 = arith.constant 2 : index
    %c2_130 = arith.constant 2 : index
    %c0_131 = arith.constant 0 : index
    %124 = vector.load %arg9[%c2_129, %c2_130, %c0_131] : memref<10x10x128xbf16, #tpu.memory_space<vmem>>, vector<8x8x128xbf16>
    %125 = vector.shape_cast %124 : vector<8x8x128xbf16> to vector<64x128xbf16>
    %c8_132 = arith.constant 8 : index
    %c0_133 = arith.constant 0 : index
    %c0_134 = arith.constant 0 : index
    %126 = vector.load %arg4[%c8_132, %c0_133, %c0_134] : memref<9x128x128xbf16, #tpu.memory_space<vmem>>, vector<1x128x128xbf16>
    %127 = vector.shape_cast %126 : vector<1x128x128xbf16> to vector<128x128xbf16>
    %cst_135 = arith.constant dense<0.000000e+00> : vector<64x128xf32>
    %128 = tpu.matmul %125, %127, %cst_135 {dimension_numbers = #tpu.dot_dimension_numbers<[1], [0], [0], [1], [0, 0, 1, 1], [], []>} : vector<64x128xbf16>, vector<128x128xbf16>, vector<64x128xf32> -> vector<64x128xf32>
    %129 = arith.addf %123, %128 : vector<64x128xf32>
    %130 = vector.broadcast %74 : vector<1x128xf32> to vector<64x128xf32>
    %131 = arith.addf %129, %130 : vector<64x128xf32>
    %c0_136 = arith.constant 0 : index
    %c0_137 = arith.constant 0 : index
    %c0_138 = arith.constant 0 : index
    %c384_139 = arith.constant 384 : index
    %132 = vector.load %arg1[%c0_136, %c0_137, %c0_138, %c384_139] : memref<1x9x9x512xbf16, #tpu.memory_space<vmem>>, vector<1x8x8x128xbf16>
    %133 = vector.shape_cast %132 : vector<1x8x8x128xbf16> to vector<8x8x128xbf16>
    %134 = vector.shape_cast %133 : vector<8x8x128xbf16> to vector<64x128xbf16>
    %c0_140 = arith.constant 0 : index
    %c0_141 = arith.constant 0 : index
    %135 = vector.load %arg6[%c0_140, %c0_141] : memref<128x128xbf16, #tpu.memory_space<vmem>>, vector<128x128xbf16>
    %cst_142 = arith.constant dense<0.000000e+00> : vector<64x128xf32>
    %136 = tpu.matmul %134, %135, %cst_142 {dimension_numbers = #tpu.dot_dimension_numbers<[1], [0], [0], [1], [0, 0, 1, 1], [], []>} : vector<64x128xbf16>, vector<128x128xbf16>, vector<64x128xf32> -> vector<64x128xf32>
    %c0_143 = arith.constant 0 : index
    %c0_144 = arith.constant 0 : index
    %137 = vector.load %arg7[%c0_143, %c0_144] : memref<1x128xf32, #tpu.memory_space<vmem>>, vector<1x128xf32>
    %138 = vector.broadcast %137 : vector<1x128xf32> to vector<64x128xf32>
    %139 = arith.addf %136, %138 : vector<64x128xf32>
    %140 = arith.addf %131, %139 : vector<64x128xf32>
    %cst_145 = arith.constant 0.000000e+00 : f32
    %141 = vector.broadcast %cst_145 : f32 to vector<64x128xf32>
    %142 = arith.maximumf %140, %141 : vector<64x128xf32>
    %143 = vector.shape_cast %142 : vector<64x128xf32> to vector<1x8x8x128xf32>
    %c0_146 = arith.constant 0 : index
    %c0_147 = arith.constant 0 : index
    %c0_148 = arith.constant 0 : index
    %c0_149 = arith.constant 0 : index
    %144 = vector.load %arg8[%c0_146, %c0_147, %c0_148, %c0_149] : memref<1x8x8x128xf32, #tpu.memory_space<vmem>>, vector<1x8x8x128xf32>
    tpu.vector_store %arg8[%c0_146, %c0_147, %c0_148, %c0_149], %143 {strides = array<i32>} : memref<1x8x8x128xf32, #tpu.memory_space<vmem>>, vector<1x8x8x128xf32>,
    return
  }
  func.func @transform_0(%arg0: i32) -> (i32, i32, i32, i32) {
    %c0_i32 = arith.constant 0 : i32
    %c0_i32_0 = arith.constant 0 : i32
    %c0_i32_1 = arith.constant 0 : i32
    %c0_i32_2 = arith.constant 0 : i32
    return %arg0, %c0_i32, %c0_i32_0, %c0_i32_1 : i32, i32, i32, i32
  }
  func.func @transform_1(%arg0: i32) -> (i32, i32, i32) {
    %c0_i32 = arith.constant 0 : i32
    %c0_i32_0 = arith.constant 0 : i32
    %c0_i32_1 = arith.constant 0 : i32
    %c0_i32_2 = arith.constant 0 : i32
    return %c0_i32, %c0_i32_0, %c0_i32_1 : i32, i32, i32
  }
  func.func @transform_2(%arg0: i32) -> (i32, i32) {
    %c0_i32 = arith.constant 0 : i32
    %c0_i32_0 = arith.constant 0 : i32
    %c0_i32_1 = arith.constant 0 : i32
    return %c0_i32, %c0_i32_0 : i32, i32
  }
  func.func @transform_3(%arg0: i32) -> (i32, i32, i32) {
    %c0_i32 = arith.constant 0 : i32
    %c0_i32_0 = arith.constant 0 : i32
    %c0_i32_1 = arith.constant 0 : i32
    %c0_i32_2 = arith.constant 0 : i32
    return %c0_i32, %c0_i32_0, %c0_i32_1 : i32, i32, i32
  }
  func.func @transform_4(%arg0: i32) -> (i32, i32) {
    %c0_i32 = arith.constant 0 : i32
    %c0_i32_0 = arith.constant 0 : i32
    %c0_i32_1 = arith.constant 0 : i32
    return %c0_i32, %c0_i32_0 : i32, i32
  }
  func.func @transform_5(%arg0: i32) -> (i32, i32) {
    %c0_i32 = arith.constant 0 : i32
    %c0_i32_0 = arith.constant 0 : i32
    %c0_i32_1 = arith.constant 0 : i32
    return %c0_i32, %c0_i32_0 : i32, i32
  }
  func.func @transform_6(%arg0: i32) -> (i32, i32) {
    %c0_i32 = arith.constant 0 : i32
    %c0_i32_0 = arith.constant 0 : i32
    %c0_i32_1 = arith.constant 0 : i32
    return %c0_i32, %c0_i32_0 : i32, i32
  }
  func.func @transform_7(%arg0: i32) -> (i32, i32, i32, i32) {
    %c0_i32 = arith.constant 0 : i32
    %c0_i32_0 = arith.constant 0 : i32
    %c0_i32_1 = arith.constant 0 : i32
    %c0_i32_2 = arith.constant 0 : i32
    return %arg0, %c0_i32, %c0_i32_0, %c0_i32_1 : i32, i32, i32, i32
  }
}

</mosaic_0001>

<bundles_post_ra>
// kernel: tpu_custom_call.1
= control target key start
LH: loop header
LB: loop body
LE: loop exit
PB: predicated region body
PF: predicated region fallthrough
CT: control target
= control target key end

     0   :  { %12 = vsyncpa [#allocation4], 0  ;;  %s6266_s0 = inlined_call_operand.vmem [shape: bf16[2,9,9,512], index: 0, kind: input, shape index: {}]   ;;  %s6267_s1 = inlined_call_operand.vmem [shape: bf16[9,128,128], index: 1, kind: input, shape index: {}]   ;;  %s6268_s2 = inlined_call_operand.vmem [shape: f32[1,128], index: 2, kind: input, shape index: {}]   ;;  %s6269_s3 = inlined_call_operand.hbm [shape: bf16[9,128,128], index: 3, kind: input, shape index: {}]   ;;  %s6270_s4 = inlined_call_operand.vmem [shape: f32[1,128], index: 4, kind: input, shape index: {}]   ;;  %s6271_s5 = inlined_call_operand.vmem [shape: bf16[128,128], index: 5, kind: input, shape index: {}]   ;;  %s6272_s6 = inlined_call_operand.vmem [shape: f32[1,128], index: 6, kind: input, shape index: {}]   ;;  %s6273_s7 = inlined_call_operand.hbm [shape: f32[2,8,8,128], index: 7, kind: output, shape index: {}]  }
   0x1   :  { %13 = vsyncpa [#allocation5], 0 }
   0x2   :  { %15 = vsyncpa [#allocation5 + $0x1], 0  ;;  %s5288_s24 = smov 0   ;;  %s5290_s25 = smov 0  }
   0x3   :  { %s5292_s26 = smov 0   ;;  %s5294_s27 = smov 0  }
   0x4 LB: > { %s5309_s28 = sadd.s32 4294967295, %s5240_s27   ;;  %s3903_s29 = sadd.s32 4294967294, %s5240_s27   ;;  %s5240_s27 = sphi %s5294_s27, %s6287_s27   ;;  %s5236_s26 = sphi %s5292_s26, %s6286_s26   ;;  %s5232_s25 = sphi %s5290_s25, %s6285_s25   ;;  %s5228_s24 = sphi %s5288_s24, %s6284_s24  }
   0x5   : > { %s5313_s30 = sadd.s32 1, %s5240_s27   ;;  %s180_s8 = sadd.s32 1, %s5236_s26 }
   0x6   : > { %s177_s9 = ssub.s32 %s5240_s27, %s5313_s30  ;;  %p190_p0 = scmp.ne.s32.totalorder %s5236_s26, %s5232_s25 }
   0x7   : > { %p178_p1 = scmp.eq.s32.totalorder %s177_s9, 0  ;;  %p191_p2 = scmp.eq.s32.totalorder %s5309_s28, 1 }
   0x8   : > { %p196_p3 = scmp.ne.s32.totalorder %s5232_s25, %s5228_s24  ;;  %p197_p4 = scmp.eq.s32.totalorder %s3903_s29, 1 }
   0x9   : > { %s5324_s10 = scalar_select %p178_p1, %s5236_s26, %s180_s8  }
   0xa   : > { %p5326_p5 = por %p191_p2, %p190_p0  ;;  %p5330_p6 = por %p197_p4, %p196_p3 }
   0xb   : > { %p3904_p7 = scmp.ge.s32.totalorder %s5240_s27, 1  ;;  %p204_p8 = scmp.lt.s32.totalorder %s5240_s27, 3 }
   0xc   : > { %p5100_p9 = scmp.eq.s32.totalorder %s5309_s28, 0  ;;  %s221_s15 = sshll.u32 %s6269_s3, 4  ;;  %s222_s15 = int_to_ptr.hbm [resolvable:$true] %s221_s15 }
   0xd   : > { %p205_p10 = pnand %p3904_p7, %p204_p8  ;;  %s5242_s16 = smov [#allocation3]  }
   0xe   : > { %s223_s17 = sshll.u32 %s5242_s16, 4  ;;  %s5243_s18 = smov 64   ;;  %s224_s17 = int_to_ptr.vmem [resolvable:$true] %s223_s17 }
   0xf   : > { %p5092_p11 = pneg %p205_p10  ;;  %s5244_s19 = smov 4  }
  0x10   : > { %256 = sbr.rel (%p205_p10) target bundleno = 630 (0x276), region = 48 }
  0x11   : > { %p5093_p12 = pnand %p5100_p9, %p5092_p11 }
  0x13   : > { %5095 = dma.hbm_to_vmem [thread:$0]  (!%p5093_p12), %s222_s15, 9216, %s224_s17, [#allocation4], %s5243_s18, %s5243_s18, %s5244_s19  }
  0x15   : > { %5219 = dma.done.wait (%p5100_p9), [#allocation4], 9216  }
  0x16   : > { %5221 = vsyncadd (%p5100_p9), [#allocation4], 4294958080  ;;  %p289_p13 = scmp.lt.s32.totalorder %s5309_s28, 1  ;;  %v4891_v0 = vld [vmem:[%s6267_s1 + $0x78] sm:$0xff]  ;;  %v4890_v3 = vld [vmem:[%s6267_s1 + $0x70] sm:$0xff]  ;;  %vm1953_vm3 = vcmask 1043456  }
  0x17   : > { %v4879_v1 = vld [vmem:[%s6267_s1 + $0x38] sm:$0xff]  ;;  %417 = vmatpush.bf16.msra.mxu0 %v4891_v0  ;;  %5061 = vmatpush.bf16.msra.mxu3 %v4891_v0  ;;  %v4878_v4 = vld [vmem:[%s6267_s1 + $0x30] sm:$0xff]  ;;  %v4889_v6 = vld [vmem:[%s6267_s1 + $0x68] sm:$0xff]  ;;  %vm563_vm0 = vsmask.f32 3328  ;;  %vm1959_vm5 = vcmask 1040384  }
  0x18   : > { %s290_s20 = scalar_select %p289_p13, %s5309_s28, 1  ;;  %v4899_v2 = vld [vmem:[%s6267_s1 + $0xb8] sm:$0xff]  ;;  %518 = vmatpush.bf16.msra.mxu1 %v4879_v1  ;;  %v4898_v5 = vld [vmem:[%s6267_s1 + $0xb0] sm:$0xff]  ;;  %v4877_v7 = vld [vmem:[%s6267_s1 + $0x28] sm:$0xff]  ;;  %vm564_vm1 = vsmask.f32 7440 }
  0x19   : > { %759 = vmatpush.bf16.msra.mxu2 %v4899_v2  ;;  %v4897_v8 = vld [vmem:[%s6267_s1 + $0xa8] sm:$0xff]  ;;  %v4888_v9 = vld [vmem:[%s6267_s1 + $0x60] sm:$0xff]  ;;  %v4887_v23 = vld [vmem:[%s6267_s1 + $0x58] sm:$0xff]  ;;  %vm1954_vm4 = vsmask.f32 7938  ;;  %vm2387_vm9 = vcmask 1042432  }
  0x1a   : > { %s5085_s19 = smul.u32 288, %s290_s20  ;;  %v4876_v12 = vld [vmem:[%s6267_s1 + $0x20] sm:$0xff]  ;;  %v4875_v25 = vld [vmem:[%s6267_s1 + $0x18] sm:$0xff]  ;;  %v4886_v31 = vld [vmem:[%s6267_s1 + $0x50] sm:$0xff]  ;;  %vm1960_vm6 = vsmask.f32 256 }
  0x1b   : > { %418 = vmatpush.bf16.msra.mxu0 %v4890_v3  ;;  %5062 = vmatpush.bf16.msra.mxu3 %v4890_v3  ;;  %v4896_v13 = vld [vmem:[%s6267_s1 + $0xa0] sm:$0xff]  ;;  %v4895_v26 = vld [vmem:[%s6267_s1 + $0x98] sm:$0xff]  ;;  %v4874_v32 = vld [vmem:[%s6267_s1 + $0x10] sm:$0xff]  ;;  %vm2388_vm10 = vcmask 1046532   ;;  %s5060_s23 = sshll.u32 %s5309_s28, 6  ;;  %s5194_s18 = scalar_lea.hbm %s6273_s7, 128 }
  0x1c   : > { %519 = vmatpush.bf16.msra.mxu1 %v4878_v4  ;;  %s5378_s20 = scalar_lea.vmem %s6266_s0, %s5085_s19  ;;  %v4894_v33 = vld [vmem:[%s6267_s1 + $0x90] sm:$0xff]  ;;  %vm5412_vm2 = vmor %vm563_vm0, %vm564_vm1  ;;  %v4885_v41 = vld [vmem:[%s6267_s1 + $0x48] sm:$0xff]  ;;  %s286_s19 = sand.u32 1, %s5232_s25  }
  0x1d   : > { %760 = vmatpush.bf16.msra.mxu2 %v4898_v5  ;;  %v547_v10 = vld [vmem:[%s5378_s20] sm:$0xf]  ;;  %v548_v17 = vld [vmem:[%s5378_s20 + $0x10] sm:$0x1]  ;;  %v4873_v42 = vld [vmem:[%s6267_s1 + $0x8] sm:$0xff]  ;;  %s3909_s21 = sshll.u32 %s286_s19, 6  ;;  %s3825_s9 = scalar_lea.hbm %s6273_s7, %s5060_s23 }
  0x1e   : > { %v549_v11 = vld [vmem:[%s5378_s20 + $0x20] sm:$0xf]  ;;  %v567_v14 = vshrl.u32 %v547_v10, 16  ;;  %v570_v15 = vshll.u32 %v547_v10, 16  ;;  %v550_v18 = vld [vmem:[%s5378_s20 + $0x30] sm:$0x1]  ;;  %vm5846_vm7 = vmand %vm1953_vm3, %vm1954_vm4 }
  0x1f   : > { %419 = vmatpush.bf16.msra.mxu0 %v4889_v6  ;;  %5063 = vmatpush.bf16.msra.mxu3 %v4889_v6  ;;  %v581_v16 = vshrl.u32 %v549_v11, 16  ;;  %v584_v19 = vshll.u32 %v549_v11, 16  ;;  %v576_v28 = vshll.u32 %v548_v17, 16  ;;  %v590_v29 = vshll.u32 %v550_v18, 16  ;;  %v551_v38 = vld [vmem:[%s5378_s20 + $0x40] sm:$0xf]  ;;  %vm5854_vm8 = vmand %vm1959_vm5, %vm1960_vm6 }
  0x20   : > { %520 = vmatpush.bf16.msra.mxu1 %v4877_v7  ;;  %v569_v20 = vrot.slane %v567_v14, 4  ;;  %v572_v21 = vrot.slane %v570_v15, 5  ;;  %v553_v40 = vld [vmem:[%s5378_s20 + $0x60] sm:$0xf]  ;;  %v4893_v43 = vld [vmem:[%s6267_s1 + $0x88] sm:$0xff]  ;;  %v595_v44 = vshrl.u32 %v551_v38, 16  ;;  %vm5876_vm11 = vmor %vm2387_vm9, %vm2388_vm10 }
  0x21   : > { %761 = vmatpush.bf16.msra.mxu2 %v4897_v8  ;;  %v583_v22 = vrot.slane %v581_v16, 4  ;;  %v586_v24 = vrot.slane %v584_v19, 5  ;;  %v578_v35 = vrot.slane %v576_v28, 5  ;;  %v592_v37 = vrot.slane %v590_v29, 5  ;;  %v4884_v50 = vld [vmem:[%s6267_s1 + $0x40] sm:$0xff]  ;;  %v4911_v61 = vld [vmem:[%s6267_s1 + $0xf8] sm:$0xff] }
  0x22   : > { %v573_v27 = vor.u32 %v572_v21, %v569_v20  ;;  %v598_v45 = vshll.u32 %v551_v38, 16  ;;  %v609_v48 = vshrl.u32 %v553_v40, 16  ;;  %v612_v49 = vshll.u32 %v553_v40, 16  ;;  %v4872_v51 = vld [vmem:[%s6267_s1] sm:$0xff]  ;;  %v4923_v2 = vld [vmem:[%s6267_s1 + $0x138] sm:$0xff]  ;;  %v4910_v14 = vld [vmem:[%s6267_s1 + $0xf0] sm:$0xff] }
  0x23   : > { %420 = vmatpush.bf16.msra.mxu0 %v4888_v9  ;;  %5064 = vmatpush.bf16.msra.mxu3 %v4888_v9  ;;  %v587_v30 = vor.u32 %v586_v24, %v583_v22  ;;  %v3929_v52 = vld [vmem:[%s5378_s20 + $0x4] sm:$0xf]  ;;  %v3977_v56 = vld [vmem:[%s5378_s20] sm:$0xf]  ;;  %v597_v62 = vrot.slane %v595_v44, 4  ;;  %v4922_v15 = vld [vmem:[%s6267_s1 + $0x130] sm:$0xff] }
  0x24   : > { %521 = vmatpush.bf16.msra.mxu1 %v4876_v12  ;;  %v574_v34 = vrot.slane %v573_v27, 4  ;;  %v4880_v53 = vld [vmem:[%s5378_s20 + $0x20] sm:$0xf0]  ;;  %v4868_v57 = vld [vmem:[%s5378_s20 + $0x1c] sm:$0xf0]  ;;  %v600_v63 = vrot.slane %v598_v45, 5 }
  0x25   : > { %762 = vmatpush.bf16.msra.mxu2 %v4896_v13  ;;  %v588_v36 = vrot.slane %v587_v30, 4  ;;  %v3937_v54 = vld [vmem:[%s5378_s20 + $0x84] sm:$0xf]  ;;  %v611_v0 = vrot.slane %v609_v48, 4  ;;  %v614_v1 = vrot.slane %v612_v49, 5  ;;  %v3930_v5 = vor.u32 %v4880_v53, %v3929_v52  ;;  %v4943_v13 = vld [vmem:[%s6267_s1 + $0x1b8] sm:$0xff] }
  0x26   : > { %v579_v46 = vsel %vm5412_vm2, %v574_v34, %v578_v35  ;;  %v4882_v55 = vld [vmem:[%s5378_s20 + $0xa0] sm:$0xf0]  ;;  %v552_v3 = vld [vmem:[%s5378_s20 + $0x50] sm:$0x1]  ;;  %v3978_v7 = vor.u32 %v4868_v57, %v3977_v56  ;;  %v601_v9 = vor.u32 %v600_v63, %v597_v62  ;;  %v4931_v16 = vld [vmem:[%s6267_s1 + $0x178] sm:$0xff]  ;;  %s6194_s22 = scalar_lea.vmem [#allocation6], %s3909_s21 }
  0x27   : > { %421 = vmatpush.bf16.msra.mxu0 %v4887_v23  ;;  %5065 = vmatpush.bf16.msra.mxu3 %v4887_v23  ;;  %v593_v47 = vsel %vm5412_vm2, %v588_v36, %v592_v37  ;;  %v695_v58 = vunpack.c.l.b16 %v579_v46  ;;  %v4892_v60 = vld [vmem:[%s6267_s1 + $0x80] sm:$0xff]  ;;  %v554_v4 = vld [vmem:[%s5378_s20 + $0x70] sm:$0x1]  ;;  %v3938_v6 = vor.u32 %v4882_v55, %v3937_v54  ;;  %v604_v10 = vshll.u32 %v552_v3, 16  ;;  %v4929_v35 = vld [vmem:[%s6267_s1 + $0x168] sm:$0xff]  ;;  %s3826_s13 = sshll.u32 %s6194_s22, 4  ;;  %s3827_s13 = int_to_ptr.vmem [resolvable:$true] %s3826_s13 }
  0x28   : > { %522 = vmatpush.bf16.msra.mxu1 %v4875_v25  ;;  %v696_v59 = vunpack.c.l.b16 %v593_v47  ;;  %v615_v11 = vor.u32 %v614_v1, %v611_v0  ;;  %v618_v12 = vshll.u32 %v554_v4, 16  ;;  %v555_v17 = vld [vmem:[%s5378_s20 + $0x80] sm:$0xf]  ;;  %v602_v19 = vrot.slane %v601_v9, 4  ;;  %v4930_v23 = vld [vmem:[%s6267_s1 + $0x170] sm:$0xff]  ;;  %v4909_v25 = vld [vmem:[%s6267_s1 + $0xe8] sm:$0xff] }
  0x29   : > { %763 = vmatpush.bf16.msra.mxu2 %v4895_v26  ;;  %v557_v18 = vld [vmem:[%s5378_s20 + $0xa0] sm:$0xf]  ;;  %v606_v20 = vrot.slane %v604_v10, 5  ;;  %v4942_v24 = vld [vmem:[%s6267_s1 + $0x1b0] sm:$0xff]  ;;  %v4921_v26 = vld [vmem:[%s6267_s1 + $0x128] sm:$0xff]  ;;  %v623_v27 = vshrl.u32 %v555_v17, 16 }
  0x2a   : > { %v703_v8 = vpack.c.b16 %v696_v59, %v695_v58  ;;  %v616_v21 = vrot.slane %v615_v11, 4  ;;  %v620_v22 = vrot.slane %v618_v12, 5  ;;  %v626_v28 = vshll.u32 %v555_v17, 16  ;;  %v4941_v36 = vld [vmem:[%s6267_s1 + $0x1a8] sm:$0xff]  ;;  %v3933_v37 = vld [vmem:[%s5378_s20 + $0x44] sm:$0xf] }
  0x2b   : > { %422 = vmatpush.bf16.msra.mxu0 %v4886_v31  ;;  %5066 = vmatpush.bf16.msra.mxu3 %v4886_v31  ;;  %v637_v29 = vshrl.u32 %v557_v18, 16  ;;  %v640_v30 = vshll.u32 %v557_v18, 16  ;;  %v4908_v31 = vld [vmem:[%s6267_s1 + $0xe0] sm:$0xff]  ;;  %v556_v49 = vld [vmem:[%s5378_s20 + $0x90] sm:$0x1]  ;;  %v4907_v56 = vld [vmem:[%s6267_s1 + $0xd8] sm:$0xff] }
  0x2c   : > { %523 = vmatpush.bf16.msra.mxu1 %v4874_v32  ;;  %v4920_v32 = vld [vmem:[%s6267_s1 + $0x120] sm:$0xff]  ;;  %v621_v34 = vsel %vm5412_vm2, %v616_v21, %v620_v22  ;;  %v4919_v57 = vld [vmem:[%s6267_s1 + $0x118] sm:$0xff]  ;;  %v632_v59 = vshll.u32 %v556_v49, 16  ;;  %v4906_v0 = vld [vmem:[%s6267_s1 + $0xd0] sm:$0xff]  ;;  %s3828_s28 = sshll.u32 %s3825_s9, 4  ;;  %s3814_s14 = scalar_lea.sflag [#allocation5], %s286_s19  ;;  %s3829_s28 = int_to_ptr.hbm [resolvable:$true] %s3828_s28 }
  0x2d   : > { %764 = vmatpush.bf16.msra.mxu2 %v4894_v33  ;;  %v607_v33 = vsel %vm5412_vm2, %v602_v19, %v606_v20  ;;  %v4881_v38 = vld [vmem:[%s5378_s20 + $0x60] sm:$0xf0]  ;;  %v639_v44 = vrot.slane %v637_v29, 4  ;;  %v642_v45 = vrot.slane %v640_v30, 5  ;;  %v3981_v46 = vld [vmem:[%s5378_s20 + $0x40] sm:$0xf]  ;;  %v698_v48 = vunpack.c.l.b16 %v621_v34 }
  0x2e   : > { %v3941_v40 = vld [vmem:[%s5378_s20 + $0xc4] sm:$0xf]  ;;  %v697_v47 = vunpack.c.l.b16 %v607_v33  ;;  %v3934_v54 = vor.u32 %v4881_v38, %v3933_v37  ;;  %v4918_v1 = vld [vmem:[%s6267_s1 + $0x110] sm:$0xff]  ;;  %v634_v3 = vrot.slane %v632_v59, 5  ;;  %v561_v9 = vld [vmem:[%s5378_s20 + $0xe0] sm:$0xf] }
  0x2f   : > { %423 = vmatpush.bf16.msra.mxu0 %v4885_v41  ;;  %5067 = vmatpush.bf16.msra.mxu3 %v4885_v41  ;;  %v4883_v41 = vld [vmem:[%s5378_s20 + $0xe0] sm:$0xf0]  ;;  %v4926_v10 = vld [vmem:[%s6267_s1 + $0x150] sm:$0xff]  ;;  %v4905_v12 = vld [vmem:[%s6267_s1 + $0xc8] sm:$0xff]  ;;  %v665_v20 = vshrl.u32 %v561_v9, 16  ;;  %v668_v21 = vshll.u32 %v561_v9, 16 }
  0x30   : > { %524 = vmatpush.bf16.msra.mxu1 %v4873_v42  ;;  %v625_v42 = vrot.slane %v623_v27, 4  ;;  %v4928_v52 = vld [vmem:[%s6267_s1 + $0x160] sm:$0xff]  ;;  %v3942_v55 = vor.u32 %v4883_v41, %v3941_v40  ;;  %v704_v63 = vpack.c.b16 %v698_v48, %v697_v47  ;;  %v4938_v11 = vld [vmem:[%s6267_s1 + $0x190] sm:$0xff]  ;;  %v4900_v27 = vld [vmem:[%s5378_s20 + $0x24] sm:$0xf0]  ;;  %s5188_s15 = sshra.s32 %s3829_s28, 4  ;;  %s5189_s15 = int_to_ptr.hbm [resolvable:$true] %s5188_s15 }
  0x31   : > { %765 = vmatpush.bf16.msra.mxu2 %v4893_v43  ;;  %v628_v43 = vrot.slane %v626_v28, 5  ;;  %v4940_v53 = vld [vmem:[%s6267_s1 + $0x1a0] sm:$0xff]  ;;  %v4153_v28 = vld [vmem:[%s5378_s20 + $0xc] sm:$0xf]  ;;  %v4963_v33 = vld [vmem:[%s6267_s1 + $0x238] sm:$0xff]  ;;  %v667_v37 = vrot.slane %v665_v20, 4  ;;  %p5195_p3 = scmp.lt.s32.totalorder %s5189_s15, %s6273_s7 }
  0x32   : > { %v4916_v17 = vld [vmem:[%s6267_s1 + $0x100] sm:$0xff]  ;;  %v560_v34 = vld [vmem:[%s5378_s20 + $0xd0] sm:$0x1]  ;;  %v670_v38 = vrot.slane %v668_v21, 5  ;;  %v1064_v59 = vld [vmem:[%s5378_s20 + $0x8] sm:$0xf] }
  0x33   : > { %424 = vmatpush.bf16.msra.mxu0 %v4884_v50  ;;  %5068 = vmatpush.bf16.msra.mxu3 %v4884_v50  ;;  %v558_v50 = vld [vmem:[%s5378_s20 + $0xb0] sm:$0x1]  ;;  %v629_v58 = vor.u32 %v628_v43, %v625_v42  ;;  %v3985_v22 = vld [vmem:[%s5378_s20 + $0x80] sm:$0xf]  ;;  %v660_v48 = vshll.u32 %v560_v34, 16 }
  0x34   : > { %525 = vmatpush.bf16.msra.mxu1 %v4872_v51  ;;  %v4869_v51 = vld [vmem:[%s5378_s20 + $0x5c] sm:$0xf0]  ;;  %v562_v40 = vld [vmem:[%s5378_s20 + $0xf0] sm:$0x1]  ;;  %v671_v49 = vor.u32 %v670_v38, %v667_v37  ;;  %v1067_v20 = vld [vmem:[%s5378_s20 + $0x38] sm:$0x1] }
  0x35   : > { %766 = vmatpush.bf16.msra.mxu2 %v4892_v60  ;;  %v643_v60 = vor.u32 %v642_v45, %v639_v44  ;;  %v3982_v62 = vor.u32 %v4869_v51, %v3981_v46  ;;  %v4924_v41 = vld [vmem:[%s6267_s1 + $0x140] sm:$0xff]  ;;  %v4954_v51 = vld [vmem:[%s6267_s1 + $0x1f0] sm:$0xff]  ;;  %v4949_v37 = vld [vmem:[%s6267_s1 + $0x1c8] sm:$0xff] }
  0x36   : > { %425 = vmatmul.bf16.vlgmr.msra.gmra.mxu0 %v3930_v5  ;;  %435 = vmatmul.bf16.vlgmr.msra.gmra.mxu3 %v3938_v6  ;;  %v4927_v6 = vld [vmem:[%s6267_s1 + $0x158] sm:$0xff]  ;;  %v4936_v42 = vld [vmem:[%s6267_s1 + $0x180] sm:$0xff] }
  0x37   : > { %893 = vmatpush.bf16.msrb.mxu3 %v4911_v61  ;;  %1027 = vmatpush.bf16.msrb.mxu0 %v4923_v2  ;;  %v646_v61 = vshll.u32 %v558_v50, 16  ;;  %v630_v2 = vrot.slane %v629_v58, 4  ;;  %v644_v4 = vrot.slane %v643_v60, 4  ;;  %v674_v50 = vshll.u32 %v562_v40, 16  ;;  %v4961_v58 = vld [vmem:[%s6267_s1 + $0x228] sm:$0xff] }
  0x38   : > { %526 = vmatmul.bf16.vlgmr.msra.gmra.mxu1 %v3978_v7  ;;  %767 = vmatmul.bf16.vlgmr.msra.gmra.mxu2 %v703_v8  ;;  %v4939_v7 = vld [vmem:[%s6267_s1 + $0x198] sm:$0xff]  ;;  %v559_v8 = vld [vmem:[%s5378_s20 + $0xc0] sm:$0xf]  ;;  %v1066_v60 = vld [vmem:[%s5378_s20 + $0x28] sm:$0xf] }
  0x39   : > { %1408 = vmatpush.bf16.msrb.mxu2 %v4943_v13  ;;  %1273 = vmatpush.bf16.msrb.mxu1 %v4931_v16  ;;  %v648_v5 = vrot.slane %v646_v61, 5  ;;  %v4917_v13 = vld [vmem:[%s6267_s1 + $0x108] sm:$0xff]  ;;  %v4904_v16 = vld [vmem:[%s6267_s1 + $0xc0] sm:$0xff]  ;;  %v651_v18 = vshrl.u32 %v559_v8, 16  ;;  %v654_v19 = vshll.u32 %v559_v8, 16 }
  0x3b   : > { %894 = vmatpush.bf16.msrb.mxu3 %v4910_v14  ;;  %1028 = vmatpush.bf16.msrb.mxu0 %v4922_v15  ;;  %v635_v14 = vsel %vm5412_vm2, %v630_v2, %v634_v3  ;;  %v649_v15 = vsel %vm5412_vm2, %v644_v4, %v648_v5  ;;  %v1095_v2 = vshrl.u32 %v1066_v60, 16  ;;  %v1098_v3 = vshll.u32 %v1066_v60, 16  ;;  %v4960_v4 = vld [vmem:[%s6267_s1 + $0x220] sm:$0xff] }
  0x3c   : > { %v699_v29 = vunpack.c.l.b16 %v635_v14  ;;  %v700_v30 = vunpack.c.l.b16 %v649_v15  ;;  %v3989_v5 = vld [vmem:[%s5378_s20 + $0xc0] sm:$0xf] }
  0x3d   : > { %1274 = vmatpush.bf16.msrb.mxu1 %v4930_v23  ;;  %1409 = vmatpush.bf16.msrb.mxu2 %v4942_v24  ;;  %v4870_v23 = vld [vmem:[%s5378_s20 + $0x9c] sm:$0xf0]  ;;  %v4925_v24 = vld [vmem:[%s6267_s1 + $0x148] sm:$0xff]  ;;  %v1097_v15 = vrot.slane %v1095_v2, 4 }
  0x3e   : > { %v3986_v43 = vor.u32 %v4870_v23, %v3985_v22  ;;  %v705_v44 = vpack.c.b16 %v700_v30, %v699_v29  ;;  %v4950_v29 = vld [vmem:[%s6267_s1 + $0x1d0] sm:$0xff]  ;;  %v1068_v30 = vld [vmem:[%s5378_s20 + $0x48] sm:$0xf]  ;;  %v4273_v60 = vld [vmem:[%s5378_s20 + $0x20] sm:$0xf] }
  0x3f   : > { %895 = vmatpush.bf16.msrb.mxu3 %v4909_v25  ;;  %1029 = vmatpush.bf16.msrb.mxu0 %v4921_v26  ;;  %v4937_v25 = vld [vmem:[%s6267_s1 + $0x188] sm:$0xff]  ;;  %v1109_v38 = vshrl.u32 %v1068_v30, 16  ;;  %v1112_v40 = vshll.u32 %v1068_v30, 16  ;;  %v4277_v30 = vld [vmem:[%s5378_s20 + $0x60] sm:$0xf] }
  0x40   : > { %v4089_v26 = vld [vmem:[%s5378_s20 + $0x8] sm:$0xf] }
  0x41   : > { %1275 = vmatpush.bf16.msrb.mxu1 %v4929_v35  ;;  %1410 = vmatpush.bf16.msrb.mxu2 %v4941_v36  ;;  %v653_v35 = vrot.slane %v651_v18, 4  ;;  %v656_v36 = vrot.slane %v654_v19, 5  ;;  %v4090_v45 = vor.u32 %v4900_v27, %v4089_v26  ;;  %v4959_v18 = vld [vmem:[%s6267_s1 + $0x218] sm:$0xff] }
  0x42   : > { %v1065_v19 = vld [vmem:[%s5378_s20 + $0x18] sm:$0x1] }
  0x43   : > { %896 = vmatpush.bf16.msrb.mxu3 %v4908_v31  ;;  %1030 = vmatpush.bf16.msrb.mxu0 %v4920_v32  ;;  %v4912_v31 = vld [vmem:[%s5378_s20 + $0x28] sm:$0xf0]  ;;  %v4955_v32 = vld [vmem:[%s6267_s1 + $0x1f8] sm:$0xff]  ;;  %v657_v47 = vor.u32 %v656_v36, %v653_v35  ;;  %v1090_v26 = vshll.u32 %v1065_v19, 16 }
  0x44   : > { %v4154_v46 = vor.u32 %v4912_v31, %v4153_v28  ;;  %v1104_v28 = vshll.u32 %v1067_v20, 16  ;;  %v1070_v31 = vld [vmem:[%s5378_s20 + $0x68] sm:$0xf] }
  0x45   : > { %1276 = vmatpush.bf16.msrb.mxu1 %v4928_v52  ;;  %1411 = vmatpush.bf16.msrb.mxu2 %v4940_v53  ;;  %v4962_v52 = vld [vmem:[%s6267_s1 + $0x230] sm:$0xff]  ;;  %v658_v53 = vrot.slane %v657_v47, 4  ;;  %v1092_v34 = vrot.slane %v1090_v26, 5  ;;  %v1111_v47 = vrot.slane %v1109_v38, 4  ;;  %v4165_v26 = vld [vmem:[%s5378_s20 + $0xcc] sm:$0xf] }
  0x46   : > { %430 = vmatmul.bf16.gmra.mxu0 %v3934_v54  ;;  %440 = vmatmul.bf16.gmra.mxu3 %v3942_v55  ;;  %v662_v54 = vrot.slane %v660_v48, 5  ;;  %v672_v55 = vrot.slane %v671_v49, 4  ;;  %v1106_v36 = vrot.slane %v1104_v28, 5  ;;  %v1114_v48 = vrot.slane %v1112_v40, 5  ;;  %v4392_v38 = vld [vmem:[%s5378_s20 + $0x30] sm:$0x1] }
  0x47   : > { %897 = vmatpush.bf16.msrb.mxu3 %v4907_v56  ;;  %1031 = vmatpush.bf16.msrb.mxu0 %v4919_v57  ;;  %v676_v56 = vrot.slane %v674_v50, 5  ;;  %v4953_v57 = vld [vmem:[%s6267_s1 + $0x1e8] sm:$0xff] }
  0x48   : > { %531 = vmatmul.bf16.gmra.mxu1 %v3982_v62  ;;  %772 = vmatmul.bf16.gmra.mxu2 %v704_v63  ;;  %v663_v61 = vsel %vm5412_vm2, %v658_v53, %v662_v54  ;;  %v4952_v63 = vld [vmem:[%s6267_s1 + $0x1e0] sm:$0xff]  ;;  %v1069_v53 = vld [vmem:[%s5378_s20 + $0x58] sm:$0x1] }
  0x49   : > { %1277 = vmatpush.bf16.msrb.mxu1 %v4927_v6  ;;  %1412 = vmatpush.bf16.msrb.mxu2 %v4939_v7  ;;  %v677_v62 = vsel %vm5412_vm2, %v672_v55, %v676_v56  ;;  %v4871_v6 = vld [vmem:[%s5378_s20 + $0xdc] sm:$0xf0]  ;;  %v4093_v7 = vld [vmem:[%s5378_s20 + $0x48] sm:$0xf]  ;;  %v701_v8 = vunpack.c.l.b16 %v663_v61  ;;  %v1071_v54 = vld [vmem:[%s5378_s20 + $0x78] sm:$0x1] }
  0x4a   : > { %v702_v9 = vunpack.c.l.b16 %v677_v62  ;;  %v3990_v23 = vor.u32 %v4871_v6, %v3989_v5  ;;  %v4902_v55 = vld [vmem:[%s5378_s20 + $0xa4] sm:$0xf0]  ;;  %v4161_v56 = vld [vmem:[%s5378_s20 + $0x8c] sm:$0xf]  ;;  %v4932_v61 = vld [vmem:[%s5378_s20 + $0x3c] sm:$0xf0]  ;;  %v1115_v62 = vor.u32 %v1114_v48, %v1111_v47 }
  0x4b   : > { %898 = vmatpush.bf16.msrb.mxu3 %v4906_v0  ;;  %1032 = vmatpush.bf16.msrb.mxu0 %v4918_v1  ;;  %v1081_v0 = vshrl.u32 %v1064_v59, 16  ;;  %v1084_v1 = vshll.u32 %v1064_v59, 16  ;;  %v4274_v5 = vor.u32 %v4932_v61, %v4273_v60  ;;  %v4395_v61 = vld [vmem:[%s5378_s20 + $0x60] sm:$0xf] }
  0x4c   : > { %v1116_v6 = vrot.slane %v1115_v62, 4  ;;  %v4397_v62 = vld [vmem:[%s5378_s20 + $0x80] sm:$0xf] }
  0x4d   : > { %1278 = vmatpush.bf16.msrb.mxu1 %v4926_v10  ;;  %1413 = vmatpush.bf16.msrb.mxu2 %v4938_v11  ;;  %v4901_v10 = vld [vmem:[%s5378_s20 + $0x64] sm:$0xf0]  ;;  %v4157_v11 = vld [vmem:[%s5378_s20 + $0x4c] sm:$0xf]  ;;  %v1086_v14 = vrot.slane %v1084_v1, 5  ;;  %v1132_v1 = vshll.u32 %v1071_v54, 16 }
  0x4e   : > { %v4094_v21 = vor.u32 %v4901_v10, %v4093_v7  ;;  %v1072_v10 = vld [vmem:[%s5378_s20 + $0x88] sm:$0xf] }
  0x4f   : > { %899 = vmatpush.bf16.msrb.mxu3 %v4905_v12  ;;  %1033 = vmatpush.bf16.msrb.mxu0 %v4917_v13  ;;  %v4913_v12 = vld [vmem:[%s5378_s20 + $0x68] sm:$0xf0]  ;;  %v1083_v13 = vrot.slane %v1081_v0, 4 }
  0x50   : > { %v4158_v22 = vor.u32 %v4913_v12, %v4157_v11  ;;  %v1074_v11 = vld [vmem:[%s5378_s20 + $0xa8] sm:$0xf]  ;;  %v4391_v12 = vld [vmem:[%s5378_s20 + $0x20] sm:$0xf] }
  0x51   : > { %1279 = vmatpush.bf16.msrb.mxu1 %v4925_v24  ;;  %1414 = vmatpush.bf16.msrb.mxu2 %v4937_v25  ;;  %v706_v24 = vpack.c.b16 %v702_v9, %v701_v8  ;;  %v1087_v25 = vor.u32 %v1086_v14, %v1083_v13  ;;  %v1134_v9 = vrot.slane %v1132_v1, 5  ;;  %v4393_v13 = vld [vmem:[%s5378_s20 + $0x40] sm:$0xf]  ;;  %v1154_v19 = vshll.u32 %v1074_v11, 16 }
  0x52   : > { %v1596_v20 = vshrl.u32 %v4391_v12, 16 }
  0x53   : > { %900 = vmatpush.bf16.msrb.mxu3 %v4904_v16  ;;  %1034 = vmatpush.bf16.msrb.mxu0 %v4916_v17  ;;  %v1100_v16 = vrot.slane %v1098_v3, 5  ;;  %v4951_v17 = vld [vmem:[%s6267_s1 + $0x1d8] sm:$0xff] }
  0x54   : > { %v1598_v40 = vrot.slane %v1596_v20, 4 }
  0x55   : > { %1280 = vmatpush.bf16.msrb.mxu1 %v4924_v41  ;;  %1415 = vmatpush.bf16.msrb.mxu2 %v4936_v42  ;;  %v1101_v27 = vor.u32 %v1100_v16, %v1097_v15  ;;  %v1123_v41 = vshrl.u32 %v1070_v31, 16  ;;  %v1126_v42 = vshll.u32 %v1070_v31, 16  ;;  %v1137_v16 = vshrl.u32 %v1072_v10, 16  ;;  %v4933_v31 = vld [vmem:[%s5378_s20 + $0x7c] sm:$0xf0] }
  0x56   : > { %901 = vmatmul.bf16.vlgmr.msrb.gmra.mxu3 %v4090_v45  ;;  %1035 = vmatmul.bf16.vlgmr.msrb.gmra.mxu0 %v4154_v46  ;;  %v4948_v46 = vld [vmem:[%s6267_s1 + $0x1c0] sm:$0xff] }
  0x57   : > { %1542 = vmatpush.bf16.msra.mxu3 %v4955_v32  ;;  %1788 = vmatpush.bf16.msra.mxu0 %v4963_v33  ;;  %v4958_v32 = vld [vmem:[%s6267_s1 + $0x210] sm:$0xff]  ;;  %v1088_v33 = vrot.slane %v1087_v25, 4  ;;  %v1102_v35 = vrot.slane %v1101_v27, 4  ;;  %v1125_v49 = vrot.slane %v1123_v41, 4  ;;  %v1128_v50 = vrot.slane %v1126_v42, 5 }
  0x58   : > { %536 = vmatmul.bf16.gmra.mxu1 %v3986_v43  ;;  %777 = vmatmul.bf16.gmra.mxu2 %v705_v44  ;;  %v4957_v43 = vld [vmem:[%s6267_s1 + $0x208] sm:$0xff] }
  0x59   : > { %v1093_v44 = vsel %vm5412_vm2, %v1088_v33, %v1092_v34  ;;  %v1107_v45 = vsel %vm5412_vm2, %v1102_v35, %v1106_v36  ;;  %v1129_v0 = vor.u32 %v1128_v50, %v1125_v49  ;;  %v4903_v25 = vld [vmem:[%s5378_s20 + $0xe4] sm:$0xf0]  ;;  %v4915_v27 = vld [vmem:[%s5378_s20 + $0xe8] sm:$0xf0]  ;;  %v1075_v33 = vld [vmem:[%s5378_s20 + $0xb8] sm:$0x1]  ;;  %v4278_v50 = vor.u32 %v4933_v31, %v4277_v30 }
  0x5a   : > { %v1210_v59 = vunpack.c.l.b16 %v1107_v45  ;;  %v1139_v34 = vrot.slane %v1137_v16, 4  ;;  %v1160_v48 = vshll.u32 %v1075_v33, 16  ;;  %v4934_v30 = vld [vmem:[%s5378_s20 + $0xbc] sm:$0xf0] }
  0x5b   : > { %1543 = vmatpush.bf16.msra.mxu3 %v4954_v51  ;;  %1789 = vmatpush.bf16.msra.mxu0 %v4962_v52  ;;  %v4956_v51 = vld [vmem:[%s6267_s1 + $0x200] sm:$0xff]  ;;  %v4097_v52 = vld [vmem:[%s5378_s20 + $0x88] sm:$0xf]  ;;  %v1130_v8 = vrot.slane %v1129_v0, 4 }
  0x5c   : > { %v4098_v2 = vor.u32 %v4902_v55, %v4097_v52  ;;  %v1605_v52 = vshll.u32 %v4392_v38, 16 }
  0x5d   : > { %v1135_v15 = vsel %vm5412_vm2, %v1130_v8, %v1134_v9  ;;  %v1641_v8 = vshll.u32 %v4397_v62, 16 }
  0x5e   : > { %v1607_v60 = vrot.slane %v1605_v52, 5 }
  0x5f   : > { %1544 = vmatpush.bf16.msra.mxu3 %v4953_v57  ;;  %1790 = vmatpush.bf16.msra.mxu0 %v4961_v58  ;;  %v4914_v57 = vld [vmem:[%s5378_s20 + $0xa8] sm:$0xf0]  ;;  %v1209_v58 = vunpack.c.l.b16 %v1093_v44  ;;  %v4394_v44 = vld [vmem:[%s5378_s20 + $0x50] sm:$0x1]  ;;  %v1643_v20 = vrot.slane %v1641_v8, 5 }
  0x60   : > { %v4162_v3 = vor.u32 %v4914_v57, %v4161_v56  ;;  %v1619_v56 = vshll.u32 %v4394_v44, 16 }
  0x63   : > { %1545 = vmatpush.bf16.msra.mxu3 %v4952_v63  ;;  %1791 = vmatpush.bf16.msra.mxu0 %v4960_v4  ;;  %v1118_v63 = vshll.u32 %v1069_v53, 16  ;;  %v1217_v4 = vpack.c.b16 %v1210_v59, %v1209_v58  ;;  %v1162_v58 = vrot.slane %v1160_v48, 5 }
  0x65   : > { %v1120_v7 = vrot.slane %v1118_v63, 5 }
  0x66   : > { %906 = vmatmul.bf16.gmra.mxu3 %v4094_v21  ;;  %1040 = vmatmul.bf16.gmra.mxu0 %v4158_v22  ;;  %v1599_v21 = vshll.u32 %v4391_v12, 16  ;;  %v1610_v22 = vshrl.u32 %v4393_v13, 16 }
  0x67   : > { %1546 = vmatpush.bf16.msra.mxu3 %v4951_v17  ;;  %1792 = vmatpush.bf16.msra.mxu0 %v4959_v18  ;;  %v1121_v14 = vsel %vm5412_vm2, %v1116_v6, %v1120_v7  ;;  %v1140_v17 = vshll.u32 %v1072_v10, 16  ;;  %v1151_v18 = vshrl.u32 %v1074_v11, 16  ;;  %v1627_v6 = vshll.u32 %v4395_v61, 16 }
  0x68   : > { %541 = vmatmul.bf16.gmra.mxu1 %v3990_v23  ;;  %782 = vmatmul.bf16.gmra.mxu2 %v706_v24  ;;  %v1613_v23 = vshll.u32 %v4393_v13, 16  ;;  %v4101_v24 = vld [vmem:[%s5378_s20 + $0xc8] sm:$0xf]  ;;  %v1211_v28 = vunpack.c.l.b16 %v1121_v14  ;;  %v1601_v41 = vrot.slane %v1599_v21, 5  ;;  %v1612_v42 = vrot.slane %v1610_v22, 4 }
  0x69   : > { %v1142_v35 = vrot.slane %v1140_v17, 5  ;;  %v1153_v36 = vrot.slane %v1151_v18, 4  ;;  %v4102_v45 = vor.u32 %v4903_v25, %v4101_v24  ;;  %v1638_v7 = vshrl.u32 %v4397_v62, 16  ;;  %v4398_v24 = vld [vmem:[%s5378_s20 + $0x90] sm:$0x1] }
  0x6a   : > { %v1602_v54 = vor.u32 %v1601_v41, %v1598_v40  ;;  %v1629_v18 = vrot.slane %v1627_v6, 5  ;;  %v1647_v41 = vshll.u32 %v4398_v24, 16 }
  0x6b   : > { %1547 = vmatpush.bf16.msra.mxu3 %v4950_v29  ;;  %1793 = vmatpush.bf16.msra.mxu0 %v4958_v32  ;;  %v1212_v29 = vunpack.c.l.b16 %v1135_v15  ;;  %v1073_v32 = vld [vmem:[%s5378_s20 + $0x98] sm:$0x1] }
  0x6c   : > { %v1146_v47 = vshll.u32 %v1073_v32, 16  ;;  %v1603_v0 = vrot.slane %v1602_v54, 4  ;;  %v4399_v54 = vld [vmem:[%s5378_s20 + $0xa0] sm:$0xf] }
  0x6d   : > { %v1218_v49 = vpack.c.b16 %v1212_v29, %v1211_v28  ;;  %v4345_v28 = vld [vmem:[%s5378_s20 + $0x24] sm:$0xf]  ;;  %v1652_v62 = vshrl.u32 %v4399_v54, 16 }
  0x6e   : > { %v1148_v57 = vrot.slane %v1146_v47, 5  ;;  %v1608_v11 = vsel %vm5412_vm2, %v1603_v0, %v1607_v60  ;;  %v4944_v29 = vld [vmem:[%s5378_s20 + $0x40] sm:$0xf0] }
  0x6f   : > { %1548 = vmatpush.bf16.msra.mxu3 %v4949_v37  ;;  %1794 = vmatpush.bf16.msra.mxu0 %v4957_v43  ;;  %v1156_v37 = vrot.slane %v1154_v19, 5  ;;  %v1615_v43 = vrot.slane %v1613_v23, 5  ;;  %v1640_v19 = vrot.slane %v1638_v7, 4  ;;  %v1724_v21 = vunpack.c.l.b16 %v1608_v11  ;;  %v4396_v23 = vld [vmem:[%s5378_s20 + $0x70] sm:$0x1] }
  0x70   : > { %v1633_v38 = vshll.u32 %v4396_v23, 16  ;;  %v4945_v7 = vld [vmem:[%s5378_s20 + $0x80] sm:$0xf0]  ;;  %v1654_v8 = vrot.slane %v1652_v62, 4 }
  0x71   : > { %v1157_v53 = vor.u32 %v1156_v37, %v1153_v36  ;;  %v1616_v55 = vor.u32 %v1615_v43, %v1612_v42  ;;  %v1079_v36 = vld [vmem:[%s5378_s20 + $0xf8] sm:$0x1]  ;;  %v1644_v40 = vor.u32 %v1643_v20, %v1640_v19  ;;  %v4346_v42 = vor.u32 %v4944_v29, %v4345_v28 }
  0x73   : > { %1549 = vmatpush.bf16.msra.mxu3 %v4948_v46  ;;  %1795 = vmatpush.bf16.msra.mxu0 %v4956_v51  ;;  %v4166_v46 = vor.u32 %v4915_v27, %v4165_v26  ;;  %v1143_v51 = vor.u32 %v1142_v35, %v1139_v34  ;;  %v1158_v63 = vrot.slane %v1157_v53, 4  ;;  %v1617_v1 = vrot.slane %v1616_v55, 4  ;;  %v4281_v27 = vld [vmem:[%s5378_s20 + $0xa0] sm:$0xf]  ;;  %v1077_v35 = vld [vmem:[%s5378_s20 + $0xd8] sm:$0x1] }
  0x74   : > { %v1174_v47 = vshll.u32 %v1077_v35, 16  ;;  %v1645_v52 = vrot.slane %v1644_v40, 4  ;;  %v1649_v53 = vrot.slane %v1647_v41, 5  ;;  %v4401_v55 = vld [vmem:[%s5378_s20 + $0xc0] sm:$0xf] }
  0x75   : > { %v1144_v59 = vrot.slane %v1143_v51, 4  ;;  %v1163_v10 = vsel %vm5412_vm2, %v1158_v63, %v1162_v58  ;;  %v1635_v51 = vrot.slane %v1633_v38, 5  ;;  %v1655_v63 = vshll.u32 %v4399_v54, 16  ;;  %v4353_v38 = vld [vmem:[%s5378_s20 + $0xa4] sm:$0xf] }
  0x76   : > { %911 = vmatmul.bf16.gmra.mxu3 %v4098_v2  ;;  %1045 = vmatmul.bf16.gmra.mxu0 %v4162_v3  ;;  %v1621_v2 = vrot.slane %v1619_v56, 5  ;;  %v1076_v3 = vld [vmem:[%s5378_s20 + $0xc8] sm:$0xf]  ;;  %v1214_v26 = vunpack.c.l.b16 %v1163_v10  ;;  %v1666_v0 = vshrl.u32 %v4401_v55, 16 }
  0x77   : > { %v1149_v9 = vsel %vm5412_vm2, %v1144_v59, %v1148_v57  ;;  %v1165_v13 = vshrl.u32 %v1076_v3, 16  ;;  %v1168_v14 = vshll.u32 %v1076_v3, 16  ;;  %v1176_v57 = vrot.slane %v1174_v47, 5  ;;  %v4404_v47 = vld [vmem:[%s5378_s20 + $0xf0] sm:$0x1] }
  0x78   : > { %1281 = vmatmul.bf16.vlgmr.msrb.gmra.mxu1 %v1217_v4  ;;  %1416 = vmatmul.bf16.vlgmr.msrb.gmra.mxu2 %v4274_v5  ;;  %v1078_v4 = vld [vmem:[%s5378_s20 + $0xe8] sm:$0xf]  ;;  %v1624_v5 = vshrl.u32 %v4395_v61, 16  ;;  %v1622_v12 = vsel %vm5412_vm2, %v1617_v1, %v1621_v2  ;;  %v1213_v25 = vunpack.c.l.b16 %v1149_v9  ;;  %v1650_v61 = vsel %vm5412_vm2, %v1645_v52, %v1649_v53 }
  0x79   : > { %v1179_v15 = vshrl.u32 %v1078_v4, 16  ;;  %v1182_v16 = vshll.u32 %v1078_v4, 16  ;;  %v1725_v22 = vunpack.c.l.b16 %v1622_v12  ;;  %v1167_v31 = vrot.slane %v1165_v13, 4  ;;  %v4349_v4 = vld [vmem:[%s5378_s20 + $0x64] sm:$0xf] }
  0x7a   : > { %v1626_v17 = vrot.slane %v1624_v5, 4  ;;  %v1170_v32 = vrot.slane %v1168_v14, 5  ;;  %v1219_v44 = vpack.c.b16 %v1214_v26, %v1213_v25  ;;  %v1669_v1 = vshll.u32 %v4401_v55, 16  ;;  %v4400_v14 = vld [vmem:[%s5378_s20 + $0xb0] sm:$0x1] }
  0x7b   : > { %v1181_v33 = vrot.slane %v1179_v15, 4  ;;  %v1184_v34 = vrot.slane %v1182_v16, 5  ;;  %v1732_v43 = vpack.c.b16 %v1725_v22, %v1724_v21  ;;  %v1727_v6 = vunpack.c.l.b16 %v1650_v61  ;;  %v4402_v15 = vld [vmem:[%s5378_s20 + $0xd0] sm:$0x1]  ;;  %v4285_v16 = vld [vmem:[%s5378_s20 + $0xe0] sm:$0xf] }
  0x7c   : > { %v1630_v37 = vor.u32 %v1629_v18, %v1626_v17  ;;  %v1657_v9 = vrot.slane %v1655_v63, 5  ;;  %v1668_v10 = vrot.slane %v1666_v0, 4  ;;  %v1671_v11 = vrot.slane %v1669_v1, 5  ;;  %v4935_v17 = vld [vmem:[%s5378_s20 + $0xfc] sm:$0xf0] }
  0x7d   : > { %v1185_v48 = vor.u32 %v1184_v34, %v1181_v33  ;;  %v4350_v18 = vor.u32 %v4945_v7, %v4349_v4  ;;  %v1661_v21 = vshll.u32 %v4400_v14, 16  ;;  %v1675_v23 = vshll.u32 %v4402_v15, 16 }
  0x7e   : > { %v1658_v20 = vor.u32 %v1657_v9, %v1654_v8  ;;  %v1672_v22 = vor.u32 %v1671_v11, %v1668_v10  ;;  %v4286_v25 = vor.u32 %v4935_v17, %v4285_v16  ;;  %v1689_v53 = vshll.u32 %v4404_v47, 16 }
  0x7f   : > { %v1186_v58 = vrot.slane %v1185_v48, 4  ;;  %v1677_v29 = vrot.slane %v1675_v23, 5  ;;  %v4406_v48 = vld [vmem:[%s5378_s20 + $0x110] sm:$0x1] }
  0x80   : > { %v1659_v26 = vrot.slane %v1658_v20, 4  ;;  %v1673_v28 = vrot.slane %v1672_v22, 4  ;;  %v1703_v55 = vshll.u32 %v4406_v48, 16  ;;  %v5003_v48 = vld [vmem:[#allocation3 + $0xf8] sm:$0xff] }
  0x81   : > { %2637 = vmatpush.bf16.msrb.mxu0 %v5003_v48 }
  0x82   : > { %v1678_v33 = vsel %vm5412_vm2, %v1673_v28, %v1677_v29  ;;  %v4974_v29 = vld [vmem:[#allocation3 + $0x30] sm:$0xff] }
  0x83   : > { %v1729_v41 = vunpack.c.l.b16 %v1678_v33 }
  0x86   : > { %916 = vmatmul.bf16.gmra.mxu3 %v4102_v45  ;;  %1050 = vmatmul.bf16.gmra.mxu0 %v4166_v46  ;;  %v4282_v45 = vor.u32 %v4934_v30, %v4281_v27  ;;  %v1171_v46 = vor.u32 %v1170_v32, %v1167_v31  ;;  %v1663_v27 = vrot.slane %v1661_v21, 5  ;;  %v4403_v30 = vld [vmem:[%s5378_s20 + $0xe0] sm:$0xf] }
  0x87   : > { %v4405_v31 = vld [vmem:[%s5378_s20 + $0x100] sm:$0xf]  ;;  %v1680_v34 = vshrl.u32 %v4403_v30, 16  ;;  %v1683_v35 = vshll.u32 %v4403_v30, 16 }
  0x88   : > { %1286 = vmatmul.bf16.gmra.mxu1 %v1218_v49  ;;  %1421 = vmatmul.bf16.gmra.mxu2 %v4278_v50  ;;  %v1188_v49 = vshll.u32 %v1079_v36, 16  ;;  %v1631_v50 = vrot.slane %v1630_v37, 4  ;;  %v1172_v56 = vrot.slane %v1171_v46, 4  ;;  %v1664_v32 = vsel %vm5412_vm2, %v1659_v26, %v1663_v27  ;;  %v4982_v30 = vld [vmem:[#allocation3 + $0x70] sm:$0xff] }
  0x89   : > { %v1694_v36 = vshrl.u32 %v4405_v31, 16  ;;  %v1697_v37 = vshll.u32 %v4405_v31, 16  ;;  %v1728_v40 = vunpack.c.l.b16 %v1664_v32 }
  0x8a   : > { %v1190_v59 = vrot.slane %v1188_v49, 5  ;;  %v1636_v60 = vsel %vm5412_vm2, %v1631_v50, %v1635_v51  ;;  %v1177_v2 = vsel %vm5412_vm2, %v1172_v56, %v1176_v57 }
  0x8b   : > { %v1726_v5 = vunpack.c.l.b16 %v1636_v60  ;;  %v1215_v12 = vunpack.c.l.b16 %v1177_v2  ;;  %v1699_v46 = vrot.slane %v1697_v37, 5  ;;  %v1734_v50 = vpack.c.b16 %v1729_v41, %v1728_v40  ;;  %v4972_v41 = vld [vmem:[#allocation3 + $0x20] sm:$0xff] }
  0x8c   : > { %v1191_v3 = vsel %vm5412_vm2, %v1186_v58, %v1190_v59  ;;  %v1691_v58 = vrot.slane %v1689_v53, 5  ;;  %v1705_v60 = vrot.slane %v1703_v55, 5  ;;  %v5002_v53 = vld [vmem:[#allocation3 + $0xf0] sm:$0xff]  ;;  %v4989_v55 = vld [vmem:[#allocation3 + $0xa8] sm:$0xff] }
  0x8d   : > { %v1216_v13 = vunpack.c.l.b16 %v1191_v3  ;;  %v1733_v19 = vpack.c.b16 %v1727_v6, %v1726_v5  ;;  %v4357_v5 = vld [vmem:[%s5378_s20 + $0xe4] sm:$0xf]  ;;  %2638 = vmatpush.bf16.msrb.mxu0 %v5002_v53  ;;  %v4997_v53 = vld [vmem:[#allocation3 + $0xc8] sm:$0xff] }
  0x8e   : > { %v4947_v6 = vld [vmem:[%s5378_s20 + $0x100] sm:$0xf0] }
  0x8f   : > { %v1220_v24 = vpack.c.b16 %v1216_v13, %v1215_v12  ;;  %v4358_v9 = vor.u32 %v4947_v6, %v4357_v5  ;;  %v5000_v5 = vld [vmem:[#allocation3 + $0xe0] sm:$0xff] }
  0x96   : > { %1550 = vmatmul.bf16.vlgmr.msra.gmra.mxu3 %v4346_v42  ;;  %1796 = vmatmul.bf16.vlgmr.msra.gmra.mxu0 %v1732_v43  ;;  %v4946_v42 = vld [vmem:[%s5378_s20 + $0xc0] sm:$0xf0]  ;;  %v1682_v43 = vrot.slane %v1680_v34, 4  ;;  %v4973_v34 = vld [vmem:[#allocation3 + $0x28] sm:$0xff] }
  0x97   : > { %v4354_v49 = vor.u32 %v4946_v42, %v4353_v38  ;;  %v4980_v42 = vld [vmem:[#allocation3 + $0x60] sm:$0xff] }
  0x98   : > { %1291 = vmatmul.bf16.gmra.mxu1 %v1219_v44  ;;  %1426 = vmatmul.bf16.gmra.mxu2 %v4282_v45  ;;  %v1685_v44 = vrot.slane %v1683_v35, 5  ;;  %v1696_v45 = vrot.slane %v1694_v36, 4  ;;  %v4981_v35 = vld [vmem:[#allocation3 + $0x68] sm:$0xff] }
  0x9a   : > { %v1686_v52 = vor.u32 %v1685_v44, %v1682_v43  ;;  %v1700_v54 = vor.u32 %v1699_v46, %v1696_v45  ;;  %v4991_v45 = vld [vmem:[#allocation3 + $0xb8] sm:$0xff] }
  0x9b   : > { %2503 = vmatpush.bf16.msrb.mxu3 %v4991_v45 }
  0x9c   : > { %v1687_v57 = vrot.slane %v1686_v52, 4  ;;  %v1701_v59 = vrot.slane %v1700_v54, 4  ;;  %v5245_v52 = vmov 0  }
  0x9d   : > { %1846 = vst [vmem:[#allocation2 + $0x8] sm:$0xf] %v5245_v52 }
  0x9e   : > { %v1692_v0 = vsel %vm5412_vm2, %v1687_v57, %v1691_v58  ;;  %v1706_v1 = vsel %vm5412_vm2, %v1701_v59, %v1705_v60  ;;  %1847 = vst [vmem:[#allocation2 + $0xc] sm:$0x1] %v5245_v52  ;;  %v4971_v59 = vld [vmem:[#allocation3 + $0x18] sm:$0xff]  ;;  %v5001_v60 = vld [vmem:[#allocation3 + $0xe8] sm:$0xff] }
  0x9f   : > { %v1730_v3 = vunpack.c.l.b16 %v1692_v0  ;;  %v1731_v4 = vunpack.c.l.b16 %v1706_v1  ;;  %1844 = vst [vmem:[#allocation2] sm:$0xf] %v5245_v52  ;;  %v4988_v0 = vld [vmem:[#allocation3 + $0xa0] sm:$0xff]  ;;  %2639 = vmatpush.bf16.msrb.mxu0 %v5001_v60 }
  0xa0   : > { %1845 = vst [vmem:[#allocation2 + $0x4] sm:$0x1] %v5245_v52 }
  0xa1   : > { %v1735_v10 = vpack.c.b16 %v1731_v4, %v1730_v3  ;;  %1848 = vst [vmem:[#allocation2 + $0x10] sm:$0xf] %v5245_v52  ;;  %v4970_v3 = vld [vmem:[#allocation3 + $0x10] sm:$0xff] }
  0xa2   : > { %1849 = vst [vmem:[#allocation2 + $0x14] sm:$0x1] %v5245_v52 }
  0xa3   : > { %1850 = vst [vmem:[#allocation2 + $0x18] sm:$0xf] %v5245_v52  ;;  %2640 = vmatpush.bf16.msrb.mxu0 %v5000_v5 }
  0xa4   : > { %1851 = vst [vmem:[#allocation2 + $0x1c] sm:$0x1] %v5245_v52 }
  0xa5   : > { %1852 = vst [vmem:[#allocation2 + $0x20] sm:$0xf] %v5245_v52 }
  0xa6   : > { %1555 = vmatmul.bf16.gmra.mxu3 %v4350_v18  ;;  %1801 = vmatmul.bf16.gmra.mxu0 %v1733_v19  ;;  %1853 = vst [vmem:[#allocation2 + $0x24] sm:$0x1] %v5245_v52 }
  0xa7   : > { %1854 = vst [vmem:[#allocation2 + $0x28] sm:$0xf] %v5245_v52 }
  0xa8   : > { %1296 = vmatmul.bf16.gmra.mxu1 %v1220_v24  ;;  %1431 = vmatmul.bf16.gmra.mxu2 %v4286_v25  ;;  %v4975_v24 = vld [vmem:[#allocation3 + $0x38] sm:$0xff]  ;;  %1855 = vst [vmem:[#allocation2 + $0x2c] sm:$0x1] %v5245_v52 }
  0xa9   : > { %v4983_v25 = vld [vmem:[#allocation3 + $0x78] sm:$0xff]  ;;  %2334 = vmatpush.bf16.msra.mxu2 %v4975_v24  ;;  %1856 = vst [vmem:[#allocation2 + $0x30] sm:$0xf] %v5245_v52 }
  0xaa   : > { %2233 = vmatpush.bf16.msra.mxu1 %v4983_v25  ;;  %v4979_v24 = vld [vmem:[#allocation3 + $0x58] sm:$0xff]  ;;  %v4969_v25 = vld [vmem:[#allocation3 + $0x8] sm:$0xff]  ;;  %1857 = vst [vmem:[#allocation2 + $0x34] sm:$0x1] %v5245_v52 }
  0xab   : > { %1858 = vst [vmem:[#allocation2 + $0x38] sm:$0xf] %v5245_v52 }
  0xac   : > { %1859 = vst [vmem:[#allocation2 + $0x3c] sm:$0x1] %v5245_v52 }
  0xad   : > { %2335 = vmatpush.bf16.msra.mxu2 %v4974_v29  ;;  %v4999_v29 = vld [vmem:[#allocation3 + $0xd8] sm:$0xff]  ;;  %1860 = vst [vmem:[#allocation2 + $0x40] sm:$0xf] %v5245_v52 }
  0xae   : > { %2234 = vmatpush.bf16.msra.mxu1 %v4982_v30  ;;  %2641 = vmatpush.bf16.msrb.mxu0 %v4999_v29  ;;  %1861 = vst [vmem:[#allocation2 + $0x44] sm:$0x1] %v5245_v52 }
  0xaf   : > { %1862 = vst [vmem:[#allocation2 + $0x48] sm:$0xf] %v5245_v52 }
  0xb0   : > { %1863 = vst [vmem:[#allocation2 + $0x4c] sm:$0x1] %v5245_v52  ;;  %v4996_v52 = vld [vmem:[#allocation3 + $0xc0] sm:$0xff] }
  0xb1   : > { %2336 = vmatpush.bf16.msra.mxu2 %v4973_v34 }
  0xb2   : > { %2235 = vmatpush.bf16.msra.mxu1 %v4981_v35 }
  0xb3   : > { %v5711_v51 = vpop.f32.mrf.mxu0 }
  0xb5   : > { %v5713_v56 = vpop.f32.mrf.mxu1  ;;  %2337 = vmatpush.bf16.msra.mxu2 %v4972_v41  ;;  %v4968_v41 = vld [vmem:[#allocation3] sm:$0xff] }
  0xb6   : > { %1560 = vmatmul.bf16.gmra.mxu3 %v4354_v49  ;;  %1806 = vmatmul.bf16.gmra.mxu0 %v1734_v50  ;;  %v4990_v49 = vld [vmem:[#allocation3 + $0xb0] sm:$0xff]  ;;  %v528_v4 = vadd.f32 %v5713_v56, %v5711_v51 }
  0xb7   : > { %2236 = vmatpush.bf16.msra.mxu1 %v4980_v42  ;;  %2504 = vmatpush.bf16.msrb.mxu3 %v4990_v49  ;;  %v4986_v56 = vld [vmem:[#allocation3 + $0x90] sm:$0xff]  ;;  %v4985_v42 = vld [vmem:[#allocation3 + $0x88] sm:$0xff] }
  0xb8   : > { %v4978_v49 = vld [vmem:[#allocation3 + $0x50] sm:$0xff] }
  0xb9   : > { %v5715_v61 = vpop.f32.mrf.mxu3  ;;  %2338 = vmatpush.bf16.msra.mxu2 %v4971_v59 }
  0xbb   : > { %v5717_v62 = vpop.f32.mrf.mxu2  ;;  %v5719_v63 = vpop.f32.mrf.mxu0  ;;  %2505 = vmatpush.bf16.msrb.mxu3 %v4989_v55  ;;  %2237 = vmatpush.bf16.msra.mxu1 %v4979_v24  ;;  %v4976_v24 = vld [vmem:[#allocation3 + $0x40] sm:$0xff] }
  0xbc   : > { %v788_v51 = vadd.f32 %v5717_v62, %v528_v4  ;;  %v4998_v62 = vld [vmem:[#allocation3 + $0xd0] sm:$0xff] }
  0xbd   : > { %v5725_v2 = vpop.f32.mrf.mxu1  ;;  %2339 = vmatpush.bf16.msra.mxu2 %v4970_v3  ;;  %2642 = vmatpush.bf16.msrb.mxu0 %v4998_v62 }
  0xbf   : > { %2506 = vmatpush.bf16.msrb.mxu3 %v4988_v0  ;;  %2238 = vmatpush.bf16.msra.mxu1 %v4978_v49  ;;  %v4984_v0 = vld [vmem:[#allocation3 + $0x80] sm:$0xff] }
  0xc1   : > { %v5729_v7 = vpop.f32.mrf.mxu3  ;;  %2340 = vmatpush.bf16.msra.mxu2 %v4969_v25  ;;  %2643 = vmatpush.bf16.msrb.mxu0 %v4997_v53 }
  0xc3   : > { %v5731_v8 = vpop.f32.mrf.mxu2  ;;  %v5733_v11 = vpop.f32.mrf.mxu0 }
  0xc5   : > { %v5735_v12 = vpop.f32.mrf.mxu1  ;;  %2341 = vmatpush.bf16.msra.mxu2 %v4968_v41  ;;  %2644 = vmatpush.bf16.msrb.mxu0 %v4996_v52 }
  0xc6   : > { %1565 = vmatmul.bf16.gmra.mxu3 %v4358_v9  ;;  %1811 = vmatmul.bf16.gmra.mxu0 %v1735_v10  ;;  %v4987_v9 = vld [vmem:[#allocation3 + $0x98] sm:$0xff] }
  0xc7   : > { %2507 = vmatpush.bf16.msrb.mxu3 %v4987_v9 }
  0xc9   : > { %v5737_v13 = vpop.f32.mrf.mxu3 }
  0xcb   : > { %v5739_v14 = vpop.f32.mrf.mxu2  ;;  %v5741_v15 = vpop.f32.mrf.mxu0  ;;  %2508 = vmatpush.bf16.msrb.mxu3 %v4986_v56 }
  0xcd   : > { %v5743_v16 = vpop.f32.mrf.mxu1 }
  0xcf   : > { %2509 = vmatpush.bf16.msrb.mxu3 %v4985_v42 }
  0xd1   : > { %v5745_v17 = vpop.f32.mrf.mxu3 }
  0xd3   : > { %v5747_v18 = vpop.f32.mrf.mxu2  ;;  %v5749_v19 = vpop.f32.mrf.mxu0  ;;  %2510 = vmatpush.bf16.msrb.mxu3 %v4984_v0  ;;  %v1956_v0 = vld [vmem:[#allocation2 + $0x8] sm:$0xf] }
  0xd5   : > { %v5753_v21 = vpop.f32.mrf.mxu1 }
  0xd9   : > { %v5751_v20 = vpop.f32.mrf.mxu3 }
  0xda   : > { %v922_v34 = vadd.f32 %v5751_v20, %v788_v51  ;;  %v530_v20 = vadd.f32 %v5725_v2, %v5719_v63  ;;  %v4977_v2 = vld [vmem:[#allocation3 + $0x48] sm:$0xff] }
  0xdb   : > { %v5755_v22 = vpop.f32.mrf.mxu0  ;;  %v5757_v23 = vpop.f32.mrf.mxu2  ;;  %2239 = vmatpush.bf16.msra.mxu1 %v4977_v2 }
  0xdc   : > { %v1056_v48 = vadd.f32 %v5749_v19, %v922_v34  ;;  %v789_v55 = vadd.f32 %v5731_v8, %v530_v20  ;;  %v533_v19 = vadd.f32 %v5735_v12, %v5733_v11  ;;  %v5834_v8 = vld [vmem:[%s6268_s2] ss:$0 sm:$0xff] }
  0xdd   : > { %v5763_v28 = vpop.f32.mrf.mxu1 }
  0xde   : > { %v790_v25 = vadd.f32 %v5739_v14, %v533_v19  ;;  %v540_v52 = vadd.f32 %v5763_v28, %v5729_v7 }
  0xdf   : > { %2240 = vmatpush.bf16.msra.mxu1 %v4976_v24  ;;  %v5865_v24 = vld [vmem:[#allocation2 + $0x4] sm:$0x1] }
  0xe1   : > { %v5759_v26 = vpop.f32.mrf.mxu3 }
  0xe2   : > { %v923_v3 = vadd.f32 %v5759_v26, %v789_v55 }
  0xe3   : > { %v5761_v27 = vpop.f32.mrf.mxu0  ;;  %v5765_v31 = vpop.f32.mrf.mxu2 }
  0xe4   : > { %v1057_v26 = vadd.f32 %v5755_v22, %v923_v3  ;;  %v535_v22 = vadd.f32 %v5743_v16, %v5741_v15  ;;  %v2008_v16 = vld [vmem:[#allocation2] sm:$0xf] }
  0xe5   : > { %v5771_v36 = vpop.f32.mrf.mxu1 }
  0xe6   : > { %v543_v7 = vadd.f32 %v5771_v36, %v5737_v13 }
  0xe9   : > { %v5767_v32 = vpop.f32.mrf.mxu3 }
  0xea   : > { %v924_v29 = vadd.f32 %v5767_v32, %v790_v25  ;;  %v2363_v25 = vld [vmem:[#allocation2] sm:$0xe] }
  0xeb   : > { %v5769_v33 = vpop.f32.mrf.mxu0  ;;  %v5773_v37 = vpop.f32.mrf.mxu2 }
  0xed   : > { %v5779_v43 = vpop.f32.mrf.mxu1 }
  0xf1   : > { %v5775_v38 = vpop.f32.mrf.mxu3 }
  0xf3   : > { %v5777_v40 = vpop.f32.mrf.mxu0  ;;  %v5783_v46 = vpop.f32.mrf.mxu2 }
  0xf5   : > { %v5790_v54 = vpop.f32.mrf.mxu1 }
  0xf6   : > { %v1302_v59 = vadd.f32 %v5790_v54, %v1056_v48 }
  0xf9   : > { %v5781_v44 = vpop.f32.mrf.mxu3 }
  0xfb   : > { %v5785_v47 = vpop.f32.mrf.mxu0  ;;  %v1417_v58 = vpop.f32.mrf.mxu2 }
  0xfc   : > { %v1437_v63 = vadd.f32 %v1417_v58, %v1302_v59 }
  0xfd   : > { %v1284_v10 = vpop.f32.mrf.mxu1 }
  0xfe   : > { %v1303_v11 = vadd.f32 %v1284_v10, %v1057_v26 }
 0x101   : > { %v5787_v50 = vpop.f32.mrf.mxu3 }
 0x103   : > { %v5793_v57 = vpop.f32.mrf.mxu0  ;;  %v1419_v30 = vpop.f32.mrf.mxu2 }
 0x104   : > { %v1438_v51 = vadd.f32 %v1419_v30, %v1303_v11  ;;  %v791_v30 = vadd.f32 %v5747_v18, %v535_v22  ;;  %v1962_v18 = vld [vmem:[#allocation2 + $0xc] sm:$0x1] }
 0x105   : > { %v1287_v60 = vpop.f32.mrf.mxu1 }
 0x106   : > { %v925_v59 = vadd.f32 %v5775_v38, %v791_v30 }
 0x109   : > { %v5800_v1 = vpop.f32.mrf.mxu3 }
 0x10b   : > { %v5806_v6 = vpop.f32.mrf.mxu0  ;;  %v1422_v4 = vpop.f32.mrf.mxu2 }
 0x10d   : > { %v1289_v56 = vpop.f32.mrf.mxu1 }
 0x111   : > { %v5816_v35 = vpop.f32.mrf.mxu3 }
 0x113   : > { %v1797_v45 = vpop.f32.mrf.mxu0  ;;  %v5843_v20 = vpop.f32.mrf.mxu2 }
 0x119   : > { %v1551_v5 = vpop.f32.mrf.mxu3 }
 0x11a   : > { %v1571_v9 = vadd.f32 %v1551_v5, %v1437_v63 }
 0x11b   : > { %v1799_v54 = vpop.f32.mrf.mxu0 }
 0x11c   : > { %v1817_v58 = vadd.f32 %v1797_v45, %v1571_v9  ;;  %v1058_v45 = vadd.f32 %v5761_v27, %v924_v29  ;;  %v538_v27 = vadd.f32 %v5753_v21, %v5715_v61  ;;  %v2044_v61 = vshll.u32 %v2008_v16, 16  ;;  %v1292_v21 = vpop.f32.mrf.mxu1 }
 0x11e   : > { %v1828_v12 = vadd.f32 %v5834_v8, %v1817_v58  ;;  %v1304_v48 = vadd.f32 %v1287_v60, %v1058_v45  ;;  %v792_v5 = vadd.f32 %v5757_v23, %v538_v27  ;;  %v793_v23 = vadd.f32 %v5765_v31, %v540_v52  ;;  %v4489_v27 = vld [vmem:[#allocation2] sm:$0xf] }
 0x11f   : > { %v2392_v31 = vrot.slane %v5865_v24, 5  ;;  %v2046_v45 = vrot.slane %v2044_v61, 5 }
 0x120   : > { %v1836_v34 = vmax.f32 %v1828_v12, 0.0  ;;  %v1439_v60 = vadd.f32 %v1422_v4, %v1304_v48  ;;  %v926_v11 = vadd.f32 %v5781_v44, %v792_v5  ;;  %v1059_v12 = vadd.f32 %v5769_v33, %v925_v59  ;;  %v1968_v48 = vld [vmem:[#allocation2 + $0x14] sm:$0x1] }
 0x121   : > { %v1553_v41 = vpop.f32.mrf.mxu3  ;;  %v794_v44 = vadd.f32 %v5773_v37, %v543_v7  ;;  %v927_v30 = vadd.f32 %v5787_v50, %v793_v23 }
 0x122   : > { %v1864_v62 = vpack.c.bf16 %v1836_v34, %v1836_v34  ;;  %v1572_v42 = vadd.f32 %v1553_v41, %v1438_v51  ;;  %v5019_v34 = vld [vmem:[#allocation3 + $0x178] sm:$0xff]  ;;  %v1305_v13 = vadd.f32 %v1289_v56, %v1059_v12  ;;  %v1965_v56 = vld [vmem:[#allocation2 + $0x10] sm:$0xf]  ;;  %v1060_v59 = vadd.f32 %v5777_v40, %v926_v11 }
 0x123   : > { %v1802_v14 = vpop.f32.mrf.mxu0  ;;  %v5011_v41 = vld [vmem:[#allocation3 + $0x138] sm:$0xff]  ;;  %3057 = vmatpush.bf16.msrb.mxu2 %v5019_v34  ;;  %v1061_v40 = vadd.f32 %v5785_v47, %v927_v30  ;;  %v928_v34 = vadd.f32 %v5800_v1, %v794_v44 }
 0x124   : > { %v1873_v10 = vshrl.u32 %v1864_v62, 16  ;;  %v1818_v32 = vadd.f32 %v1799_v54, %v1572_v42  ;;  %v1876_v53 = vshll.u32 %v1864_v62, 16  ;;  %v2041_v54 = vshrl.u32 %v2008_v16, 16  ;;  %v1427_v62 = vpop.f32.mrf.mxu2  ;;  %2883 = vmatpush.bf16.msrb.mxu1 %v5011_v41  ;;  %v1294_v61 = vpop.f32.mrf.mxu1 }
 0x125   : > { %v4535_v42 = vrot.slane %v2363_v25, 9 }
 0x126   : > { %v1875_v49 = vrot.slane %v1873_v10, 7  ;;  %v1829_v15 = vadd.f32 %v5834_v8, %v1818_v32  ;;  %v2043_v22 = vrot.slane %v2041_v54, 4  ;;  %v1306_v54 = vadd.f32 %v1292_v21, %v1060_v59 }
 0x128   : > { %v1878_v63 = vor.u32 %v1876_v53, %v1875_v49  ;;  %v1879_v2 = vrot.slane %v1875_v49, 4  ;;  %v1837_v19 = vmax.f32 %v1829_v15, 0.0  ;;  %v1440_v49 = vadd.f32 %v5843_v20, %v1305_v13 }
 0x129   : > { %v1556_v9 = vpop.f32.mrf.mxu3  ;;  %v2047_v37 = vor.u32 %v2046_v45, %v2043_v22 }
 0x12a   : > { %v1957_v38 = vsel %vm5846_vm7, %v1878_v63, %v1956_v0  ;;  %v1963_v26 = vsel %vm5854_vm8, %v1879_v2, %v1962_v18  ;;  %v1865_v58 = vpack.c.bf16 %v1837_v19, %v1837_v19  ;;  %v1573_v4 = vadd.f32 %v1556_v9, %v1439_v60 }
 0x12b   : > { %1958 = vst [vmem:[#allocation2 + $0x8] sm:$0xf] %v1957_v38  ;;  %v1804_v28 = vpop.f32.mrf.mxu0  ;;  %v2393_v18 = vsel %vm5876_vm11, %v4535_v42, %v2392_v31  ;;  %v2050_v60 = vshll.u32 %v5865_v24, 16  ;;  %v2048_v7 = vrot.slane %v2047_v37, 4  ;;  %v1971_v42 = vld [vmem:[#allocation2 + $0x18] sm:$0xf] }
 0x12c   : > { %1964 = vst [vmem:[#allocation2 + $0xc] sm:$0x1] %v1963_v26  ;;  %v1881_v29 = vshrl.u32 %v1865_v58, 16  ;;  %v1819_v51 = vadd.f32 %v1802_v14, %v1573_v4  ;;  %v1884_v10 = vshll.u32 %v1865_v58, 16  ;;  %v545_v14 = vadd.f32 %v5779_v43, %v5745_v17  ;;  %v1429_v41 = vpop.f32.mrf.mxu2  ;;  %v1974_v31 = vld [vmem:[#allocation2 + $0x1c] sm:$0x1] }
 0x12d   : > { %v2439_v25 = vunpack.c.l.b16 %v2393_v18  ;;  %v2052_v11 = vrot.slane %v2050_v60, 5  ;;  %v1307_v60 = vadd.f32 %v1294_v61, %v1061_v40  ;;  %v5031_v40 = vld [vmem:[#allocation3 + $0x1b8] sm:$0xff] }
 0x12e   : > { %v1883_v36 = vrot.slane %v1881_v29, 7  ;;  %v1830_v32 = vadd.f32 %v5834_v8, %v1819_v51  ;;  %v795_v19 = vadd.f32 %v5783_v46, %v545_v14  ;;  %v5018_v46 = vld [vmem:[#allocation3 + $0x170] sm:$0xff]  ;;  %3192 = vmatpush.bf16.msra.mxu3 %v5031_v40 }
 0x12f   : > { %v5010_v51 = vld [vmem:[#allocation3 + $0x130] sm:$0xff]  ;;  %3058 = vmatpush.bf16.msrb.mxu2 %v5018_v46  ;;  %v1442_v61 = vadd.f32 %v1429_v41, %v1307_v60 }
 0x130   : > { %v1886_v53 = vor.u32 %v1884_v10, %v1883_v36  ;;  %v1887_v15 = vrot.slane %v1883_v36, 4  ;;  %v1838_v16 = vmax.f32 %v1830_v32, 0.0  ;;  %2884 = vmatpush.bf16.msrb.mxu1 %v5010_v51  ;;  %v5909_v37 = vadd.f32 %v5816_v35, %v795_v19 }
 0x131   : > { %v1558_v0 = vpop.f32.mrf.mxu3 }
 0x132   : > { %v1966_v17 = vsel %vm5846_vm7, %v1886_v53, %v1965_v56  ;;  %v1969_v43 = vsel %vm5854_vm8, %v1887_v15, %v1968_v48  ;;  %v1866_v50 = vpack.c.bf16 %v1838_v16, %v1838_v16  ;;  %v1574_v20 = vadd.f32 %v1558_v0, %v1440_v49  ;;  %v4964_v63 = vld [vmem:[#allocation2 + $0x4] sm:$0xf0] }
 0x133   : > { %v2364_v2 = vld [vmem:[#allocation2 + $0x8] sm:$0xe]  ;;  %1967 = vst [vmem:[#allocation2 + $0x10] sm:$0xf] %v1966_v17  ;;  %v4490_v5 = vor.u32 %v4964_v63, %v4489_v27  ;;  %v2033_v52 = vld [vmem:[#allocation2 + $0xc] sm:$0x1]  ;;  %v1807_v24 = vpop.f32.mrf.mxu0  ;;  %v2053_v56 = vsel %vm5412_vm2, %v2048_v7, %v2052_v11  ;;  %v1062_v27 = vadd.f32 %v5793_v57, %v928_v34 }
 0x134   : > { %v4536_v9 = vrot.slane %v2364_v2, 9  ;;  %1970 = vst [vmem:[#allocation2 + $0x14] sm:$0x1] %v1969_v43  ;;  %v1889_v38 = vshrl.u32 %v1866_v50, 16  ;;  %v1820_v26 = vadd.f32 %v1804_v28, %v1574_v20  ;;  %v2396_v58 = vrot.slane %v2033_v52, 5  ;;  %v5017_v20 = vld [vmem:[#allocation3 + $0x168] sm:$0xff] }
 0x135   : > { %v1892_v4 = vshll.u32 %v1866_v50, 16  ;;  %2342 = vmatmul.bf16.vlgmr.msra.gmra.mxu2 %v4490_v5  ;;  %v2009_v23 = vld [vmem:[#allocation2 + $0x8] sm:$0xf]  ;;  %v1441_v28 = vadd.f32 %v1427_v62, %v1306_v54  ;;  %v2064_v49 = vshll.u32 %v2033_v52, 16  ;;  %v2169_v5 = vunpack.c.l.b16 %v2053_v56  ;;  %v1297_v54 = vpop.f32.mrf.mxu1 }
 0x136   : > { %v1891_v12 = vrot.slane %v1889_v38, 7  ;;  %v1831_v47 = vadd.f32 %v5834_v8, %v1820_v26  ;;  %v2397_v29 = vsel %vm5876_vm11, %v4536_v9, %v2396_v58  ;;  %v2055_v21 = vshrl.u32 %v2009_v23, 16  ;;  %v4577_v15 = vld [vmem:[#allocation2 + $0x8] sm:$0xf]  ;;  %v5009_v9 = vld [vmem:[#allocation3 + $0x128] sm:$0xff]  ;;  %3059 = vmatpush.bf16.msrb.mxu2 %v5017_v20 }
 0x137   : > { %v2440_v22 = vunpack.c.l.b16 %v2397_v29  ;;  %v2058_v45 = vshll.u32 %v2009_v23, 16  ;;  %v2066_v57 = vrot.slane %v2064_v49, 5  ;;  %v1977_v58 = vld [vmem:[#allocation2 + $0x20] sm:$0xf]  ;;  %2885 = vmatpush.bf16.msrb.mxu1 %v5009_v9  ;;  %v1308_v29 = vadd.f32 %v1297_v54, %v1062_v27  ;;  %v1983_v27 = vld [vmem:[#allocation2 + $0x28] sm:$0xf] }
 0x138   : > { %v1894_v13 = vor.u32 %v1892_v4, %v1891_v12  ;;  %v1895_v36 = vrot.slane %v1891_v12, 4  ;;  %v1839_v10 = vmax.f32 %v1831_v47, 0.0  ;;  %v2057_v32 = vrot.slane %v2055_v21, 4  ;;  %v1980_v4 = vld [vmem:[#allocation2 + $0x24] sm:$0x1]  ;;  %v1432_v21 = vpop.f32.mrf.mxu2 }
 0x139   : > { %v1561_v14 = vpop.f32.mrf.mxu3  ;;  %v2447_v30 = vpack.c.b16 %v2440_v22, %v2439_v25  ;;  %v2060_v48 = vrot.slane %v2058_v45, 5 }
 0x13a   : > { %v1972_v1 = vsel %vm5846_vm7, %v1894_v13, %v1971_v42  ;;  %v1975_v62 = vsel %vm5854_vm8, %v1895_v36, %v1974_v31  ;;  %v1867_v44 = vpack.c.bf16 %v1839_v10, %v1839_v10  ;;  %v1575_v53 = vadd.f32 %v1561_v14, %v1441_v28  ;;  %v4992_v16 = vld [vmem:[#allocation2 + $0xc] sm:$0xf0]  ;;  %v5039_v42 = vld [vmem:[#allocation3 + $0x1f8] sm:$0xff] }
 0x13b   : > { %1973 = vst [vmem:[#allocation2 + $0x18] sm:$0xf] %v1972_v1  ;;  %2511 = vmatmul.bf16.vlgmr.msrb.gmra.mxu3 %v2447_v30  ;;  %v4578_v59 = vor.u32 %v4992_v16, %v4577_v15  ;;  %v2061_v0 = vor.u32 %v2060_v48, %v2057_v32  ;;  %v5906_v18 = vld [vmem:[#allocation2 + $0x10] sm:$0xe]  ;;  %v5911_v50 = vld [vmem:[#allocation2 + $0x14] sm:$0x1]  ;;  %3438 = vmatpush.bf16.msra.mxu0 %v5039_v42 }
 0x13c   : > { %1976 = vst [vmem:[#allocation2 + $0x1c] sm:$0x1] %v1975_v62  ;;  %v1897_v17 = vshrl.u32 %v1867_v44, 16  ;;  %v1821_v43 = vadd.f32 %v1807_v24, %v1575_v53  ;;  %v1900_v63 = vshll.u32 %v1867_v44, 16  ;;  %v2010_v52 = vld [vmem:[#allocation2 + $0x10] sm:$0xf]  ;;  %v1809_v24 = vpop.f32.mrf.mxu0  ;;  %v1443_v62 = vadd.f32 %v1432_v21, %v1308_v29 }
 0x13d   : > { %2645 = vmatmul.bf16.vlgmr.msrb.gmra.mxu0 %v4578_v59  ;;  %v2062_v2 = vrot.slane %v2061_v0, 4  ;;  %v2069_v35 = vshrl.u32 %v2010_v52, 16  ;;  %v2072_v19 = vshll.u32 %v2010_v52, 16  ;;  %v4537_v23 = vrot.slane %v5906_v18, 9  ;;  %v4493_v36 = vld [vmem:[#allocation2 + $0x10] sm:$0xf] }
 0x13e   : > { %v1899_v38 = vrot.slane %v1897_v17, 7  ;;  %v1832_v26 = vadd.f32 %v5834_v8, %v1821_v43  ;;  %v2400_v7 = vrot.slane %v5911_v50, 5  ;;  %v2078_v41 = vshll.u32 %v5911_v50, 16  ;;  %v5030_v1 = vld [vmem:[#allocation3 + $0x1b0] sm:$0xff]  ;;  %v5016_v17 = vld [vmem:[#allocation3 + $0x160] sm:$0xff] }
 0x13f   : > { %v2067_v25 = vsel %vm5412_vm2, %v2062_v2, %v2066_v57  ;;  %v2071_v34 = vrot.slane %v2069_v35, 4  ;;  %v2074_v28 = vrot.slane %v2072_v19, 5  ;;  %3193 = vmatpush.bf16.msra.mxu3 %v5030_v1  ;;  %v1986_v50 = vld [vmem:[#allocation2 + $0x2c] sm:$0x1]  ;;  %v5008_v57 = vld [vmem:[#allocation3 + $0x120] sm:$0xff]  ;;  %3060 = vmatpush.bf16.msrb.mxu2 %v5016_v17  ;;  %v5029_v35 = vld [vmem:[#allocation3 + $0x1a8] sm:$0xff] }
 0x140   : > { %v1902_v11 = vor.u32 %v1900_v63, %v1899_v38  ;;  %v1903_v46 = vrot.slane %v1899_v38, 4  ;;  %v1840_v12 = vmax.f32 %v1832_v26, 0.0  ;;  %v2170_v47 = vunpack.c.l.b16 %v2067_v25  ;;  %v5015_v38 = vld [vmem:[#allocation3 + $0x158] sm:$0xff]  ;;  %v5038_v26 = vld [vmem:[#allocation3 + $0x1f0] sm:$0xff]  ;;  %2886 = vmatpush.bf16.msrb.mxu1 %v5008_v57  ;;  %v5028_v29 = vld [vmem:[#allocation3 + $0x1a0] sm:$0xff]  ;;  %v1434_v1 = vpop.f32.mrf.mxu2 }
 0x141   : > { %v1563_v51 = vpop.f32.mrf.mxu3  ;;  %v2075_v49 = vor.u32 %v2074_v28, %v2071_v34  ;;  %v2401_v53 = vsel %vm5876_vm11, %v4537_v23, %v2400_v7  ;;  %v2080_v54 = vrot.slane %v2078_v41, 5  ;;  %3439 = vmatpush.bf16.msra.mxu0 %v5038_v26 }
 0x142   : > { %v1978_v31 = vsel %vm5846_vm7, %v1902_v11, %v1977_v58  ;;  %v1981_v22 = vsel %vm5854_vm8, %v1903_v46, %v1980_v4  ;;  %v1868_v45 = vpack.c.bf16 %v1840_v12, %v1840_v12  ;;  %v2177_v13 = vpack.c.b16 %v2170_v47, %v2169_v5  ;;  %v4965_v10 = vld [vmem:[#allocation2 + $0x14] sm:$0xf0]  ;;  %v5007_v4 = vld [vmem:[#allocation3 + $0x118] sm:$0xff]  ;;  %v5014_v47 = vld [vmem:[#allocation3 + $0x150] sm:$0xff] }
 0x143   : > { %v2366_v32 = vld [vmem:[#allocation2 + $0x18] sm:$0xe]  ;;  %1979 = vst [vmem:[#allocation2 + $0x20] sm:$0xf] %v1978_v31  ;;  %v1576_v14 = vadd.f32 %v1563_v51, %v1442_v61  ;;  %v4494_v30 = vor.u32 %v4965_v10, %v4493_v36  ;;  %v2035_v56 = vld [vmem:[#allocation2 + $0x1c] sm:$0x1]  ;;  %v2441_v52 = vunpack.c.l.b16 %v2401_v53  ;;  %3194 = vmatpush.bf16.msra.mxu3 %v5029_v35  ;;  %3061 = vmatpush.bf16.msrb.mxu2 %v5015_v38 }
 0x144   : > { %v4538_v48 = vrot.slane %v2366_v32, 9  ;;  %1982 = vst [vmem:[#allocation2 + $0x24] sm:$0x1] %v1981_v22  ;;  %v1905_v44 = vshrl.u32 %v1868_v45, 16  ;;  %2241 = vmatmul.bf16.vlgmr.msra.gmra.mxu1 %v2177_v13  ;;  %v2404_v15 = vrot.slane %v2035_v56, 5  ;;  %v1908_v16 = vshll.u32 %v1868_v45, 16  ;;  %v1812_v25 = vpop.f32.mrf.mxu0  ;;  %v1299_v22 = vpop.f32.mrf.mxu1 }
 0x145   : > { %v1822_v59 = vadd.f32 %v1809_v24, %v1576_v14  ;;  %2347 = vmatmul.bf16.gmra.mxu2 %v4494_v30  ;;  %v2011_v0 = vld [vmem:[#allocation2 + $0x18] sm:$0xf]  ;;  %v5925_v18 = vrot.slane %v2075_v49, 4  ;;  %v2092_v60 = vshll.u32 %v2035_v56, 16  ;;  %v5006_v32 = vld [vmem:[#allocation3 + $0x110] sm:$0xff]  ;;  %v1063_v14 = vadd.f32 %v5806_v6, %v5909_v37  ;;  %2887 = vmatpush.bf16.msrb.mxu1 %v5007_v4 }
 0x146   : > { %v1907_v43 = vrot.slane %v1905_v44, 7  ;;  %v2405_v20 = vsel %vm5876_vm11, %v4538_v48, %v2404_v15  ;;  %v2083_v63 = vshrl.u32 %v2011_v0, 16  ;;  %v2086_v2 = vshll.u32 %v2011_v0, 16  ;;  %v4581_v11 = vld [vmem:[#allocation2 + $0x18] sm:$0xf]  ;;  %v5027_v15 = vld [vmem:[#allocation3 + $0x198] sm:$0xff] }
 0x147   : > { %v1833_v5 = vadd.f32 %v5834_v8, %v1822_v59  ;;  %v2442_v9 = vunpack.c.l.b16 %v2405_v20  ;;  %v2081_v46 = vsel %vm5412_vm2, %v5925_v18, %v2080_v54  ;;  %v2094_v12 = vrot.slane %v2092_v60, 5  ;;  %v5037_v31 = vld [vmem:[#allocation3 + $0x1e8] sm:$0xff]  ;;  %3195 = vmatpush.bf16.msra.mxu3 %v5028_v29  ;;  %v5036_v59 = vld [vmem:[#allocation3 + $0x1e0] sm:$0xff]  ;;  %3062 = vmatpush.bf16.msrb.mxu2 %v5014_v47 }
 0x148   : > { %v1910_v19 = vor.u32 %v1908_v16, %v1907_v43  ;;  %v1911_v40 = vrot.slane %v1907_v43, 4  ;;  %v2085_v61 = vrot.slane %v2083_v63, 4  ;;  %v2088_v58 = vrot.slane %v2086_v2, 5  ;;  %3440 = vmatpush.bf16.msra.mxu0 %v5037_v31  ;;  %v5013_v43 = vld [vmem:[#allocation3 + $0x148] sm:$0xff]  ;;  %v1989_v20 = vld [vmem:[#allocation2 + $0x30] sm:$0xf] }
 0x149   : > { %v1841_v24 = vmax.f32 %v1833_v5, 0.0  ;;  %v1566_v23 = vpop.f32.mrf.mxu3  ;;  %v2448_v7 = vpack.c.b16 %v2442_v9, %v2441_v52  ;;  %v1309_v16 = vadd.f32 %v1299_v22, %v1063_v14  ;;  %v2171_v37 = vunpack.c.l.b16 %v2081_v46  ;;  %v1992_v63 = vld [vmem:[#allocation2 + $0x34] sm:$0x1]  ;;  %2888 = vmatpush.bf16.msrb.mxu1 %v5006_v32 }
 0x14a   : > { %v1984_v21 = vsel %vm5846_vm7, %v1910_v19, %v1983_v27  ;;  %v1987_v51 = vsel %vm5854_vm8, %v1911_v40, %v1986_v50  ;;  %v1577_v34 = vadd.f32 %v1566_v23, %v1443_v62  ;;  %v4993_v28 = vld [vmem:[#allocation2 + $0x1c] sm:$0xf0]  ;;  %v2089_v41 = vor.u32 %v2088_v58, %v2085_v61 }
 0x14b   : > { %v2367_v42 = vld [vmem:[#allocation2 + $0x20] sm:$0xe]  ;;  %1985 = vst [vmem:[#allocation2 + $0x28] sm:$0xf] %v1984_v21  ;;  %v1869_v45 = vpack.c.bf16 %v1841_v24, %v1841_v24  ;;  %2516 = vmatmul.bf16.gmra.mxu3 %v2448_v7  ;;  %v4582_v13 = vor.u32 %v4993_v28, %v4581_v11  ;;  %v5937_v36 = vld [vmem:[#allocation2 + $0x24] sm:$0x1]  ;;  %v1444_v50 = vadd.f32 %v1434_v1, %v1309_v16 }
 0x14c   : > { %v4539_v10 = vrot.slane %v2367_v42, 9  ;;  %1988 = vst [vmem:[#allocation2 + $0x2c] sm:$0x1] %v1987_v51  ;;  %v1823_v30 = vadd.f32 %v1812_v25, %v1577_v34  ;;  %v2090_v56 = vrot.slane %v2089_v41, 4  ;;  %v2408_v48 = vrot.slane %v5937_v36, 5  ;;  %3196 = vmatpush.bf16.msra.mxu3 %v5027_v15  ;;  %v5026_v19 = vld [vmem:[#allocation3 + $0x190] sm:$0xff]  ;;  %3441 = vmatpush.bf16.msra.mxu0 %v5036_v59  ;;  %v1814_v11 = vpop.f32.mrf.mxu0 }
 0x14d   : > { %v2012_v49 = vld [vmem:[#allocation2 + $0x20] sm:$0xf]  ;;  %v1913_v62 = vshrl.u32 %v1869_v45, 16  ;;  %2650 = vmatmul.bf16.gmra.mxu0 %v4582_v13  ;;  %v1916_v18 = vshll.u32 %v1869_v45, 16  ;;  %v2106_v35 = vshll.u32 %v5937_v36, 16  ;;  %v5035_v25 = vld [vmem:[#allocation3 + $0x1d8] sm:$0xff]  ;;  %3063 = vmatpush.bf16.msrb.mxu2 %v5013_v43 }
 0x14e   : > { %v2097_v44 = vshrl.u32 %v2012_v49, 16  ;;  %v2100_v53 = vshll.u32 %v2012_v49, 16  ;;  %v1834_v27 = vadd.f32 %v5834_v8, %v1823_v30  ;;  %v2095_v6 = vsel %vm5412_vm2, %v2090_v56, %v2094_v12  ;;  %v4497_v26 = vld [vmem:[#allocation2 + $0x20] sm:$0xf]  ;;  %v5005_v41 = vld [vmem:[#allocation3 + $0x108] sm:$0xff]  ;;  %v5012_v30 = vld [vmem:[#allocation3 + $0x140] sm:$0xff] }
 0x14f   : > { %v1915_v0 = vrot.slane %v1913_v62, 7  ;;  %v2172_v60 = vunpack.c.l.b16 %v2095_v6  ;;  %v2409_v57 = vsel %vm5876_vm11, %v4539_v10, %v2408_v48  ;;  %v1995_v42 = vld [vmem:[#allocation2 + $0x38] sm:$0xf]  ;;  %v2108_v22 = vrot.slane %v2106_v35, 5  ;;  %2889 = vmatpush.bf16.msrb.mxu1 %v5005_v41  ;;  %v5034_v56 = vld [vmem:[#allocation3 + $0x1d0] sm:$0xff]  ;;  %v5004_v15 = vld [vmem:[#allocation3 + $0x100] sm:$0xff] }
 0x150   : > { %v2099_v17 = vrot.slane %v2097_v44, 4  ;;  %v1842_v2 = vmax.f32 %v1834_v27, 0.0  ;;  %v2102_v5 = vrot.slane %v2100_v53, 5  ;;  %v2443_v28 = vunpack.c.l.b16 %v2409_v57  ;;  %3197 = vmatpush.bf16.msra.mxu3 %v5026_v19  ;;  %3442 = vmatpush.bf16.msra.mxu0 %v5035_v25  ;;  %v5025_v48 = vld [vmem:[#allocation3 + $0x188] sm:$0xff]  ;;  %v5961_v57 = vld [vmem:[#allocation2 + $0xc] sm:$0x1] }
 0x151   : > { %v1918_v52 = vor.u32 %v1916_v18, %v1915_v0  ;;  %v1919_v9 = vrot.slane %v1915_v0, 4  ;;  %v2178_v54 = vpack.c.b16 %v2172_v60, %v2171_v37  ;;  %v1568_v38 = vpop.f32.mrf.mxu3  ;;  %v1998_v49 = vld [vmem:[#allocation2 + $0x3c] sm:$0x1]  ;;  %3064 = vmatpush.bf16.msrb.mxu2 %v5012_v30  ;;  %v5024_v0 = vld [vmem:[#allocation3 + $0x180] sm:$0xff] }
 0x152   : > { %v1870_v40 = vpack.c.bf16 %v1842_v2, %v1842_v2  ;;  %v1578_v61 = vadd.f32 %v1568_v38, %v1444_v50  ;;  %v4966_v58 = vld [vmem:[#allocation2 + $0x24] sm:$0xf0]  ;;  %v2103_v24 = vor.u32 %v2102_v5, %v2099_v17  ;;  %v5033_v50 = vld [vmem:[#allocation3 + $0x1c8] sm:$0xff] }
 0x153   : > { %v2368_v4 = vld [vmem:[#allocation2 + $0x28] sm:$0xe]  ;;  %v1990_v23 = vsel %vm5846_vm7, %v1918_v52, %v1989_v20  ;;  %v1993_v7 = vsel %vm5854_vm8, %v1919_v9, %v1992_v63  ;;  %v4498_v46 = vor.u32 %v4966_v58, %v4497_v26  ;;  %v2037_v12 = vld [vmem:[#allocation2 + $0x2c] sm:$0x1]  ;;  %2890 = vmatpush.bf16.msrb.mxu1 %v5004_v15 }
 0x154   : > { %v4540_v47 = vrot.slane %v2368_v4, 9  ;;  %v2013_v29 = vld [vmem:[#allocation2 + $0x28] sm:$0xf]  ;;  %1991 = vst [vmem:[#allocation2 + $0x30] sm:$0xf] %v1990_v23  ;;  %v1921_v21 = vshrl.u32 %v1870_v40, 16  ;;  %2246 = vmatmul.bf16.gmra.mxu1 %v2178_v54  ;;  %v1824_v51 = vadd.f32 %v1814_v11, %v1578_v61  ;;  %3198 = vmatpush.bf16.msra.mxu3 %v5025_v48 }
 0x155   : > { %v2412_v34 = vrot.slane %v2037_v12, 5  ;;  %1994 = vst [vmem:[#allocation2 + $0x34] sm:$0x1] %v1993_v7  ;;  %2352 = vmatmul.bf16.gmra.mxu2 %v4498_v46  ;;  %v2104_v31 = vrot.slane %v2103_v24, 4  ;;  %v2111_v45 = vshrl.u32 %v2013_v29, 16  ;;  %v2114_v13 = vshll.u32 %v2013_v29, 16  ;;  %3443 = vmatpush.bf16.msra.mxu0 %v5034_v56 }
 0x156   : > { %v1923_v36 = vrot.slane %v1921_v21, 7  ;;  %v1924_v10 = vshll.u32 %v1870_v40, 16  ;;  %v1835_v32 = vadd.f32 %v5834_v8, %v1824_v51  ;;  %v2120_v53 = vshll.u32 %v2037_v12, 16  ;;  %v4585_v43 = vld [vmem:[#allocation2 + $0x28] sm:$0xf]  ;;  %v5059_v7 = vld [vmem:[%s6271_s5 + $0x38] sm:$0xff] }
 0x157   : > { %v2413_v14 = vsel %vm5876_vm11, %v4540_v47, %v2412_v34  ;;  %v2113_v62 = vrot.slane %v2111_v45, 4  ;;  %v2116_v44 = vrot.slane %v2114_v13, 5  ;;  %v2109_v8 = vsel %vm5412_vm2, %v2104_v31, %v2108_v22  ;;  %v5963_v54 = vld [vmem:[#allocation2 + $0x14] sm:$0x1]  ;;  %v5965_v38 = vld [vmem:[#allocation2 + $0x8] sm:$0xe]  ;;  %3760 = vmatpush.bf16.msra.mxu2 %v5059_v7 }
 0x158   : > { %v2444_v1 = vunpack.c.l.b16 %v2413_v14  ;;  %v1926_v16 = vor.u32 %v1924_v10, %v1923_v36  ;;  %v1927_v27 = vrot.slane %v1923_v36, 4  ;;  %v1843_v6 = vmax.f32 %v1835_v32, 0.0  ;;  %3199 = vmatpush.bf16.msra.mxu3 %v5024_v0  ;;  %v2001_v4 = vld [vmem:[#allocation2 + $0x40] sm:$0xf]  ;;  %v2004_v11 = vld [vmem:[#allocation2 + $0x44] sm:$0x1] }
 0x159   : > { %v2117_v59 = vor.u32 %v2116_v44, %v2113_v62  ;;  %v2122_v2 = vrot.slane %v2120_v53, 5  ;;  %v2173_v35 = vunpack.c.l.b16 %v2109_v8  ;;  %3444 = vmatpush.bf16.msra.mxu0 %v5033_v50  ;;  %v5032_v47 = vld [vmem:[#allocation3 + $0x1c0] sm:$0xff]  ;;  %v2946_v34 = vrot.slane %v5961_v57, 5  ;;  %v3231_v45 = vld [vmem:[#allocation2 + $0x18] sm:$0xf] }
 0x15a   : > { %v2449_v37 = vpack.c.b16 %v2444_v1, %v2443_v28  ;;  %v1996_v18 = vsel %vm5846_vm7, %v1926_v16, %v1995_v42  ;;  %v1999_v60 = vsel %vm5854_vm8, %v1927_v27, %v1998_v49  ;;  %v1871_v17 = vpack.c.bf16 %v1843_v6, %v1843_v6  ;;  %v3229_v28 = vld [vmem:[#allocation2 + $0x10] sm:$0xf] }
 0x15b   : > { %1997 = vst [vmem:[#allocation2 + $0x38] sm:$0xf] %v1996_v18  ;;  %v4994_v20 = vld [vmem:[#allocation2 + $0x2c] sm:$0xf0]  ;;  %v2118_v63 = vrot.slane %v2117_v59, 4  ;;  %v4655_v31 = vrot.slane %v5965_v38, 9 }
 0x15c   : > { %2521 = vmatmul.bf16.gmra.mxu3 %v2449_v37  ;;  %2000 = vst [vmem:[#allocation2 + $0x3c] sm:$0x1] %v1999_v60  ;;  %v1929_v5 = vshrl.u32 %v1871_v17, 16  ;;  %v1932_v52 = vshll.u32 %v1871_v17, 16  ;;  %v4586_v9 = vor.u32 %v4994_v20, %v4585_v43  ;;  %v5969_v19 = vld [vmem:[#allocation2 + $0x34] sm:$0x1] }
 0x15d   : > { %v2123_v26 = vsel %vm5412_vm2, %v2118_v63, %v2122_v2  ;;  %v2369_v40 = vld [vmem:[#allocation2 + $0x30] sm:$0xe]  ;;  %v2416_v23 = vrot.slane %v5969_v19, 5  ;;  %5077 = vmatpush.bf16.msrb.mxu3 %v5059_v7  ;;  %v2950_v22 = vrot.slane %v5963_v54, 5  ;;  %3445 = vmatpush.bf16.msra.mxu0 %v5032_v47  ;;  %v3246_v44 = vshrl.u32 %v3229_v28, 16  ;;  %v5047_v37 = vld [vmem:[#allocation3 + $0x238] sm:$0xff] }
 0x15e   : > { %v2014_v61 = vld [vmem:[#allocation2 + $0x30] sm:$0xf]  ;;  %v1931_v58 = vrot.slane %v1929_v5, 7  ;;  %2655 = vmatmul.bf16.gmra.mxu0 %v4586_v9  ;;  %v2174_v24 = vunpack.c.l.b16 %v2123_v26  ;;  %v4541_v25 = vrot.slane %v2369_v40, 9  ;;  %v3249_v3 = vshll.u32 %v3229_v28, 16  ;;  %5069 = vmatpush.bf16.msra.mxu1 %v5047_v37  ;;  %v5046_v9 = vld [vmem:[#allocation3 + $0x230] sm:$0xff] }
 0x15f   : > { %v2125_v46 = vshrl.u32 %v2014_v61, 16  ;;  %v2128_v12 = vshll.u32 %v2014_v61, 16  ;;  %v4501_v10 = vld [vmem:[#allocation2 + $0x30] sm:$0xf]  ;;  %v2134_v16 = vshll.u32 %v5969_v19, 16  ;;  %v3260_v18 = vshrl.u32 %v3231_v45, 16 }
 0x160   : > { %v1934_v29 = vor.u32 %v1932_v52, %v1931_v58  ;;  %v1935_v21 = vrot.slane %v1931_v58, 4  ;;  %v2179_v51 = vpack.c.b16 %v2174_v24, %v2173_v35  ;;  %v2417_v30 = vsel %vm5876_vm11, %v4541_v25, %v2416_v23  ;;  %v2921_v62 = vld [vmem:[#allocation2 + $0x10] sm:$0xe]  ;;  %v2674_v61 = vld [vmem:[#allocation2 + $0x8] sm:$0xf] }
 0x161   : > { %v2127_v41 = vrot.slane %v2125_v46, 4  ;;  %v2130_v42 = vrot.slane %v2128_v12, 5  ;;  %v2445_v15 = vunpack.c.l.b16 %v2417_v30  ;;  %v5058_v8 = vld [vmem:[%s6271_s5 + $0x30] sm:$0xff]  ;;  %v3263_v60 = vshll.u32 %v3231_v45, 16  ;;  %3612 = vmatpush.bf16.msrb.mxu0 %v5047_v37  ;;  %v5992_v46 = vld [vmem:[#allocation2 + $0x1c] sm:$0x1] }
 0x162   : > { %v2002_v13 = vsel %vm5846_vm7, %v1934_v29, %v2001_v4  ;;  %v2005_v36 = vsel %vm5854_vm8, %v1935_v21, %v2004_v11  ;;  %v4967_v32 = vld [vmem:[#allocation2 + $0x34] sm:$0xf0]  ;;  %3761 = vmatpush.bf16.msra.mxu2 %v5058_v8  ;;  %v4656_v63 = vrot.slane %v2921_v62, 9  ;;  %v3262_v2 = vrot.slane %v3260_v18, 4  ;;  %v2676_v52 = vld [vmem:[#allocation2 + $0x10] sm:$0xf]  ;;  %5078 = vmatpush.bf16.msrb.mxu3 %v5058_v8 }
 0x163   : > { %v2370_v14 = vld [vmem:[#allocation2 + $0x38] sm:$0xe]  ;;  %2003 = vst [vmem:[#allocation2 + $0x40] sm:$0xf] %v2002_v13  ;;  %v4502_v56 = vor.u32 %v4967_v32, %v4501_v10  ;;  %v2039_v48 = vld [vmem:[#allocation2 + $0x3c] sm:$0x1]  ;;  %v2131_v1 = vor.u32 %v2130_v42, %v2127_v41  ;;  %5070 = vmatpush.bf16.msra.mxu1 %v5046_v9  ;;  %v2947_v29 = vsel %vm5876_vm11, %v4655_v31, %v2946_v34 }
 0x164   : > { %v4542_v49 = vrot.slane %v2370_v14, 9  ;;  %2006 = vst [vmem:[#allocation2 + $0x44] sm:$0x1] %v2005_v36  ;;  %2251 = vmatmul.bf16.gmra.mxu1 %v2179_v51  ;;  %v2420_v55 = vrot.slane %v2039_v48, 5  ;;  %v2015_v53 = vld [vmem:[#allocation2 + $0x38] sm:$0xf]  ;;  %v2951_v21 = vsel %vm5876_vm11, %v4656_v63, %v2950_v22 }
 0x165   : > { %2357 = vmatmul.bf16.gmra.mxu2 %v4502_v56  ;;  %v2139_v27 = vshrl.u32 %v2015_v53, 16  ;;  %v2142_v6 = vshll.u32 %v2015_v53, 16  ;;  %v2148_v0 = vshll.u32 %v2039_v48, 16  ;;  %v2132_v43 = vrot.slane %v2131_v1, 4  ;;  %v4589_v58 = vld [vmem:[#allocation2 + $0x38] sm:$0xf]  ;;  %3613 = vmatpush.bf16.msrb.mxu0 %v5046_v9 }
 0x166   : > { %v2421_v59 = vsel %vm5876_vm11, %v4542_v49, %v2420_v55  ;;  %v3265_v5 = vrot.slane %v3263_v60, 5  ;;  %v2136_v35 = vrot.slane %v2134_v16, 5  ;;  %v3248_v40 = vrot.slane %v3246_v44, 4  ;;  %v5057_v47 = vld [vmem:[%s6271_s5 + $0x28] sm:$0xff]  ;;  %v6009_v41 = vld [vmem:[#allocation2 + $0x14] sm:$0x1] }
 0x167   : > { %v2446_v17 = vunpack.c.l.b16 %v2421_v59  ;;  %v2141_v50 = vrot.slane %v2139_v27, 4  ;;  %v2144_v20 = vrot.slane %v2142_v6, 5  ;;  %v2150_v24 = vrot.slane %v2148_v0, 5  ;;  %3762 = vmatpush.bf16.msra.mxu2 %v5057_v47  ;;  %5079 = vmatpush.bf16.msrb.mxu3 %v5057_v47  ;;  %v3235_v62 = vld [vmem:[#allocation2 + $0x28] sm:$0xf]  ;;  %v5045_v8 = vld [vmem:[#allocation3 + $0x228] sm:$0xff] }
 0x168   : > { %v3251_v25 = vrot.slane %v3249_v3, 5  ;;  %v2137_v7 = vsel %vm5412_vm2, %v2132_v43, %v2136_v35  ;;  %v2705_v12 = vshrl.u32 %v2676_v52, 16  ;;  %v3266_v51 = vor.u32 %v3265_v5, %v3262_v2  ;;  %v5056_v59 = vld [vmem:[%s6271_s5 + $0x20] sm:$0xff]  ;;  %v4697_v43 = vld [vmem:[#allocation2 + $0x10] sm:$0xf]  ;;  %5071 = vmatpush.bf16.msra.mxu1 %v5045_v8 }
 0x169   : > { %v2450_v26 = vpack.c.b16 %v2446_v17, %v2445_v15  ;;  %v2145_v19 = vor.u32 %v2144_v20, %v2141_v50  ;;  %v2691_v42 = vshrl.u32 %v2674_v61, 16  ;;  %v2694_v45 = vshll.u32 %v2674_v61, 16  ;;  %v3233_v15 = vld [vmem:[#allocation2 + $0x20] sm:$0xf]  ;;  %v6019_v60 = vld [vmem:[#allocation2 + $0x24] sm:$0x1]  ;;  %3614 = vmatpush.bf16.msrb.mxu0 %v5045_v8 }
 0x16a   : > { %v4995_v4 = vld [vmem:[#allocation2 + $0x3c] sm:$0xf0]  ;;  %v2708_v13 = vshll.u32 %v2676_v52, 16  ;;  %v2175_v38 = vunpack.c.l.b16 %v2137_v7  ;;  %v3252_v31 = vor.u32 %v3251_v25, %v3248_v40  ;;  %v3269_v36 = vshll.u32 %v5992_v46, 16  ;;  %v5020_v50 = vld [vmem:[#allocation2 + $0x14] sm:$0xf0] }
 0x16b   : > { %v4590_v23 = vor.u32 %v4995_v4, %v4589_v58  ;;  %v2146_v11 = vrot.slane %v2145_v19, 4  ;;  %v2994_v10 = vunpack.c.l.b16 %v2951_v21  ;;  %v2707_v22 = vrot.slane %v2705_v12, 4  ;;  %v2923_v17 = vld [vmem:[#allocation2 + $0x20] sm:$0xe]  ;;  %v6023_v63 = vld [vmem:[#allocation2 + $0x1c] sm:$0x1]  ;;  %3763 = vmatpush.bf16.msra.mxu2 %v5056_v59  ;;  %5080 = vmatpush.bf16.msrb.mxu3 %v5056_v59 }
 0x16c   : > { %2526 = vmatmul.bf16.gmra.mxu3 %v2450_v26  ;;  %v2710_v32 = vrot.slane %v2708_v13, 5  ;;  %v3255_v30 = vshll.u32 %v6009_v41, 16  ;;  %v3267_v56 = vrot.slane %v3266_v51, 4  ;;  %v2993_v48 = vunpack.c.l.b16 %v2947_v29  ;;  %v2922_v35 = vld [vmem:[#allocation2 + $0x18] sm:$0xe] }
 0x16d   : > { %v2151_v28 = vsel %vm5412_vm2, %v2146_v11, %v2150_v24  ;;  %v2693_v49 = vrot.slane %v2691_v42, 4  ;;  %v2696_v1 = vrot.slane %v2694_v45, 5  ;;  %v3253_v44 = vrot.slane %v3252_v31, 4  ;;  %v2680_v4 = vld [vmem:[#allocation2 + $0x20] sm:$0xf]  ;;  %v5055_v13 = vld [vmem:[%s6271_s5 + $0x18] sm:$0xff] }
 0x16e   : > { %2660 = vmatmul.bf16.gmra.mxu0 %v4590_v23  ;;  %v2176_v34 = vunpack.c.l.b16 %v2151_v28  ;;  %v3271_v55 = vrot.slane %v3269_v36, 5  ;;  %v3001_v53 = vpack.c.b16 %v2994_v10, %v2993_v48  ;;  %v2711_v3 = vor.u32 %v2710_v32, %v2707_v22  ;;  %v2678_v29 = vld [vmem:[#allocation2 + $0x18] sm:$0xf]  ;;  %v6030_v28 = vld [vmem:[#allocation2 + $0x2c] sm:$0x1] }
 0x16f   : > { %v3257_v16 = vrot.slane %v3255_v30, 5  ;;  %v3288_v6 = vshrl.u32 %v3235_v62, 16  ;;  %v3291_v37 = vshll.u32 %v3235_v62, 16  ;;  %v2697_v0 = vor.u32 %v2696_v1, %v2693_v49  ;;  %v6039_v10 = vld [vmem:[#allocation2 + $0x24] sm:$0x1]  ;;  %3764 = vmatpush.bf16.msra.mxu2 %v5055_v13  ;;  %5081 = vmatpush.bf16.msrb.mxu3 %v5055_v13 }
 0x170   : > { %v2180_v14 = vpack.c.b16 %v2176_v34, %v2175_v38  ;;  %v3272_v27 = vsel %vm5412_vm2, %v3267_v56, %v3271_v55  ;;  %v2714_v18 = vshll.u32 %v5963_v54, 16  ;;  %v3274_v2 = vshrl.u32 %v3233_v15, 16  ;;  %v5044_v54 = vld [vmem:[#allocation3 + $0x220] sm:$0xff] }
 0x171   : > { %v3258_v20 = vsel %vm5412_vm2, %v3253_v44, %v3257_v16  ;;  %v3277_v5 = vshll.u32 %v3233_v15, 16  ;;  %v3375_v52 = vunpack.c.l.b16 %v3272_v27  ;;  %v2700_v9 = vshll.u32 %v5961_v57, 16  ;;  %5072 = vmatpush.bf16.msra.mxu1 %v5044_v54  ;;  %3615 = vmatpush.bf16.msrb.mxu0 %v5044_v54 }
 0x172   : > { %v2712_v26 = vrot.slane %v2711_v3, 4  ;;  %v4658_v19 = vrot.slane %v2923_v17, 9  ;;  %v2958_v40 = vrot.slane %v6019_v60, 5  ;;  %v3290_v61 = vrot.slane %v3288_v6, 4  ;;  %v3237_v3 = vld [vmem:[#allocation2 + $0x30] sm:$0xf] }
 0x173   : > { %v3293_v58 = vrot.slane %v3291_v37, 5  ;;  %v4698_v24 = vor.u32 %v5020_v50, %v4697_v43  ;;  %v3374_v25 = vunpack.c.l.b16 %v3258_v20  ;;  %v2698_v23 = vrot.slane %v2697_v0, 4  ;;  %v3239_v6 = vld [vmem:[#allocation2 + $0x38] sm:$0xf]  ;;  %v5021_v17 = vld [vmem:[#allocation2 + $0x24] sm:$0xf0] }
 0x174   : > { %2256 = vmatmul.bf16.gmra.mxu1 %v2180_v14  ;;  %v2716_v7 = vrot.slane %v2714_v18, 5  ;;  %v4657_v11 = vrot.slane %v2922_v35, 9  ;;  %v2954_v12 = vrot.slane %v6023_v63, 5  ;;  %v3276_v47 = vrot.slane %v3274_v2, 4  ;;  %v4701_v18 = vld [vmem:[#allocation2 + $0x20] sm:$0xf] }
 0x175   : > { %3065 = vmatmul.bf16.vlgmr.msrb.gmra.mxu2 %v3001_v53  ;;  %v3279_v57 = vrot.slane %v3277_v5, 5  ;;  %v2702_v21 = vrot.slane %v2700_v9, 5  ;;  %v2733_v42 = vshrl.u32 %v2680_v4, 16  ;;  %v2736_v45 = vshll.u32 %v2680_v4, 16  ;;  %v5054_v35 = vld [vmem:[%s6271_s5 + $0x10] sm:$0xff] }
 0x176   : > { %v2717_v51 = vsel %vm5412_vm2, %v2712_v26, %v2716_v7  ;;  %v3382_v38 = vpack.c.b16 %v3375_v52, %v3374_v25  ;;  %v2959_v34 = vsel %vm5876_vm11, %v4658_v19, %v2958_v40  ;;  %v3294_v31 = vor.u32 %v3293_v58, %v3290_v61  ;;  %v5043_v26 = vld [vmem:[#allocation3 + $0x218] sm:$0xff]  ;;  %v6051_v40 = vld [vmem:[#allocation2 + $0x34] sm:$0x1]  ;;  %v2925_v61 = vld [vmem:[#allocation2 + $0x30] sm:$0xe]  ;;  %3765 = vmatpush.bf16.msra.mxu2 %v5054_v35 }
 0x177   : > { %v2703_v36 = vsel %vm5412_vm2, %v2698_v23, %v2702_v21  ;;  %v2719_v22 = vshrl.u32 %v2678_v29, 16  ;;  %v2722_v32 = vshll.u32 %v2678_v29, 16  ;;  %v2820_v14 = vunpack.c.l.b16 %v2717_v51  ;;  %v6056_v25 = vld [vmem:[#allocation2 + $0x2c] sm:$0x1]  ;;  %v2924_v23 = vld [vmem:[#allocation2 + $0x28] sm:$0xe]  ;;  %5073 = vmatpush.bf16.msra.mxu1 %v5043_v26  ;;  %3616 = vmatpush.bf16.msrb.mxu0 %v5043_v26 }
 0x178   : > { %v2955_v30 = vsel %vm5876_vm11, %v4657_v11, %v2954_v12  ;;  %v3280_v56 = vor.u32 %v3279_v57, %v3276_v47  ;;  %v3297_v48 = vshll.u32 %v6030_v28, 16  ;;  %v2996_v49 = vunpack.c.l.b16 %v2959_v34  ;;  %v2684_v57 = vld [vmem:[#allocation2 + $0x30] sm:$0xf]  ;;  %5082 = vmatpush.bf16.msrb.mxu3 %v5054_v35  ;;  %v6080_v26 = vld [vmem:[#allocation2 + $0x3c] sm:$0x1] }
 0x179   : > { %v2735_v1 = vrot.slane %v2733_v42, 4  ;;  %v2738_v62 = vrot.slane %v2736_v45, 5  ;;  %v2819_v44 = vunpack.c.l.b16 %v2703_v36  ;;  %v3283_v55 = vshll.u32 %v6039_v10, 16  ;;  %v2682_v45 = vld [vmem:[#allocation2 + $0x28] sm:$0xf] }
 0x17a   : > { %v3295_v53 = vrot.slane %v3294_v31, 4  ;;  %v2995_v15 = vunpack.c.l.b16 %v2955_v30  ;;  %v2721_v16 = vrot.slane %v2719_v22, 4  ;;  %v2724_v27 = vrot.slane %v2722_v32, 5  ;;  %v6060_v22 = vld [vmem:[#allocation2 + $0x34] sm:$0x1] }
 0x17b   : > { %v2827_v37 = vpack.c.b16 %v2820_v14, %v2819_v44  ;;  %v3281_v8 = vrot.slane %v3280_v56, 4  ;;  %v3299_v59 = vrot.slane %v3297_v48, 5  ;;  %v2739_v43 = vor.u32 %v2738_v62, %v2735_v1  ;;  %v6064_v56 = vld [vmem:[#allocation2 + $0x3c] sm:$0x1]  ;;  %v5053_v62 = vld [vmem:[%s6271_s5 + $0x8] sm:$0xff] }
 0x17c   : > { %3200 = vmatmul.bf16.vlgmr.msra.gmra.mxu3 %v4698_v24  ;;  %v3002_v0 = vpack.c.b16 %v2996_v49, %v2995_v15  ;;  %v3302_v50 = vshrl.u32 %v3237_v3, 16  ;;  %v3305_v20 = vshll.u32 %v3237_v3, 16  ;;  %v3285_v2 = vrot.slane %v3283_v55, 5  ;;  %3766 = vmatpush.bf16.msra.mxu2 %v5053_v62  ;;  %v2926_v35 = vld [vmem:[#allocation2 + $0x38] sm:$0xe] }
 0x17d   : > { %v3300_v5 = vsel %vm5412_vm2, %v3295_v53, %v3299_v59  ;;  %v3316_v52 = vshrl.u32 %v3239_v6, 16  ;;  %v3319_v9 = vshll.u32 %v3239_v6, 16  ;;  %v2725_v54 = vor.u32 %v2724_v27, %v2721_v16  ;;  %5083 = vmatpush.bf16.msrb.mxu3 %v5053_v62 }
 0x17e   : > { %3446 = vmatmul.bf16.vlgmr.msra.gmra.mxu0 %v3382_v38  ;;  %v2742_v19 = vshll.u32 %v6019_v60, 16  ;;  %v4702_v58 = vor.u32 %v5021_v17, %v4701_v18  ;;  %v3286_v4 = vsel %vm5412_vm2, %v3281_v8, %v3285_v2  ;;  %v2728_v24 = vshll.u32 %v6023_v63, 16  ;;  %v5042_v60 = vld [vmem:[#allocation3 + $0x210] sm:$0xff] }
 0x17f   : > { %v3377_v7 = vunpack.c.l.b16 %v3300_v5  ;;  %v2740_v11 = vrot.slane %v2739_v43, 4  ;;  %v3304_v12 = vrot.slane %v3302_v50, 4  ;;  %v3307_v47 = vrot.slane %v3305_v20, 5  ;;  %5074 = vmatpush.bf16.msra.mxu1 %v5042_v60  ;;  %3617 = vmatpush.bf16.msrb.mxu0 %v5042_v60  ;;  %v4705_v20 = vld [vmem:[#allocation2 + $0x30] sm:$0xf] }
 0x180   : > { %v4660_v29 = vrot.slane %v2925_v61, 9  ;;  %v2966_v21 = vrot.slane %v6051_v40, 5  ;;  %v3318_v51 = vrot.slane %v3316_v52, 4  ;;  %v3321_v42 = vrot.slane %v3319_v9, 5 }
 0x181   : > { %v2726_v63 = vrot.slane %v2725_v54, 4  ;;  %v2744_v13 = vrot.slane %v2742_v19, 5  ;;  %v4659_v38 = vrot.slane %v2924_v23, 9  ;;  %v2962_v34 = vrot.slane %v6056_v25, 5  ;;  %v3475_v23 = vld [vmem:[#allocation2 + $0x10] sm:$0xe] }
 0x182   : > { %v3376_v31 = vunpack.c.l.b16 %v3286_v4  ;;  %v2730_v36 = vrot.slane %v2728_v24, 5  ;;  %v2761_v32 = vshrl.u32 %v2684_v57, 16  ;;  %v2764_v14 = vshll.u32 %v2684_v57, 16  ;;  %v3241_v4 = vld [vmem:[#allocation2 + $0x40] sm:$0xf] }
 0x183   : > { %v2745_v30 = vsel %vm5412_vm2, %v2740_v11, %v2744_v13  ;;  %v3308_v48 = vor.u32 %v3307_v47, %v3304_v12  ;;  %v2747_v49 = vshrl.u32 %v2682_v45, 16  ;;  %v2750_v1 = vshll.u32 %v2682_v45, 16  ;;  %v3243_v24 = vld [vmem:[#allocation2 + $0x48] sm:$0xf]  ;;  %v6086_v47 = vld [vmem:[#allocation2 + $0x44] sm:$0x1] }
 0x184   : > { %2891 = vmatmul.bf16.vlgmr.msrb.gmra.mxu1 %v2827_v37  ;;  %v3383_v44 = vpack.c.b16 %v3377_v7, %v3376_v31  ;;  %v2967_v55 = vsel %vm5876_vm11, %v4660_v29, %v2966_v21  ;;  %v3322_v53 = vor.u32 %v3321_v42, %v3318_v51  ;;  %v2731_v3 = vsel %vm5412_vm2, %v2726_v63, %v2730_v36  ;;  %v2927_v57 = vld [vmem:[#allocation2 + $0x40] sm:$0xe]  ;;  %v5041_v42 = vld [vmem:[#allocation3 + $0x208] sm:$0xff] }
 0x185   : > { %3070 = vmatmul.bf16.gmra.mxu2 %v3002_v0  ;;  %v2963_v15 = vsel %vm5876_vm11, %v4659_v38, %v2962_v34  ;;  %v3311_v16 = vshll.u32 %v6060_v22, 16  ;;  %v2822_v27 = vunpack.c.l.b16 %v2745_v30  ;;  %v3325_v6 = vshll.u32 %v6064_v56, 16  ;;  %v6077_v0 = vld [vmem:[#allocation2 + $0x34] sm:$0xf0]  ;;  %v5052_v45 = vld [vmem:[%s6271_s5] sm:$0xff]  ;;  %5075 = vmatpush.bf16.msra.mxu1 %v5041_v42 }
 0x186   : > { %v2763_v37 = vrot.slane %v2761_v32, 4  ;;  %v2766_v8 = vrot.slane %v2764_v14, 5  ;;  %v2998_v59 = vunpack.c.l.b16 %v2967_v55  ;;  %v3309_v18 = vrot.slane %v3308_v48, 4  ;;  %v3476_v34 = vld [vmem:[#allocation2 + $0x18] sm:$0xe]  ;;  %3767 = vmatpush.bf16.msra.mxu2 %v5052_v45  ;;  %3618 = vmatpush.bf16.msrb.mxu0 %v5041_v42  ;;  %v5040_v55 = vld [vmem:[#allocation3 + $0x200] sm:$0xff] }
 0x187   : > { %v2749_v17 = vrot.slane %v2747_v49, 4  ;;  %v2752_v43 = vrot.slane %v2750_v1, 5  ;;  %v2821_v50 = vunpack.c.l.b16 %v2731_v3  ;;  %v3323_v2 = vrot.slane %v3322_v53, 4  ;;  %5084 = vmatpush.bf16.msrb.mxu3 %v5052_v45 }
 0x188   : > { %v2756_v5 = vshll.u32 %v6056_v25, 16  ;;  %v2997_v52 = vunpack.c.l.b16 %v2963_v15  ;;  %v3313_v9 = vrot.slane %v3311_v16, 5  ;;  %v4706_v19 = vor.u32 %v6077_v0, %v4705_v20 }
 0x189   : > { %v2828_v54 = vpack.c.b16 %v2822_v27, %v2821_v50  ;;  %v3327_v61 = vrot.slane %v3325_v6, 5  ;;  %v2753_v12 = vor.u32 %v2752_v43, %v2749_v17  ;;  %v2770_v25 = vshll.u32 %v6051_v40, 16  ;;  %5076 = vmatpush.bf16.msra.mxu1 %v5040_v55 }
 0x18a   : > { %v3003_v7 = vpack.c.b16 %v2998_v59, %v2997_v52  ;;  %v3314_v11 = vsel %vm5412_vm2, %v3309_v18, %v3313_v9  ;;  %v2758_v29 = vrot.slane %v2756_v5, 5  ;;  %v4661_v21 = vrot.slane %v2926_v35, 9  ;;  %3619 = vmatpush.bf16.msrb.mxu0 %v5040_v55  ;;  %v6111_v52 = vld [vmem:[#allocation2 + $0x44] sm:$0x1] }
 0x18b   : > { %v3328_v60 = vsel %vm5412_vm2, %v3323_v2, %v3327_v61  ;;  %v2970_v51 = vrot.slane %v6080_v26, 5  ;;  %v3330_v63 = vshrl.u32 %v3241_v4, 16  ;;  %v3333_v13 = vshll.u32 %v3241_v4, 16 }
 0x18c   : > { %3205 = vmatmul.bf16.gmra.mxu3 %v4702_v58  ;;  %v2767_v58 = vor.u32 %v2766_v8, %v2763_v37  ;;  %v3344_v40 = vshrl.u32 %v3243_v24, 16  ;;  %v3347_v38 = vshll.u32 %v3243_v24, 16  ;;  %v3378_v31 = vunpack.c.l.b16 %v3314_v11  ;;  %v2686_v8 = vld [vmem:[#allocation2 + $0x38] sm:$0xf] }
 0x18d   : > { %v4662_v32 = vrot.slane %v2927_v57, 9  ;;  %v2974_v14 = vrot.slane %v6086_v47, 5  ;;  %v3379_v30 = vunpack.c.l.b16 %v3328_v60  ;;  %v2754_v48 = vrot.slane %v2753_v12, 4 }
 0x18e   : > { %3451 = vmatmul.bf16.gmra.mxu0 %v3383_v44  ;;  %v2768_v36 = vrot.slane %v2767_v58, 4  ;;  %v2772_v49 = vrot.slane %v2770_v25, 5  ;;  %v4775_v1 = vrot.slane %v3475_v23, 9  ;;  %v2971_v62 = vsel %vm5876_vm11, %v4661_v21, %v2970_v51  ;;  %v2688_v44 = vld [vmem:[#allocation2 + $0x40] sm:$0xf] }
 0x18f   : > { %v3501_v53 = vrot.slane %v6009_v41, 5  ;;  %v4776_v3 = vrot.slane %v3476_v34, 9  ;;  %v3505_v15 = vrot.slane %v5992_v46, 5  ;;  %v3332_v16 = vrot.slane %v3330_v63, 4  ;;  %v6107_v46 = vld [vmem:[#allocation2 + $0x4c] sm:$0x1] }
 0x190   : > { %v3335_v27 = vrot.slane %v3333_v13, 5  ;;  %v3346_v6 = vrot.slane %v3344_v40, 4  ;;  %v3349_v37 = vrot.slane %v3347_v38, 5  ;;  %v2773_v59 = vsel %vm5412_vm2, %v2768_v36, %v2772_v49  ;;  %v4709_v36 = vld [vmem:[#allocation2 + $0x40] sm:$0xf] }
 0x191   : > { %v2975_v0 = vsel %vm5876_vm11, %v4662_v32, %v2974_v14  ;;  %v3502_v18 = vsel %vm5876_vm11, %v4775_v1, %v3501_v53  ;;  %v3506_v41 = vsel %vm5876_vm11, %v4776_v3, %v3505_v15  ;;  %v2789_v17 = vshrl.u32 %v2688_v44, 16  ;;  %v5023_v32 = vld [vmem:[#allocation2 + $0x44] sm:$0xf0] }
 0x192   : > { %v2792_v43 = vshll.u32 %v2688_v44, 16  ;;  %v3548_v50 = vunpack.c.l.b16 %v3502_v18  ;;  %v3549_v20 = vunpack.c.l.b16 %v3506_v41  ;;  %v3384_v2 = vpack.c.b16 %v3379_v30, %v3378_v31  ;;  %v3477_v18 = vld [vmem:[#allocation2 + $0x20] sm:$0xe] }
 0x193   : > { %v2759_v5 = vsel %vm5412_vm2, %v2754_v48, %v2758_v29  ;;  %v3353_v9 = vshll.u32 %v6107_v46, 16  ;;  %v2775_v35 = vshrl.u32 %v2686_v8, 16  ;;  %v3350_v61 = vor.u32 %v3349_v37, %v3346_v6 }
 0x194   : > { %2896 = vmatmul.bf16.gmra.mxu1 %v2828_v54  ;;  %v3336_v54 = vor.u32 %v3335_v27, %v3332_v16  ;;  %v2778_v58 = vshll.u32 %v2686_v8, 16  ;;  %v2824_v4 = vunpack.c.l.b16 %v2773_v59  ;;  %v3000_v24 = vunpack.c.l.b16 %v2975_v0  ;;  %v5048_v16 = vld [vmem:[%s5378_s20 + $0x28] sm:$0xf0]  ;;  %v3478_v8 = vld [vmem:[#allocation2 + $0x28] sm:$0xe] }
 0x195   : > { %3075 = vmatmul.bf16.gmra.mxu2 %v3003_v7  ;;  %v3339_v23 = vshll.u32 %v6111_v52, 16  ;;  %v2791_v7 = vrot.slane %v2789_v17, 4  ;;  %v2794_v11 = vrot.slane %v2792_v43, 5  ;;  %v2823_v12 = vunpack.c.l.b16 %v2759_v5  ;;  %v4829_v59 = vld [vmem:[%s5378_s20 + $0xcc] sm:$0xf] }
 0x196   : > { %v2999_v25 = vunpack.c.l.b16 %v2971_v62  ;;  %v3355_v57 = vrot.slane %v3353_v9, 5  ;;  %v3337_v60 = vrot.slane %v3336_v54, 4  ;;  %v3351_v29 = vrot.slane %v3350_v61, 4  ;;  %v5051_v0 = vld [vmem:[%s5378_s20 + $0xe8] sm:$0xf0] }
 0x197   : > { %v2777_v21 = vrot.slane %v2775_v35, 4  ;;  %v2780_v51 = vrot.slane %v2778_v58, 5  ;;  %v2829_v42 = vpack.c.b16 %v2824_v4, %v2823_v12  ;;  %v3341_v63 = vrot.slane %v3339_v23, 5  ;;  %v4821_v61 = vld [vmem:[%s5378_s20 + $0x4c] sm:$0xf] }
 0x198   : > { %v3004_v45 = vpack.c.b16 %v3000_v24, %v2999_v25  ;;  %v2795_v13 = vor.u32 %v2794_v11, %v2791_v7  ;;  %v3356_v38 = vsel %vm5412_vm2, %v3351_v29, %v3355_v57  ;;  %v2798_v31 = vshll.u32 %v6086_v47, 16  ;;  %v5049_v58 = vld [vmem:[%s5378_s20 + $0x68] sm:$0xf0]  ;;  %v3480_v25 = vld [vmem:[#allocation2 + $0x38] sm:$0xe] }
 0x199   : > { %v3342_v40 = vsel %vm5412_vm2, %v3337_v60, %v3341_v63  ;;  %v2781_v34 = vor.u32 %v2780_v51, %v2777_v21  ;;  %v2784_v14 = vshll.u32 %v6080_v26, 16  ;;  %v3381_v49 = vunpack.c.l.b16 %v3356_v38  ;;  %v4817_v26 = vld [vmem:[%s5378_s20 + $0xc] sm:$0xf]  ;;  %v3479_v60 = vld [vmem:[#allocation2 + $0x30] sm:$0xe] }
 0x19a   : > { %v2796_v30 = vrot.slane %v2795_v13, 4  ;;  %v3380_v48 = vunpack.c.l.b16 %v3342_v40  ;;  %v4710_v1 = vor.u32 %v5023_v32, %v4709_v36  ;;  %v2800_v44 = vrot.slane %v2798_v31, 5  ;;  %v4825_v32 = vld [vmem:[%s5378_s20 + $0x8c] sm:$0xf] }
 0x19b   : > { %v2782_v62 = vrot.slane %v2781_v34, 4  ;;  %v2786_v55 = vrot.slane %v2784_v14, 5  ;;  %v4818_v6 = vor.u32 %v5048_v16, %v4817_v26  ;;  %v3513_v41 = vrot.slane %v6030_v28, 5  ;;  %v5050_v14 = vld [vmem:[%s5378_s20 + $0xa8] sm:$0xf0]  ;;  %s5190_s20 = scalar_lea.hbm %s5189_s15, 64 }
 0x19c   : > { %3210 = vmatmul.bf16.gmra.mxu3 %v4706_v19  ;;  %v3556_v19 = vpack.c.b16 %v3549_v20, %v3548_v50  ;;  %v2801_v53 = vsel %vm5412_vm2, %v2796_v30, %v2800_v44  ;;  %v3385_v47 = vpack.c.b16 %v3381_v49, %v3380_v48  ;;  %v4778_v17 = vrot.slane %v3478_v8, 9  ;;  %p5191_p0 = scmp.ne.s32.totalorder %s5189_s15, %s5190_s20  ;;  %p5196_p4 = scmp.lt.s32.totalorder %s5194_s18, %s5190_s20 }
 0x19d   : > { %v2787_v3 = vsel %vm5412_vm2, %v2782_v62, %v2786_v55  ;;  %v2826_v15 = vunpack.c.l.b16 %v2801_v53  ;;  %v4830_v39 = vor.u32 %v5051_v0, %v4829_v59  ;;  %v3509_v50 = vrot.slane %v6039_v10, 5  ;;  %v3481_v55 = vld [vmem:[#allocation2 + $0x40] sm:$0xe]  ;;  %v3482_v53 = vld [vmem:[#allocation2 + $0x48] sm:$0xe] }
 0x19e   : > { %3456 = vmatmul.bf16.gmra.mxu0 %v3384_v2  ;;  %v2825_v27 = vunpack.c.l.b16 %v2787_v3  ;;  %v4777_v20 = vrot.slane %v3477_v18, 9  ;;  %v3514_v5 = vsel %vm5876_vm11, %v4778_v17, %v3513_v41  ;;  %v4822_v23 = vor.u32 %v5049_v58, %v4821_v61  ;;  %p5192_p1 = pnand %p5191_p0, %p5326_p5  ;;  %p5197_p7 = por %p5196_p4, %p5195_p3 }
 0x19f   : > { %v3551_v54 = vunpack.c.l.b16 %v3514_v5  ;;  %v4780_v29 = vrot.slane %v3480_v25, 9  ;;  %v4826_v49 = vor.u32 %v5050_v14, %v4825_v32  ;;  %v4781_v3 = vrot.slane %v3481_v55, 9 }
 0x1a0   : > { %v2830_v37 = vpack.c.b16 %v2826_v15, %v2825_v27  ;;  %v3510_v9 = vsel %vm5876_vm11, %v4777_v20, %v3509_v50  ;;  %v3525_v15 = vrot.slane %v6111_v52, 5  ;;  %v4782_v26 = vrot.slane %v3482_v53, 9  ;;  %p5193_p2 = pneg %p5192_p1 }
 0x1a1   : > { %v3550_v4 = vunpack.c.l.b16 %v3510_v9  ;;  %v3529_v16 = vrot.slane %v6107_v46, 5 }
 0x1a2   : > { %v3526_v59 = vsel %vm5876_vm11, %v4781_v3, %v3525_v15  ;;  %p5198_p8 = pnand %p5197_p7, %p5193_p2 }
 0x1a3   : > { %v3557_v10 = vpack.c.b16 %v3551_v54, %v3550_v4  ;;  %v3530_v0 = vsel %vm5876_vm11, %v4782_v26, %v3529_v16 }
 0x1a4   : > { %2901 = vmatmul.bf16.gmra.mxu1 %v2829_v42  ;;  %v4779_v42 = vrot.slane %v3479_v60, 9 }
 0x1a5   : > { %3080 = vmatmul.bf16.gmra.mxu2 %v3004_v45  ;;  %v3517_v45 = vrot.slane %v6060_v22, 5 }
 0x1a7   : > { %v3518_v34 = vsel %vm5876_vm11, %v4779_v42, %v3517_v45 }
 0x1ac   : > { %3215 = vmatmul.bf16.gmra.mxu3 %v4710_v1 }
 0x1ae   : > { %3461 = vmatmul.bf16.gmra.mxu0 %v3385_v47 }
 0x1b4   : > { %2906 = vmatmul.bf16.gmra.mxu1 %v2830_v37 }
 0x1b5   : > { %3768 = vmatmul.bf16.vlgmr.msra.gmra.mxu2 %v4818_v6 }
 0x1b8   : > { %v2343_v43 = vpop.f32.mrf.mxu2 }
 0x1ba   : > { %v2646_v2 = vpop.f32.mrf.mxu0 }
 0x1bc   : > { %3783 = vmatmul.bf16.vlgmr.msrb.gmra.mxu3 %v4830_v39  ;;  %v3554_v39 = vunpack.c.l.b16 %v3526_v59 }
 0x1be   : > { %v2512_v35 = vpop.f32.mrf.mxu3  ;;  %3620 = vmatmul.bf16.vlgmr.msrb.gmra.mxu0 %v3556_v19  ;;  %v3521_v19 = vrot.slane %v6064_v56, 5  ;;  %v3552_v56 = vunpack.c.l.b16 %v3518_v34 }
 0x1c0   : > { %v2345_v28 = vpop.f32.mrf.mxu2  ;;  %v3522_v40 = vsel %vm5876_vm11, %v4780_v29, %v3521_v19 }
 0x1c1   : > { %v2242_v24 = vpop.f32.mrf.mxu1  ;;  %v3553_v36 = vunpack.c.l.b16 %v3522_v40 }
 0x1c2   : > { %v2344_v7 = vadd.f32 %v2343_v43, %v2242_v24  ;;  %v2648_v11 = vpop.f32.mrf.mxu0  ;;  %v3555_v43 = vunpack.c.l.b16 %v3530_v0 }
 0x1c3   : > { %v3558_v62 = vpack.c.b16 %v3553_v36, %v3552_v56 }
 0x1c4   : > { %v2532_v12 = vadd.f32 %v2512_v35, %v2344_v7  ;;  %3625 = vmatmul.bf16.vlgmr.msra.gmra.mxu1 %v3557_v10  ;;  %v3559_v5 = vpack.c.b16 %v3555_v43, %v3554_v39  ;;  %v6180_v39 = vld [vmem:[%s6272_s6] ss:$0 sm:$0xff] }
 0x1c5   : > { %3773 = vmatmul.bf16.gmra.mxu2 %v4822_v23 }
 0x1c6   : > { %v2514_v57 = vpop.f32.mrf.mxu3  ;;  %v2666_v41 = vadd.f32 %v2646_v2, %v2532_v12 }
 0x1c8   : > { %v2348_v21 = vpop.f32.mrf.mxu2 }
 0x1c9   : > { %v2244_v51 = vpop.f32.mrf.mxu1 }
 0x1ca   : > { %v2346_v63 = vadd.f32 %v2345_v28, %v2244_v51  ;;  %v2651_v13 = vpop.f32.mrf.mxu0 }
 0x1cc   : > { %v2533_v38 = vadd.f32 %v2514_v57, %v2346_v63 }
 0x1ce   : > { %v2517_v31 = vpop.f32.mrf.mxu3  ;;  %v2667_v35 = vadd.f32 %v2648_v11, %v2533_v38 }
 0x1d0   : > { %v2350_v30 = vpop.f32.mrf.mxu2 }
 0x1d1   : > { %v2247_v48 = vpop.f32.mrf.mxu1 }
 0x1d2   : > { %v2349_v1 = vadd.f32 %v2348_v21, %v2247_v48  ;;  %v2653_v22 = vpop.f32.mrf.mxu0 }
 0x1d4   : > { %v2534_v44 = vadd.f32 %v2517_v31, %v2349_v1  ;;  %3630 = vmatmul.bf16.gmra.mxu1 %v3558_v62 }
 0x1d5   : > { %3778 = vmatmul.bf16.gmra.mxu2 %v4826_v49 }
 0x1d6   : > { %v2519_v47 = vpop.f32.mrf.mxu3  ;;  %v2668_v24 = vadd.f32 %v2651_v13, %v2534_v44 }
 0x1d8   : > { %v2353_v27 = vpop.f32.mrf.mxu2 }
 0x1d9   : > { %v2249_v6 = vpop.f32.mrf.mxu1 }
 0x1da   : > { %v2351_v37 = vadd.f32 %v2350_v30, %v2249_v6 }
 0x1db   : > { %v2656_v8 = vpop.f32.mrf.mxu0 }
 0x1dc   : > { %v2535_v18 = vadd.f32 %v2519_v47, %v2351_v37 }
 0x1de   : > { %v2669_v57 = vadd.f32 %v2653_v22, %v2535_v18 }
 0x1df   : > { %v2522_v17 = vpop.f32.mrf.mxu3 }
 0x1e0   : > { %v2355_v50 = vpop.f32.mrf.mxu2 }
 0x1e1   : > { %v2252_v52 = vpop.f32.mrf.mxu1 }
 0x1e2   : > { %v2354_v20 = vadd.f32 %v2353_v27, %v2252_v52 }
 0x1e3   : > { %v2658_v46 = vpop.f32.mrf.mxu0 }
 0x1e4   : > { %v2536_v9 = vadd.f32 %v2522_v17, %v2354_v20  ;;  %3635 = vmatmul.bf16.gmra.mxu1 %v3559_v5  ;;  %v6187_v5 = vld [vmem:[%s6270_s4] ss:$0 sm:$0xff] }
 0x1e6   : > { %v6151_v42 = vadd.f32 %v2656_v8, %v2536_v9 }
 0x1e7   : > { %v2524_v54 = vpop.f32.mrf.mxu3 }
 0x1e8   : > { %v2358_v61 = vpop.f32.mrf.mxu2 }
 0x1e9   : > { %v2254_v58 = vpop.f32.mrf.mxu1 }
 0x1ea   : > { %v2356_v28 = vadd.f32 %v2355_v50, %v2254_v58 }
 0x1eb   : > { %v2661_v4 = vpop.f32.mrf.mxu0 }
 0x1ec   : > { %v2537_v33 = vadd.f32 %v2524_v54, %v2356_v28 }
 0x1ee   : > { %v6153_v38 = vadd.f32 %v2658_v46, %v2537_v33 }
 0x1ef   : > { %v2527_v7 = vpop.f32.mrf.mxu3 }
 0x1f0   : > { %v2360_v23 = vpop.f32.mrf.mxu2 }
 0x1f1   : > { %v2257_v2 = vpop.f32.mrf.mxu1 }
 0x1f2   : > { %v2359_v10 = vadd.f32 %v2358_v61, %v2257_v2 }
 0x1f3   : > { %v2663_v12 = vpop.f32.mrf.mxu0 }
 0x1f4   : > { %v2538_v25 = vadd.f32 %v2527_v7, %v2359_v10 }
 0x1f6   : > { %v6155_v36 = vadd.f32 %v2661_v4, %v2538_v25 }
 0x1f7   : > { %v2529_v21 = vpop.f32.mrf.mxu3 }
 0x1f8   : > { %v3066_v60 = vpop.f32.mrf.mxu2 }
 0x1f9   : > { %v2259_v29 = vpop.f32.mrf.mxu1 }
 0x1fa   : > { %v2361_v19 = vadd.f32 %v2360_v23, %v2259_v29 }
 0x1fb   : > { %v3447_v51 = vpop.f32.mrf.mxu0 }
 0x1fc   : > { %v2539_v11 = vadd.f32 %v2529_v21, %v2361_v19 }
 0x1fe   : > { %v6159_v48 = vadd.f32 %v2663_v12, %v2539_v11 }
 0x1ff   : > { %v3201_v14 = vpop.f32.mrf.mxu3 }
 0x200   : > { %v3068_v45 = vpop.f32.mrf.mxu2 }
 0x201   : > { %v2892_v63 = vpop.f32.mrf.mxu1 }
 0x202   : > { %v2912_v16 = vadd.f32 %v2892_v63, %v2666_v41 }
 0x203   : > { %v3449_v40 = vpop.f32.mrf.mxu0 }
 0x204   : > { %v3086_v8 = vadd.f32 %v3066_v60, %v2912_v16 }
 0x206   : > { %v3221_v0 = vadd.f32 %v3201_v14, %v3086_v8 }
 0x207   : > { %v3203_v62 = vpop.f32.mrf.mxu3 }
 0x208   : > { %v3071_v13 = vpop.f32.mrf.mxu2  ;;  %v3467_v20 = vadd.f32 %v3447_v51, %v3221_v0 }
 0x209   : > { %v2894_v34 = vpop.f32.mrf.mxu1 }
 0x20a   : > { %v2913_v18 = vadd.f32 %v2894_v34, %v2667_v35 }
 0x20b   : > { %v3452_v31 = vpop.f32.mrf.mxu0 }
 0x20c   : > { %v3087_v52 = vadd.f32 %v3068_v45, %v2913_v18 }
 0x20e   : > { %v3222_v61 = vadd.f32 %v3203_v62, %v3087_v52 }
 0x20f   : > { %v3206_v47 = vpop.f32.mrf.mxu3 }
 0x210   : > { %v3073_v32 = vpop.f32.mrf.mxu2  ;;  %v3468_v7 = vadd.f32 %v3449_v40, %v3222_v61 }
 0x211   : > { %v2897_v30 = vpop.f32.mrf.mxu1 }
 0x212   : > { %v2914_v17 = vadd.f32 %v2897_v30, %v2668_v24 }
 0x213   : > { %v6157_v56 = vpop.f32.mrf.mxu0 }
 0x214   : > { %v3088_v46 = vadd.f32 %v3071_v13, %v2914_v17 }
 0x216   : > { %v3223_v28 = vadd.f32 %v3206_v47, %v3088_v46 }
 0x217   : > { %v3208_v27 = vpop.f32.mrf.mxu3 }
 0x218   : > { %v3076_v49 = vpop.f32.mrf.mxu2  ;;  %v3469_v25 = vadd.f32 %v3452_v31, %v3223_v28 }
 0x219   : > { %v2899_v1 = vpop.f32.mrf.mxu1 }
 0x21a   : > { %v2915_v4 = vadd.f32 %v2899_v1, %v2669_v57 }
 0x21b   : > { %v6161_v22 = vpop.f32.mrf.mxu0 }
 0x21c   : > { %v3089_v10 = vadd.f32 %v3073_v32, %v2915_v4 }
 0x21e   : > { %v3224_v51 = vadd.f32 %v3208_v27, %v3089_v10 }
 0x21f   : > { %v3211_v41 = vpop.f32.mrf.mxu3 }
 0x220   : > { %v6163_v44 = vpop.f32.mrf.mxu2  ;;  %v3470_v14 = vadd.f32 %v6157_v56, %v3224_v51 }
 0x221   : > { %v2902_v55 = vpop.f32.mrf.mxu1 }
 0x222   : > { %v2916_v11 = vadd.f32 %v2902_v55, %v6151_v42 }
 0x223   : > { %v6165_v53 = vpop.f32.mrf.mxu0 }
 0x224   : > { %v3090_v32 = vadd.f32 %v3076_v49, %v2916_v11 }
 0x226   : > { %v3225_v16 = vadd.f32 %v3211_v41, %v3090_v32 }
 0x227   : > { %v3213_v12 = vpop.f32.mrf.mxu3 }
 0x228   : > { %v6167_v3 = vpop.f32.mrf.mxu2  ;;  %v3471_v56 = vadd.f32 %v6161_v22, %v3225_v16 }
 0x229   : > { %v2904_v15 = vpop.f32.mrf.mxu1 }
 0x22a   : > { %v2917_v42 = vadd.f32 %v2904_v15, %v6153_v38 }
 0x22b   : > { %v6169_v26 = vpop.f32.mrf.mxu0 }
 0x22c   : > { %v3091_v49 = vadd.f32 %v6163_v44, %v2917_v42 }
 0x22e   : > { %v3226_v41 = vadd.f32 %v3213_v12, %v3091_v49 }
 0x22f   : > { %v3216_v1 = vpop.f32.mrf.mxu3 }
 0x230   : > { %v6171_v6 = vpop.f32.mrf.mxu2  ;;  %v3472_v22 = vadd.f32 %v6165_v53, %v3226_v41 }
 0x231   : > { %v6173_v37 = vpop.f32.mrf.mxu1 }
 0x232   : > { %v2918_v17 = vadd.f32 %v6173_v37, %v6155_v36 }
 0x233   : > { %v6175_v59 = vpop.f32.mrf.mxu0 }
 0x234   : > { %v3092_v15 = vadd.f32 %v6167_v3, %v2918_v17 }
 0x237   : > { %v3218_v38 = vpop.f32.mrf.mxu3 }
 0x238   : > { %v3769_v43 = vpop.f32.mrf.mxu2 }
 0x239   : > { %v6182_v50 = vpop.f32.mrf.mxu1  ;;  %v3770_v35 = vadd.f32 %v6180_v39, %v3769_v43 }
 0x23a   : > { %v2919_v36 = vadd.f32 %v6182_v50, %v6159_v48 }
 0x23b   : > { %v3621_v9 = vpop.f32.mrf.mxu0 }
 0x23c   : > { %v3641_v54 = vadd.f32 %v3621_v9, %v3467_v20  ;;  %v3093_v3 = vadd.f32 %v6171_v6, %v2919_v36 }
 0x23e   : > { %v3652_v58 = vadd.f32 %v6187_v5, %v3641_v54  ;;  %v3227_v54 = vadd.f32 %v3216_v1, %v3092_v15 }
 0x240   : > { %v3789_v33 = vadd.f32 %v3770_v35, %v3652_v58  ;;  %v3771_v24 = vpop.f32.mrf.mxu2  ;;  %v3784_v58 = vpop.f32.mrf.mxu3  ;;  %v3473_v28 = vadd.f32 %v6169_v26, %v3227_v54 }
 0x241   : > { %v3626_v23 = vpop.f32.mrf.mxu1  ;;  %v3772_v21 = vadd.f32 %v6180_v39, %v3771_v24 }
 0x242   : > { %v3797_v2 = vmax.f32 %v3789_v33, 0.0  ;;  %v3643_v19 = vadd.f32 %v3626_v23, %v3469_v25  ;;  %v3785_v23 = vadd.f32 %v6180_v39, %v3784_v58 }
 0x243   : > { %v3623_v60 = vpop.f32.mrf.mxu0 }
 0x244   : > { %3805 = vst [vmem:[%s6194_s22] sm:$0xff] %v3797_v2  ;;  %v3642_v29 = vadd.f32 %v3623_v60, %v3468_v7  ;;  %v3654_v40 = vadd.f32 %v6187_v5, %v3643_v19  ;;  %v3228_v2 = vadd.f32 %v3218_v38, %v3093_v3 }
 0x246   : > { %v3653_v57 = vadd.f32 %v6187_v5, %v3642_v29  ;;  %v3474_v6 = vadd.f32 %v6175_v59, %v3228_v2 }
 0x248   : > { %v3790_v45 = vadd.f32 %v3772_v21, %v3653_v57  ;;  %v3774_v63 = vpop.f32.mrf.mxu2  ;;  %v3786_v25 = vpop.f32.mrf.mxu3 }
 0x249   : > { %v3628_v13 = vpop.f32.mrf.mxu1  ;;  %v3775_v34 = vadd.f32 %v6180_v39, %v3774_v63  ;;  %v3787_v19 = vadd.f32 %v6180_v39, %v3786_v25 }
 0x24a   : > { %v3798_v31 = vmax.f32 %v3790_v45, 0.0  ;;  %v3644_v62 = vadd.f32 %v3628_v13, %v3470_v14 }
 0x24b   : > { %v3791_v30 = vadd.f32 %v3775_v34, %v3654_v40 }
 0x24c   : > { %3806 = vst [vmem:[%s6194_s22 + $0x8] sm:$0xff] %v3798_v31  ;;  %v3655_v27 = vadd.f32 %v6187_v5, %v3644_v62 }
 0x24d   : > { %v3799_v47 = vmax.f32 %v3791_v30, 0.0 }
 0x24f   : > { %3807 = vst [vmem:[%s6194_s22 + $0x10] sm:$0xff] %v3799_v47 }
 0x250   : > { %v3776_v55 = vpop.f32.mrf.mxu2 }
 0x251   : > { %v3631_v8 = vpop.f32.mrf.mxu1  ;;  %v3777_v0 = vadd.f32 %v6180_v39, %v3776_v55 }
 0x252   : > { %v3645_v43 = vadd.f32 %v3631_v8, %v3471_v56 }
 0x253   : > { %v3792_v18 = vadd.f32 %v3777_v0, %v3655_v27 }
 0x254   : > { %v3656_v46 = vadd.f32 %v6187_v5, %v3645_v43 }
 0x255   : > { %v3800_v52 = vmax.f32 %v3792_v18, 0.0 }
 0x257   : > { %3808 = vst [vmem:[%s6194_s22 + $0x18] sm:$0xff] %v3800_v52 }
 0x258   : > { %v3779_v20 = vpop.f32.mrf.mxu2 }
 0x259   : > { %v3633_v9 = vpop.f32.mrf.mxu1  ;;  %v3780_v44 = vadd.f32 %v6180_v39, %v3779_v20 }
 0x25a   : > { %v3646_v37 = vadd.f32 %v3633_v9, %v3472_v22 }
 0x25b   : > { %v3793_v35 = vadd.f32 %v3780_v44, %v3656_v46 }
 0x25c   : > { %v3657_v33 = vadd.f32 %v6187_v5, %v3646_v37 }
 0x25d   : > { %v3801_v61 = vmax.f32 %v3793_v35, 0.0 }
 0x25f   : > { %3809 = vst [vmem:[%s6194_s22 + $0x20] sm:$0xff] %v3801_v61 }
 0x260   : > { %v3781_v4 = vpop.f32.mrf.mxu2 }
 0x261   : > { %v3636_v53 = vpop.f32.mrf.mxu1  ;;  %v3782_v24 = vadd.f32 %v6180_v39, %v3781_v4 }
 0x262   : > { %v3647_v48 = vadd.f32 %v3636_v53, %v3473_v28 }
 0x263   : > { %v3794_v50 = vadd.f32 %v3782_v24, %v3657_v33 }
 0x264   : > { %v3658_v7 = vadd.f32 %v6187_v5, %v3647_v48 }
 0x265   : > { %v3802_v10 = vmax.f32 %v3794_v50, 0.0 }
 0x266   : > { %v3795_v12 = vadd.f32 %v3785_v23, %v3658_v7 }
 0x267   : > { %3810 = vst [vmem:[%s6194_s22 + $0x28] sm:$0xff] %v3802_v10 }
 0x268   : > { %v3803_v26 = vmax.f32 %v3795_v12, 0.0 }
 0x269   : > { %v3638_v60 = vpop.f32.mrf.mxu1 }
 0x26a   : > { %3811 = vst [vmem:[%s6194_s22 + $0x30] sm:$0xff] %v3803_v26  ;;  %v3648_v29 = vadd.f32 %v3638_v60, %v3474_v6 }
 0x26c   : > { %v3659_v21 = vadd.f32 %v6187_v5, %v3648_v29 }
 0x26e   : > { %v3796_v57 = vadd.f32 %v3787_v19, %v3659_v21 }
 0x270   : > { %v3804_v51 = vmax.f32 %v3796_v57, 0.0 }
 0x272   : > { %3812 = vst [vmem:[%s6194_s22 + $0x38] sm:$0xff] %v3804_v51 }
 0x273   : > { %5201 = shalt.err (!%p5198_p8)
}
 0x274   : > { %s5246_s19 = smov 128   ;;  %s5247_s22 = smov 8  }
 0x275   : > { %5090 = dma.vmem_to_hbm [thread:$0]  (%p5326_p5), %s3827_s13, 1024, %s3829_s28, %s3814_s14, %s5246_s19, %s5246_s19, %s5247_s22  }
 0x276 PF: > { %p5102_p9 = scmp.ge.s32.totalorder %s5240_s27, 2  ;;  %s3843_s29 = sand.u32 1, %s5228_s24  }
 0x277   : > { %s3844_s8 = scalar_lea.sflag [#allocation5], %s3843_s29 }
 0x278   : > { %p5097_p10 = pnand %p5102_p9, %p5330_p6 }
 0x27a   : > { %p5098_p11 = pneg %p5097_p10 }
 0x27c   : > { %5223 = dma.done.wait (%p5098_p11), %s3844_s8, 1024  }
 0x27d   : > { %5225 = vsyncadd (%p5098_p11), %s3844_s8, 4294966272  ;;  %p18_p12 = scmp.ge.s32.totalorder %s5313_s30, 4   ;;  %s6284_s24 = smov %s5232_s25 }
 0x27e   : > { %s6285_s25 = smov %s5236_s26  ;;  %s6286_s26 = smov %s5324_s10 }
 0x27f   : > { %s6287_s27 = smov %s5313_s30  ;;  %20 = sbr.rel (!%p18_p12) target bundleno = 4 (0x4), region = 107 }
 0x284   :  { %3850 = vsyncpa [#allocation4], 1 }
 0x285   :  { %3852 = vsyncpa [#allocation4 + $0x1], 1 }
 0x286   :  { %3853 = vsyncpa [#allocation5], 1 }
 0x287   :  { %3855 = vsyncpa [#allocation5 + $0x1], 1 }

</bundles_post_ra>
